<compile_context>
chip_gen: v5e
topology: v5e:2x2
jax: 0.10.0
libtpu: 0.0.40
codegen_flags: <defaults>
</compile_context>

<pallas_src>
import functools
import math

import jax
import jax.numpy as jnp
from jax import lax
from jax.experimental import pallas as pl
from jax.experimental.pallas import tpu as pltpu


# ----------------------------------------------------------------------------
# Generation-aware VMEM budget / tile preferences
# ----------------------------------------------------------------------------
def _vmem_capacity_bytes():
    try:
        return int(pltpu.get_tpu_info().vmem_capacity_bytes)
    except Exception:
        return 0  # unknown -> be conservative


_VMEM_CAP = _vmem_capacity_bytes()
if _VMEM_CAP >= 100 * 1024 * 1024:        # v5e / v6e class (128 MiB VMEM per core)
    _VMEM_LIMIT = 96 * 1024 * 1024
    _ROW_TILE_PREF = 512
else:                                     # v7x class (64 MiB) or unknown
    _VMEM_LIMIT = 48 * 1024 * 1024
    _ROW_TILE_PREF = 256
_COL_TILE_PREF = 256


def _round_up(x, m):
    return ((x + m - 1) // m) * m


def _pick_row_tile(m):
    # Rows only need sublane (8) alignment; B is padded to 8 so m % 8 == 0 always.
    for t in (_ROW_TILE_PREF, 256, 128, 64, 32, 16, 8):
        if t <= _ROW_TILE_PREF and m % t == 0:
            return t
    return m


def _pick_col_tile(n):
    # n is always a multiple of 128 here (padded), so this never falls through.
    for t in (_COL_TILE_PREF, 256, 128):
        if t <= _COL_TILE_PREF and n % t == 0:
            return t
    return n


# ----------------------------------------------------------------------------
# Kernel 1: tiled GEMM + bias (used for the fused input projection and the final fc)
# ----------------------------------------------------------------------------
def gemm_bias_kernel(x_ref, w_ref, b_ref, o_ref):
    acc = jnp.dot(x_ref[...], w_ref[...], preferred_element_type=jnp.float32)
    o_ref[...] = (acc + b_ref[...]).astype(o_ref.dtype)


def gemm_bias(x, w, b, out_dtype):
    """x (M, K) bf16, w (K, N) bf16, b (1, N) f32 -> (M, N) out_dtype.

    Requires M % 8 == 0 and N % 128 == 0 (guaranteed by the padding in pack_params /
    the batch padding in the forward pass)."""
    M, K = x.shape
    N = w.shape[1]
    tm = _pick_row_tile(M)
    tn = _pick_col_tile(N)
    n_m, n_n = M // tm, N // tn

    # Keep resident (constant block index across the inner grid axis) the operand
    # whose redundant re-streaming would cost more HBM bytes; Pallas skips the DMA
    # when consecutive grid steps map to the same block.
    w_restream = n_m * K * N * w.dtype.itemsize   # cost if x is the resident operand
    x_restream = n_n * M * K * x.dtype.itemsize   # cost if w is the resident operand
    if w_restream <= x_restream:
        grid = (n_m, n_n)                         # x block constant across inner j
        x_spec = pl.BlockSpec((tm, K), lambda i, j: (i, 0))
        w_spec = pl.BlockSpec((K, tn), lambda i, j: (0, j))
        b_spec = pl.BlockSpec((1, tn), lambda i, j: (0, j))
        o_spec = pl.BlockSpec((tm, tn), lambda i, j: (i, j))
    else:
        grid = (n_n, n_m)                         # w block constant across inner i
        x_spec = pl.BlockSpec((tm, K), lambda j, i: (i, 0))
        w_spec = pl.BlockSpec((K, tn), lambda j, i: (0, j))
        b_spec = pl.BlockSpec((1, tn), lambda j, i: (0, j))
        o_spec = pl.BlockSpec((tm, tn), lambda j, i: (i, j))

    # TODO(synk): add a K-accumulation grid axis + f32 VMEM scratch if K grows beyond
    #             what a single (tm, K)+(K, tn) pair of blocks can hold in VMEM.
    return pl.pallas_call(
        gemm_bias_kernel,
        out_shape=jax.ShapeDtypeStruct((M, N), out_dtype),
        grid=grid,
        in_specs=[x_spec, w_spec, b_spec],
        out_specs=o_spec,
        compiler_params=pltpu.CompilerParams(
            dimension_semantics=("parallel", "parallel"),
            vmem_limit_bytes=_VMEM_LIMIT),
    )(x, w, b)


# ----------------------------------------------------------------------------
# Kernel 2: time-chunked bidirectional GRU recurrence
# ----------------------------------------------------------------------------
def gru_recurrence_kernel(gi_ref, h0_ref, whh_ref, bhh_ref, out_ref, hT_ref, h_scr):
    """One (direction, time-chunk) grid step.

    gi_ref  : (tt, Bp, 3Hp) bf16   precomputed x@Wih + bih for this direction/chunk
    h0_ref  : (Bp, Hp)     f32     initial hidden for this direction
    whh_ref : (Hp, 3Hp)    bf16    fused recurrent weights (r, z, n)
    bhh_ref : (1, 3Hp)     f32     recurrent bias (bhh_n stays inside the r*(...) term)
    out_ref : (tt, Bp, Hp) bf16    this direction's half of the (T, Bp, 2Hp) output
    hT_ref  : (Bp, Hp)     f32     final hidden state for this direction
    h_scr   : (Bp, Hp)     f32     persistent hidden-state carry across time chunks
    """
    tc = pl.program_id(1)
    nt = pl.num_programs(1)
    tt = gi_ref.shape[0]
    Hp = h0_ref.shape[-1]
    reverse = pl.program_id(0) == 1            # backward direction walks time backwards

    @pl.when(tc == 0)
    def _():
        h_scr[...] = h0_ref[...]

    def step(s, h):
        t = jnp.where(reverse, (tt - 1) - s, s)
        gi = gi_ref[t]                                                   # (Bp, 3Hp) bf16
        gh = jnp.dot(h.astype(jnp.bfloat16), whh_ref[...],
                     preferred_element_type=jnp.float32) + bhh_ref[...]  # (Bp, 3Hp) f32
        r = jax.nn.sigmoid(gi[:, :Hp] + gh[:, :Hp])
        z = jax.nn.sigmoid(gi[:, Hp:2 * Hp] + gh[:, Hp:2 * Hp])
        n = jnp.tanh(gi[:, 2 * Hp:] + r * gh[:, 2 * Hp:])
        h_new = n + z * (h - n)                 # == (1-z)*n + z*h, fewer VALU ops
        out_ref[t] = h_new.astype(out_ref.dtype)
        return h_new

    # Unroll short chunks so the LLO scheduler can overlap the MXU push with the
    # previous step's VPU/EUP epilogue.
    unroll = tt if tt <= 8 else 4
    h_last = lax.fori_loop(0, tt, step, h_scr[...], unroll=unroll)
    h_scr[...] = h_last

    @pl.when(tc == nt - 1)
    def _():
        hT_ref[...] = h_last


def _pick_time_chunk(T, Bp, Hp):
    # Double-buffered gi (3Hp wide, bf16) + out (Hp wide, bf16) chunks must fit well
    # inside the VMEM budget; leave room for weights, h0/hT and the h scratch.
    per_step = Bp * (3 * Hp + Hp) * 2 * 2
    budget = _VMEM_LIMIT // 3
    max_tt = max(1, budget // max(per_step, 1))
    for c in (128, 64, 32, 16, 8, 4, 2, 1):
        if c <= max_tt and T % c == 0:
            return c
    return 1


def gru_bidir_recurrence(gi, h0, whh, bhh):
    """gi (T,Bp,6Hp) bf16, h0 (2,Bp,Hp) f32, whh (2,Hp,3Hp) bf16, bhh (2,1,3Hp) f32
    -> out (T,Bp,2Hp) bf16 ([fwd | bwd] on lanes), hT (2,Bp,Hp) f32."""
    T, Bp, sixHp = gi.shape
    Hp = sixHp // 6
    threeHp = 3 * Hp
    tt = _pick_time_chunk(T, Bp, Hp)
    nt = T // tt

    def t_block(d, tc):
        # Forward walks chunks 0..nt-1, backward walks nt-1..0 (d is 0/1).
        return d * (nt - 1 - tc) + (1 - d) * tc

    return pl.pallas_call(
        gru_recurrence_kernel,
        out_shape=(jax.ShapeDtypeStruct((T, Bp, 2 * Hp), jnp.bfloat16),
                   jax.ShapeDtypeStruct((2, Bp, Hp), jnp.float32)),
        grid=(2, nt),                              # (direction parallel, time arbitrary)
        in_specs=[
            pl.BlockSpec((tt, Bp, threeHp), lambda d, tc: (t_block(d, tc), 0, d)),
            pl.BlockSpec((None, Bp, Hp), lambda d, tc: (d, 0, 0)),
            pl.BlockSpec((None, Hp, threeHp), lambda d, tc: (d, 0, 0)),
            pl.BlockSpec((None, 1, threeHp), lambda d, tc: (d, 0, 0)),
        ],
        out_specs=(
            pl.BlockSpec((tt, Bp, Hp), lambda d, tc: (t_block(d, tc), 0, d)),
            pl.BlockSpec((None, Bp, Hp), lambda d, tc: (d, 0, 0)),
        ),
        scratch_shapes=[pltpu.VMEM((Bp, Hp), jnp.float32)],
        compiler_params=pltpu.CompilerParams(
            dimension_semantics=("parallel", "arbitrary"),
            vmem_limit_bytes=_VMEM_LIMIT),
    )(gi, h0, whh, bhh)


# ----------------------------------------------------------------------------
# Model forward (glue in plain JAX, hot paths in Pallas)
# ----------------------------------------------------------------------------
def potry_forward(packed, text, hidden):
    """text (B,T) int32, hidden (2L,B,H) f32 -> (logits (B,T,V) f32, hidden_out (2L,B,H))."""
    B, T = text.shape
    H, Hp = packed["H"], packed["Hp"]
    V, Vp = packed["V"], packed["Vp"]
    Bp = _round_up(B, 8)

    # Embedding gather stays in XLA (jnp.take); indexing text.T keeps it time-major
    # so no activation transpose is needed before the GRU.
    emb = jnp.take(packed["embedding"], text.T, axis=0).astype(jnp.bfloat16)  # (T,B,E)
    if Bp != B:
        emb = jnp.pad(emb, ((0, 0), (0, Bp - B), (0, 0)))
    layer_in = emb.reshape(T * Bp, -1)                                        # (T*Bp, E)

    hidden_p = jnp.pad(hidden.astype(jnp.float32),
                       ((0, 0), (0, Bp - B), (0, Hp - H)))                    # (2L,Bp,Hp)

    h_finals = []
    for l, (wih6, bih6, whh2, bhh2) in enumerate(packed["gru"]):
        # One fused GEMM for both directions: (T*Bp, In) @ (In, 6Hp) + bias, bf16 out.
        gi_flat = gemm_bias(layer_in, wih6, bih6, out_dtype=jnp.bfloat16)     # (T*Bp,6Hp)
        gi = gi_flat.reshape(T, Bp, 6 * Hp)                                   # free reshape
        h0 = hidden_p[2 * l:2 * l + 2]                                        # (2,Bp,Hp)
        out, hT = gru_bidir_recurrence(gi, h0, whh2, bhh2)  # (T,Bp,2Hp) bf16, (2,Bp,Hp)
        h_finals.append(hT)
        layer_in = out.reshape(T * Bp, 2 * Hp)
        # (dropout between layers skipped: eval semantics)

    # Final linear on batch-major rows so logits come out directly as (B, T, V);
    # transposing the 2Hp-wide hidden here is cheaper than transposing V-wide logits.
    out_tm = layer_in.reshape(T, Bp, 2 * Hp)
    out_bm = jnp.transpose(out_tm, (1, 0, 2)).reshape(Bp * T, 2 * Hp)
    logits_p = gemm_bias(out_bm, packed["fc_w"], packed["fc_b"],
                         out_dtype=jnp.float32)                               # (Bp*T,Vp)
    logits = logits_p.reshape(Bp, T, Vp)[:B, :, :V]

    hidden_out = jnp.concatenate(h_finals, axis=0)[:, :B, :H]                 # (2L,B,H)
    return logits, hidden_out


# ----------------------------------------------------------------------------
# Parameter init (PyTorch-like uniform) and packing (pad / fuse / bf16 cast)
# ----------------------------------------------------------------------------
def init_params(key, vocab_size, embedding_dim, hidden_dim, num_layers):
    bound = 1.0 / math.sqrt(hidden_dim)
    keys = iter(jax.random.split(key, 1 + num_layers * 4 + 2))

    params = {}
    params["embedding"] = (jax.random.normal(next(keys), (vocab_size, embedding_dim),
                                             dtype=jnp.float32) * 0.1)
    gru = []
    for l in range(num_layers):
        in_dim = embedding_dim if l == 0 else 2 * hidden_dim
        # Per direction (leading dim 2), gates fused on the last axis in order (r, z, n).
        wih = jax.random.uniform(next(keys), (2, in_dim, 3 * hidden_dim),
                                 minval=-bound, maxval=bound, dtype=jnp.float32)
        whh = jax.random.uniform(next(keys), (2, hidden_dim, 3 * hidden_dim),
                                 minval=-bound, maxval=bound, dtype=jnp.float32)
        bih = jax.random.uniform(next(keys), (2, 1, 3 * hidden_dim),
                                 minval=-bound, maxval=bound, dtype=jnp.float32)
        bhh = jax.random.uniform(next(keys), (2, 1, 3 * hidden_dim),
                                 minval=-bound, maxval=bound, dtype=jnp.float32)
        gru.append((wih, whh, bih, bhh))
    params["gru"] = gru

    fc_bound = 1.0 / math.sqrt(2 * hidden_dim)
    params["fc_w"] = jax.random.uniform(next(keys), (2 * hidden_dim, vocab_size),
                                        minval=-fc_bound, maxval=fc_bound,
                                        dtype=jnp.float32)
    params["fc_b"] = jax.random.uniform(next(keys), (vocab_size,),
                                        minval=-fc_bound, maxval=fc_bound,
                                        dtype=jnp.float32)
    return params


def _pad_gate_axis(w, H, Hp):
    """Pad each of the 3 gate blocks (r, z, n) on the last axis from H to Hp with zeros."""
    parts = []
    for g in range(3):
        blk = w[..., g * H:(g + 1) * H]
        pad = [(0, 0)] * (w.ndim - 1) + [(0, Hp - H)]
        parts.append(jnp.pad(blk, pad))
    return jnp.concatenate(parts, axis=-1)


def _pad_bidir_rows(w, H, Hp):
    """Rows laid out [fwd H | bwd H] -> [fwd H | zeros | bwd H | zeros] (2Hp rows)."""
    cols = w.shape[1]
    out = jnp.zeros((2 * Hp, cols), w.dtype)
    out = out.at[:H].set(w[:H])
    out = out.at[Hp:Hp + H].set(w[H:2 * H])
    return out


def pack_params(raw, hidden_dim, vocab_size):
    """Pad H->Hp (mult of 128) / V->Vp, fuse directions for Wih/bih, cast weights to bf16.

    Zero padding keeps the padded hidden lanes identically zero through the recurrence
    (zero weight columns/rows and zero biases => n=0, h'_pad = z*h_pad with h0_pad = 0)."""
    H = hidden_dim
    Hp = _round_up(H, 128)
    V = vocab_size
    Vp = _round_up(V, 128)

    packed = {"embedding": raw["embedding"], "H": H, "Hp": Hp, "V": V, "Vp": Vp}

    gru = []
    for l, (wih, whh, bih, bhh) in enumerate(raw["gru"]):
        wih_d, bih_d, whh_d, bhh_d = [], [], [], []
        for d in range(2):
            w = _pad_gate_axis(wih[d], H, Hp)                 # (in, 3Hp)
            if l > 0:                                         # rows follow [fwd|bwd] layout
                w = _pad_bidir_rows(w, H, Hp)                 # (2Hp, 3Hp)
            wih_d.append(w)
            bih_d.append(_pad_gate_axis(bih[d], H, Hp))       # (1, 3Hp)
            wr = _pad_gate_axis(whh[d], H, Hp)                # (H, 3Hp)
            whh_d.append(jnp.pad(wr, ((0, Hp - H), (0, 0))))  # (Hp, 3Hp)
            bhh_d.append(_pad_gate_axis(bhh[d], H, Hp))       # (1, 3Hp)
        wih6 = jnp.concatenate(wih_d, axis=-1).astype(jnp.bfloat16)   # (in', 6Hp)
        bih6 = jnp.concatenate(bih_d, axis=-1).astype(jnp.float32)    # (1, 6Hp)
        whh2 = jnp.stack(whh_d, axis=0).astype(jnp.bfloat16)          # (2, Hp, 3Hp)
        bhh2 = jnp.stack(bhh_d, axis=0).astype(jnp.float32)           # (2, 1, 3Hp)
        gru.append((wih6, bih6, whh2, bhh2))
    packed["gru"] = gru

    fc_w = _pad_bidir_rows(raw["fc_w"], H, Hp)                        # (2Hp, V)
    packed["fc_w"] = jnp.pad(fc_w, ((0, 0), (0, Vp - V))).astype(jnp.bfloat16)
    packed["fc_b"] = jnp.pad(raw["fc_b"], (0, Vp - V)).reshape(1, Vp).astype(jnp.float32)
    return packed


# ----------------------------------------------------------------------------
if __name__ == "__main__":
    vocab_size = 64
    embedding_dim = 32
    hidden_dim = 32
    num_layers = 2
    batch = 2
    seq_len = 8

    key = jax.random.PRNGKey(0)
    k_param, k_text = jax.random.split(key)

    raw_params = init_params(k_param, vocab_size, embedding_dim, hidden_dim, num_layers)
    packed_params = pack_params(raw_params, hidden_dim, vocab_size)

    text = jax.random.randint(k_text, (batch, seq_len), 0, vocab_size, dtype=jnp.int32)
    # PyTorch GRU hidden convention: (num_layers * 2, batch, hidden).
    hidden0 = jnp.zeros((num_layers * 2, batch, hidden_dim), dtype=jnp.float32)

    fwd = jax.jit(functools.partial(potry_forward, packed_params))
    logits, hidden_out = fwd(text, hidden0)
    jax.block_until_ready((logits, hidden_out))

    assert logits.shape == (batch, seq_len, vocab_size)
    assert hidden_out.shape == (num_layers * 2, batch, hidden_dim)
    assert bool(jnp.all(jnp.isfinite(logits)))
    print("KERNEL_OK")
</pallas_src>

<mosaic_0001>
module attributes {stable_mosaic.version = 11 : i64} {
  func.func @gemm_bias_kernel(%arg0: i32, %arg1: i32, %arg2: memref<64x256xbf16, #tpu.memory_space<vmem>>, %arg3: memref<256x256xbf16, #tpu.memory_space<vmem>>, %arg4: memref<1x256xf32, #tpu.memory_space<vmem>>, %arg5: memref<64x256xbf16, #tpu.memory_space<vmem>>) attributes {dimension_semantics = [#tpu.dimension_semantics<parallel>, #tpu.dimension_semantics<parallel>], iteration_bounds = array<i64: 3, 1>, scalar_prefetch = 0 : i64, scratch_operands = 0 : i64, tpu.core_type = #tpu.core_type<tc>, window_params = [{transform_indices = @transform_0, window_bounds = array<i64: 64, 256>}, {transform_indices = @transform_1, window_bounds = array<i64: 256, 256>}, {transform_indices = @transform_2, window_bounds = array<i64: 1, 256>}, {transform_indices = @transform_3, window_bounds = array<i64: 64, 256>}]} {
    %c0 = arith.constant 0 : index
    %c0_0 = arith.constant 0 : index
    %0 = vector.load %arg2[%c0, %c0_0] : memref<64x256xbf16, #tpu.memory_space<vmem>>, vector<64x256xbf16>
    %c0_1 = arith.constant 0 : index
    %c0_2 = arith.constant 0 : index
    %1 = vector.load %arg3[%c0_1, %c0_2] : memref<256x256xbf16, #tpu.memory_space<vmem>>, vector<256x256xbf16>
    %cst = arith.constant dense<0.000000e+00> : vector<64x256xf32>
    %2 = tpu.matmul %0, %1, %cst {dimension_numbers = #tpu.dot_dimension_numbers<[1], [0], [0], [1], [0, 0, 1, 1], [], []>} : vector<64x256xbf16>, vector<256x256xbf16>, vector<64x256xf32> -> vector<64x256xf32>
    %c0_3 = arith.constant 0 : index
    %c0_4 = arith.constant 0 : index
    %3 = vector.load %arg4[%c0_3, %c0_4] : memref<1x256xf32, #tpu.memory_space<vmem>>, vector<1x256xf32>
    %4 = vector.broadcast %3 : vector<1x256xf32> to vector<64x256xf32>
    %5 = arith.addf %2, %4 : vector<64x256xf32>
    %6 = arith.truncf %5 : vector<64x256xf32> to vector<64x256xbf16>
    %c0_5 = arith.constant 0 : index
    %c0_6 = arith.constant 0 : index
    %7 = vector.load %arg5[%c0_5, %c0_6] : memref<64x256xbf16, #tpu.memory_space<vmem>>, vector<64x256xbf16>
    tpu.vector_store %arg5[%c0_5, %c0_6], %6 {strides = array<i32>} : memref<64x256xbf16, #tpu.memory_space<vmem>>, vector<64x256xbf16>,
    return
  }
  func.func @transform_0(%arg0: i32, %arg1: i32) -> (i32, i32) {
    %c0_i32 = arith.constant 0 : i32
    %c0_i32_0 = arith.constant 0 : i32
    return %arg1, %c0_i32 : i32, i32
  }
  func.func @transform_1(%arg0: i32, %arg1: i32) -> (i32, i32) {
    %c0_i32 = arith.constant 0 : i32
    %c0_i32_0 = arith.constant 0 : i32
    return %c0_i32, %arg0 : i32, i32
  }
  func.func @transform_2(%arg0: i32, %arg1: i32) -> (i32, i32) {
    %c0_i32 = arith.constant 0 : i32
    %c0_i32_0 = arith.constant 0 : i32
    return %c0_i32, %arg0 : i32, i32
  }
  func.func @transform_3(%arg0: i32, %arg1: i32) -> (i32, i32) {
    %c0_i32 = arith.constant 0 : i32
    return %arg1, %arg0 : i32, i32
  }
}

module attributes {stable_mosaic.version = 11 : i64} {
  func.func @gemm_bias_kernel(%arg0: i32, %arg1: i32, %arg2: memref<64x256xbf16, #tpu.memory_space<vmem>>, %arg3: memref<256x128xbf16, #tpu.memory_space<vmem>>, %arg4: memref<1x128xf32, #tpu.memory_space<vmem>>, %arg5: memref<64x128xf32, #tpu.memory_space<vmem>>) attributes {dimension_semantics = [#tpu.dimension_semantics<parallel>, #tpu.dimension_semantics<parallel>], iteration_bounds = array<i64: 1, 1>, scalar_prefetch = 0 : i64, scratch_operands = 0 : i64, tpu.core_type = #tpu.core_type<tc>, window_params = [{transform_indices = @transform_0, window_bounds = array<i64: 64, 256>}, {transform_indices = @transform_1, window_bounds = array<i64: 256, 128>}, {transform_indices = @transform_2, window_bounds = array<i64: 1, 128>}, {transform_indices = @transform_3, window_bounds = array<i64: 64, 128>}]} {
    %c0 = arith.constant 0 : index
    %c0_0 = arith.constant 0 : index
    %0 = vector.load %arg2[%c0, %c0_0] : memref<64x256xbf16, #tpu.memory_space<vmem>>, vector<64x256xbf16>
    %c0_1 = arith.constant 0 : index
    %c0_2 = arith.constant 0 : index
    %1 = vector.load %arg3[%c0_1, %c0_2] : memref<256x128xbf16, #tpu.memory_space<vmem>>, vector<256x128xbf16>
    %cst = arith.constant dense<0.000000e+00> : vector<64x128xf32>
    %2 = tpu.matmul %0, %1, %cst {dimension_numbers = #tpu.dot_dimension_numbers<[1], [0], [0], [1], [0, 0, 1, 1], [], []>} : vector<64x256xbf16>, vector<256x128xbf16>, vector<64x128xf32> -> vector<64x128xf32>
    %c0_3 = arith.constant 0 : index
    %c0_4 = arith.constant 0 : index
    %3 = vector.load %arg4[%c0_3, %c0_4] : memref<1x128xf32, #tpu.memory_space<vmem>>, vector<1x128xf32>
    %4 = vector.broadcast %3 : vector<1x128xf32> to vector<64x128xf32>
    %5 = arith.addf %2, %4 : vector<64x128xf32>
    %c0_5 = arith.constant 0 : index
    %c0_6 = arith.constant 0 : index
    %6 = vector.load %arg5[%c0_5, %c0_6] : memref<64x128xf32, #tpu.memory_space<vmem>>, vector<64x128xf32>
    tpu.vector_store %arg5[%c0_5, %c0_6], %5 {strides = array<i32>} : memref<64x128xf32, #tpu.memory_space<vmem>>, vector<64x128xf32>,
    return
  }
  func.func @transform_0(%arg0: i32, %arg1: i32) -> (i32, i32) {
    %c0_i32 = arith.constant 0 : i32
    %c0_i32_0 = arith.constant 0 : i32
    return %arg1, %c0_i32 : i32, i32
  }
  func.func @transform_1(%arg0: i32, %arg1: i32) -> (i32, i32) {
    %c0_i32 = arith.constant 0 : i32
    %c0_i32_0 = arith.constant 0 : i32
    return %c0_i32, %arg0 : i32, i32
  }
  func.func @transform_2(%arg0: i32, %arg1: i32) -> (i32, i32) {
    %c0_i32 = arith.constant 0 : i32
    %c0_i32_0 = arith.constant 0 : i32
    return %c0_i32, %arg0 : i32, i32
  }
  func.func @transform_3(%arg0: i32, %arg1: i32) -> (i32, i32) {
    %c0_i32 = arith.constant 0 : i32
    return %arg1, %arg0 : i32, i32
  }
}

module attributes {stable_mosaic.version = 11 : i64} {
  func.func @gru_recurrence_kernel(%arg0: i32, %arg1: i32, %arg2: memref<8x8x384xbf16, #tpu.memory_space<vmem>>, %arg3: memref<1x8x128xf32, #tpu.memory_space<vmem>>, %arg4: memref<1x128x384xbf16, #tpu.memory_space<vmem>>, %arg5: memref<1x1x384xf32, #tpu.memory_space<vmem>>, %arg6: memref<8x8x128xbf16, #tpu.memory_space<vmem>>, %arg7: memref<1x8x128xf32, #tpu.memory_space<vmem>>, %arg8: memref<8x128xf32, #tpu.memory_space<vmem>>) attributes {dimension_semantics = [#tpu.dimension_semantics<parallel>, #tpu.dimension_semantics<arbitrary>], iteration_bounds = array<i64: 2, 1>, scalar_prefetch = 0 : i64, scratch_operands = 1 : i64, tpu.core_type = #tpu.core_type<tc>, window_params = [{transform_indices = @transform_0, window_bounds = array<i64: 8, 8, 384>}, {transform_indices = @transform_1, window_bounds = array<i64: 1, 8, 128>}, {transform_indices = @transform_2, window_bounds = array<i64: 1, 128, 384>}, {transform_indices = @transform_3, window_bounds = array<i64: 1, 1, 384>}, {transform_indices = @transform_4, window_bounds = array<i64: 8, 8, 128>}, {transform_indices = @transform_5, window_bounds = array<i64: 1, 8, 128>}]} {
    %c1_i32 = arith.constant 1 : i32
    %0 = arith.cmpi eq, %arg0, %c1_i32 : i32
    %c0_i32 = arith.constant 0 : i32
    %1 = arith.cmpi eq, %arg1, %c0_i32 : i32
    %2 = arith.extui %1 : i1 to i32
    %c0_i32_0 = arith.constant 0 : i32
    %3 = arith.cmpi ne, %2, %c0_i32_0 : i32
    scf.if %3 {
      %c0_119 = arith.constant 0 : index
      %c0_120 = arith.constant 0 : index
      %c0_121 = arith.constant 0 : index
      %369 = vector.load %arg3[%c0_119, %c0_120, %c0_121] : memref<1x8x128xf32, #tpu.memory_space<vmem>>, vector<1x8x128xf32>
      %370 = vector.shape_cast %369 : vector<1x8x128xf32> to vector<8x128xf32>
      %c0_122 = arith.constant 0 : index
      %c0_123 = arith.constant 0 : index
      %371 = vector.load %arg8[%c0_122, %c0_123] : memref<8x128xf32, #tpu.memory_space<vmem>>, vector<8x128xf32>
      tpu.vector_store %arg8[%c0_122, %c0_123], %370 {strides = array<i32>} : memref<8x128xf32, #tpu.memory_space<vmem>>, vector<8x128xf32>,
    } else {
    }
    %c0 = arith.constant 0 : index
    %c0_1 = arith.constant 0 : index
    %4 = vector.load %arg8[%c0, %c0_1] : memref<8x128xf32, #tpu.memory_space<vmem>>, vector<8x128xf32>
    %c0_i32_2 = arith.constant 0 : i32
    %c7_i32 = arith.constant 7 : i32
    %5 = arith.subi %c7_i32, %c0_i32_2 : i32
    %6 = arith.select %0, %5, %c0_i32_2 : i32
    %7 = arith.index_cast %6 : i32 to index
    %c0_3 = arith.constant 0 : index
    %c0_4 = arith.constant 0 : index
    %8 = vector.load %arg2[%7, %c0_3, %c0_4] : memref<8x8x384xbf16, #tpu.memory_space<vmem>>, vector<1x8x384xbf16>
    %9 = vector.shape_cast %8 : vector<1x8x384xbf16> to vector<8x384xbf16>
    %10 = arith.truncf %4 : vector<8x128xf32> to vector<8x128xbf16>
    %c0_5 = arith.constant 0 : index
    %c0_6 = arith.constant 0 : index
    %c0_7 = arith.constant 0 : index
    %11 = vector.load %arg4[%c0_5, %c0_6, %c0_7] : memref<1x128x384xbf16, #tpu.memory_space<vmem>>, vector<1x128x384xbf16>
    %12 = vector.shape_cast %11 : vector<1x128x384xbf16> to vector<128x384xbf16>
    %cst = arith.constant dense<0.000000e+00> : vector<8x384xf32>
    %13 = tpu.matmul %10, %12, %cst {dimension_numbers = #tpu.dot_dimension_numbers<[1], [0], [0], [1], [0, 0, 1, 1], [], []>} : vector<8x128xbf16>, vector<128x384xbf16>, vector<8x384xf32> -> vector<8x384xf32>
    %c0_8 = arith.constant 0 : index
    %c0_9 = arith.constant 0 : index
    %c0_10 = arith.constant 0 : index
    %14 = vector.load %arg5[%c0_8, %c0_9, %c0_10] : memref<1x1x384xf32, #tpu.memory_space<vmem>>, vector<1x1x384xf32>
    %15 = vector.shape_cast %14 : vector<1x1x384xf32> to vector<1x384xf32>
    %16 = vector.broadcast %15 : vector<1x384xf32> to vector<8x384xf32>
    %17 = arith.addf %13, %16 : vector<8x384xf32>
    %18 = vector.extract_strided_slice %9 {offsets = [0, 0], sizes = [8, 128], strides = [1, 1]} : vector<8x384xbf16> to vector<8x128xbf16>
    %19 = vector.extract_strided_slice %17 {offsets = [0, 0], sizes = [8, 128], strides = [1, 1]} : vector<8x384xf32> to vector<8x128xf32>
    %20 = arith.extf %18 : vector<8x128xbf16> to vector<8x128xf32>
    %21 = arith.addf %20, %19 : vector<8x128xf32>
    %22 = arith.negf %21 : vector<8x128xf32>
    %23 = math.exp %22 : vector<8x128xf32>
    %cst_11 = arith.constant 1.000000e+00 : f32
    %24 = vector.broadcast %cst_11 : f32 to vector<8x128xf32>
    %25 = arith.addf %24, %23 : vector<8x128xf32>
    %26 = arith.divf %24, %25 : vector<8x128xf32>
    %27 = vector.extract_strided_slice %9 {offsets = [0, 128], sizes = [8, 128], strides = [1, 1]} : vector<8x384xbf16> to vector<8x128xbf16>
    %28 = vector.extract_strided_slice %17 {offsets = [0, 128], sizes = [8, 128], strides = [1, 1]} : vector<8x384xf32> to vector<8x128xf32>
    %29 = arith.extf %27 : vector<8x128xbf16> to vector<8x128xf32>
    %30 = arith.addf %29, %28 : vector<8x128xf32>
    %31 = arith.negf %30 : vector<8x128xf32>
    %32 = math.exp %31 : vector<8x128xf32>
    %cst_12 = arith.constant 1.000000e+00 : f32
    %33 = vector.broadcast %cst_12 : f32 to vector<8x128xf32>
    %34 = arith.addf %33, %32 : vector<8x128xf32>
    %35 = arith.divf %33, %34 : vector<8x128xf32>
    %36 = vector.extract_strided_slice %9 {offsets = [0, 256], sizes = [8, 128], strides = [1, 1]} : vector<8x384xbf16> to vector<8x128xbf16>
    %37 = vector.extract_strided_slice %17 {offsets = [0, 256], sizes = [8, 128], strides = [1, 1]} : vector<8x384xf32> to vector<8x128xf32>
    %38 = arith.mulf %26, %37 : vector<8x128xf32>
    %39 = arith.extf %36 : vector<8x128xbf16> to vector<8x128xf32>
    %40 = arith.addf %39, %38 : vector<8x128xf32>
    %41 = math.tanh %40 : vector<8x128xf32>
    %42 = arith.subf %4, %41 : vector<8x128xf32>
    %43 = arith.mulf %35, %42 : vector<8x128xf32>
    %44 = arith.addf %41, %43 : vector<8x128xf32>
    %45 = arith.truncf %44 : vector<8x128xf32> to vector<8x128xbf16>
    %46 = arith.index_cast %6 : i32 to index
    %c0_13 = arith.constant 0 : index
    %c0_14 = arith.constant 0 : index
    %47 = vector.load %arg6[%46, %c0_13, %c0_14] : memref<8x8x128xbf16, #tpu.memory_space<vmem>>, vector<1x8x128xbf16>
    %48 = vector.shape_cast %47 : vector<1x8x128xbf16> to vector<8x128xbf16>
    %49 = vector.shape_cast %45 : vector<8x128xbf16> to vector<1x8x128xbf16>
    tpu.vector_store %arg6[%46, %c0_13, %c0_14], %49 {strides = array<i32>} : memref<8x8x128xbf16, #tpu.memory_space<vmem>>, vector<1x8x128xbf16>,
    %c1_i32_15 = arith.constant 1 : i32
    %c7_i32_16 = arith.constant 7 : i32
    %50 = arith.subi %c7_i32_16, %c1_i32_15 : i32
    %51 = arith.select %0, %50, %c1_i32_15 : i32
    %52 = arith.index_cast %51 : i32 to index
    %c0_17 = arith.constant 0 : index
    %c0_18 = arith.constant 0 : index
    %53 = vector.load %arg2[%52, %c0_17, %c0_18] : memref<8x8x384xbf16, #tpu.memory_space<vmem>>, vector<1x8x384xbf16>
    %54 = vector.shape_cast %53 : vector<1x8x384xbf16> to vector<8x384xbf16>
    %55 = arith.truncf %44 : vector<8x128xf32> to vector<8x128xbf16>
    %c0_19 = arith.constant 0 : index
    %c0_20 = arith.constant 0 : index
    %c0_21 = arith.constant 0 : index
    %56 = vector.load %arg4[%c0_19, %c0_20, %c0_21] : memref<1x128x384xbf16, #tpu.memory_space<vmem>>, vector<1x128x384xbf16>
    %57 = vector.shape_cast %56 : vector<1x128x384xbf16> to vector<128x384xbf16>
    %cst_22 = arith.constant dense<0.000000e+00> : vector<8x384xf32>
    %58 = tpu.matmul %55, %57, %cst_22 {dimension_numbers = #tpu.dot_dimension_numbers<[1], [0], [0], [1], [0, 0, 1, 1], [], []>} : vector<8x128xbf16>, vector<128x384xbf16>, vector<8x384xf32> -> vector<8x384xf32>
    %c0_23 = arith.constant 0 : index
    %c0_24 = arith.constant 0 : index
    %c0_25 = arith.constant 0 : index
    %59 = vector.load %arg5[%c0_23, %c0_24, %c0_25] : memref<1x1x384xf32, #tpu.memory_space<vmem>>, vector<1x1x384xf32>
    %60 = vector.shape_cast %59 : vector<1x1x384xf32> to vector<1x384xf32>
    %61 = vector.broadcast %60 : vector<1x384xf32> to vector<8x384xf32>
    %62 = arith.addf %58, %61 : vector<8x384xf32>
    %63 = vector.extract_strided_slice %54 {offsets = [0, 0], sizes = [8, 128], strides = [1, 1]} : vector<8x384xbf16> to vector<8x128xbf16>
    %64 = vector.extract_strided_slice %62 {offsets = [0, 0], sizes = [8, 128], strides = [1, 1]} : vector<8x384xf32> to vector<8x128xf32>
    %65 = arith.extf %63 : vector<8x128xbf16> to vector<8x128xf32>
    %66 = arith.addf %65, %64 : vector<8x128xf32>
    %67 = arith.negf %66 : vector<8x128xf32>
    %68 = math.exp %67 : vector<8x128xf32>
    %cst_26 = arith.constant 1.000000e+00 : f32
    %69 = vector.broadcast %cst_26 : f32 to vector<8x128xf32>
    %70 = arith.addf %69, %68 : vector<8x128xf32>
    %71 = arith.divf %69, %70 : vector<8x128xf32>
    %72 = vector.extract_strided_slice %54 {offsets = [0, 128], sizes = [8, 128], strides = [1, 1]} : vector<8x384xbf16> to vector<8x128xbf16>
    %73 = vector.extract_strided_slice %62 {offsets = [0, 128], sizes = [8, 128], strides = [1, 1]} : vector<8x384xf32> to vector<8x128xf32>
    %74 = arith.extf %72 : vector<8x128xbf16> to vector<8x128xf32>
    %75 = arith.addf %74, %73 : vector<8x128xf32>
    %76 = arith.negf %75 : vector<8x128xf32>
    %77 = math.exp %76 : vector<8x128xf32>
    %cst_27 = arith.constant 1.000000e+00 : f32
    %78 = vector.broadcast %cst_27 : f32 to vector<8x128xf32>
    %79 = arith.addf %78, %77 : vector<8x128xf32>
    %80 = arith.divf %78, %79 : vector<8x128xf32>
    %81 = vector.extract_strided_slice %54 {offsets = [0, 256], sizes = [8, 128], strides = [1, 1]} : vector<8x384xbf16> to vector<8x128xbf16>
    %82 = vector.extract_strided_slice %62 {offsets = [0, 256], sizes = [8, 128], strides = [1, 1]} : vector<8x384xf32> to vector<8x128xf32>
    %83 = arith.mulf %71, %82 : vector<8x128xf32>
    %84 = arith.extf %81 : vector<8x128xbf16> to vector<8x128xf32>
    %85 = arith.addf %84, %83 : vector<8x128xf32>
    %86 = math.tanh %85 : vector<8x128xf32>
    %87 = arith.subf %44, %86 : vector<8x128xf32>
    %88 = arith.mulf %80, %87 : vector<8x128xf32>
    %89 = arith.addf %86, %88 : vector<8x128xf32>
    %90 = arith.truncf %89 : vector<8x128xf32> to vector<8x128xbf16>
    %91 = arith.index_cast %51 : i32 to index
    %c0_28 = arith.constant 0 : index
    %c0_29 = arith.constant 0 : index
    %92 = vector.load %arg6[%91, %c0_28, %c0_29] : memref<8x8x128xbf16, #tpu.memory_space<vmem>>, vector<1x8x128xbf16>
    %93 = vector.shape_cast %92 : vector<1x8x128xbf16> to vector<8x128xbf16>
    %94 = vector.shape_cast %90 : vector<8x128xbf16> to vector<1x8x128xbf16>
    tpu.vector_store %arg6[%91, %c0_28, %c0_29], %94 {strides = array<i32>} : memref<8x8x128xbf16, #tpu.memory_space<vmem>>, vector<1x8x128xbf16>,
    %c2_i32 = arith.constant 2 : i32
    %c7_i32_30 = arith.constant 7 : i32
    %95 = arith.subi %c7_i32_30, %c2_i32 : i32
    %96 = arith.select %0, %95, %c2_i32 : i32
    %97 = arith.index_cast %96 : i32 to index
    %c0_31 = arith.constant 0 : index
    %c0_32 = arith.constant 0 : index
    %98 = vector.load %arg2[%97, %c0_31, %c0_32] : memref<8x8x384xbf16, #tpu.memory_space<vmem>>, vector<1x8x384xbf16>
    %99 = vector.shape_cast %98 : vector<1x8x384xbf16> to vector<8x384xbf16>
    %100 = arith.truncf %89 : vector<8x128xf32> to vector<8x128xbf16>
    %c0_33 = arith.constant 0 : index
    %c0_34 = arith.constant 0 : index
    %c0_35 = arith.constant 0 : index
    %101 = vector.load %arg4[%c0_33, %c0_34, %c0_35] : memref<1x128x384xbf16, #tpu.memory_space<vmem>>, vector<1x128x384xbf16>
    %102 = vector.shape_cast %101 : vector<1x128x384xbf16> to vector<128x384xbf16>
    %cst_36 = arith.constant dense<0.000000e+00> : vector<8x384xf32>
    %103 = tpu.matmul %100, %102, %cst_36 {dimension_numbers = #tpu.dot_dimension_numbers<[1], [0], [0], [1], [0, 0, 1, 1], [], []>} : vector<8x128xbf16>, vector<128x384xbf16>, vector<8x384xf32> -> vector<8x384xf32>
    %c0_37 = arith.constant 0 : index
    %c0_38 = arith.constant 0 : index
    %c0_39 = arith.constant 0 : index
    %104 = vector.load %arg5[%c0_37, %c0_38, %c0_39] : memref<1x1x384xf32, #tpu.memory_space<vmem>>, vector<1x1x384xf32>
    %105 = vector.shape_cast %104 : vector<1x1x384xf32> to vector<1x384xf32>
    %106 = vector.broadcast %105 : vector<1x384xf32> to vector<8x384xf32>
    %107 = arith.addf %103, %106 : vector<8x384xf32>
    %108 = vector.extract_strided_slice %99 {offsets = [0, 0], sizes = [8, 128], strides = [1, 1]} : vector<8x384xbf16> to vector<8x128xbf16>
    %109 = vector.extract_strided_slice %107 {offsets = [0, 0], sizes = [8, 128], strides = [1, 1]} : vector<8x384xf32> to vector<8x128xf32>
    %110 = arith.extf %108 : vector<8x128xbf16> to vector<8x128xf32>
    %111 = arith.addf %110, %109 : vector<8x128xf32>
    %112 = arith.negf %111 : vector<8x128xf32>
    %113 = math.exp %112 : vector<8x128xf32>
    %cst_40 = arith.constant 1.000000e+00 : f32
    %114 = vector.broadcast %cst_40 : f32 to vector<8x128xf32>
    %115 = arith.addf %114, %113 : vector<8x128xf32>
    %116 = arith.divf %114, %115 : vector<8x128xf32>
    %117 = vector.extract_strided_slice %99 {offsets = [0, 128], sizes = [8, 128], strides = [1, 1]} : vector<8x384xbf16> to vector<8x128xbf16>
    %118 = vector.extract_strided_slice %107 {offsets = [0, 128], sizes = [8, 128], strides = [1, 1]} : vector<8x384xf32> to vector<8x128xf32>
    %119 = arith.extf %117 : vector<8x128xbf16> to vector<8x128xf32>
    %120 = arith.addf %119, %118 : vector<8x128xf32>
    %121 = arith.negf %120 : vector<8x128xf32>
    %122 = math.exp %121 : vector<8x128xf32>
    %cst_41 = arith.constant 1.000000e+00 : f32
    %123 = vector.broadcast %cst_41 : f32 to vector<8x128xf32>
    %124 = arith.addf %123, %122 : vector<8x128xf32>
    %125 = arith.divf %123, %124 : vector<8x128xf32>
    %126 = vector.extract_strided_slice %99 {offsets = [0, 256], sizes = [8, 128], strides = [1, 1]} : vector<8x384xbf16> to vector<8x128xbf16>
    %127 = vector.extract_strided_slice %107 {offsets = [0, 256], sizes = [8, 128], strides = [1, 1]} : vector<8x384xf32> to vector<8x128xf32>
    %128 = arith.mulf %116, %127 : vector<8x128xf32>
    %129 = arith.extf %126 : vector<8x128xbf16> to vector<8x128xf32>
    %130 = arith.addf %129, %128 : vector<8x128xf32>
    %131 = math.tanh %130 : vector<8x128xf32>
    %132 = arith.subf %89, %131 : vector<8x128xf32>
    %133 = arith.mulf %125, %132 : vector<8x128xf32>
    %134 = arith.addf %131, %133 : vector<8x128xf32>
    %135 = arith.truncf %134 : vector<8x128xf32> to vector<8x128xbf16>
    %136 = arith.index_cast %96 : i32 to index
    %c0_42 = arith.constant 0 : index
    %c0_43 = arith.constant 0 : index
    %137 = vector.load %arg6[%136, %c0_42, %c0_43] : memref<8x8x128xbf16, #tpu.memory_space<vmem>>, vector<1x8x128xbf16>
    %138 = vector.shape_cast %137 : vector<1x8x128xbf16> to vector<8x128xbf16>
    %139 = vector.shape_cast %135 : vector<8x128xbf16> to vector<1x8x128xbf16>
    tpu.vector_store %arg6[%136, %c0_42, %c0_43], %139 {strides = array<i32>} : memref<8x8x128xbf16, #tpu.memory_space<vmem>>, vector<1x8x128xbf16>,
    %c3_i32 = arith.constant 3 : i32
    %c7_i32_44 = arith.constant 7 : i32
    %140 = arith.subi %c7_i32_44, %c3_i32 : i32
    %141 = arith.select %0, %140, %c3_i32 : i32
    %142 = arith.index_cast %141 : i32 to index
    %c0_45 = arith.constant 0 : index
    %c0_46 = arith.constant 0 : index
    %143 = vector.load %arg2[%142, %c0_45, %c0_46] : memref<8x8x384xbf16, #tpu.memory_space<vmem>>, vector<1x8x384xbf16>
    %144 = vector.shape_cast %143 : vector<1x8x384xbf16> to vector<8x384xbf16>
    %145 = arith.truncf %134 : vector<8x128xf32> to vector<8x128xbf16>
    %c0_47 = arith.constant 0 : index
    %c0_48 = arith.constant 0 : index
    %c0_49 = arith.constant 0 : index
    %146 = vector.load %arg4[%c0_47, %c0_48, %c0_49] : memref<1x128x384xbf16, #tpu.memory_space<vmem>>, vector<1x128x384xbf16>
    %147 = vector.shape_cast %146 : vector<1x128x384xbf16> to vector<128x384xbf16>
    %cst_50 = arith.constant dense<0.000000e+00> : vector<8x384xf32>
    %148 = tpu.matmul %145, %147, %cst_50 {dimension_numbers = #tpu.dot_dimension_numbers<[1], [0], [0], [1], [0, 0, 1, 1], [], []>} : vector<8x128xbf16>, vector<128x384xbf16>, vector<8x384xf32> -> vector<8x384xf32>
    %c0_51 = arith.constant 0 : index
    %c0_52 = arith.constant 0 : index
    %c0_53 = arith.constant 0 : index
    %149 = vector.load %arg5[%c0_51, %c0_52, %c0_53] : memref<1x1x384xf32, #tpu.memory_space<vmem>>, vector<1x1x384xf32>
    %150 = vector.shape_cast %149 : vector<1x1x384xf32> to vector<1x384xf32>
    %151 = vector.broadcast %150 : vector<1x384xf32> to vector<8x384xf32>
    %152 = arith.addf %148, %151 : vector<8x384xf32>
    %153 = vector.extract_strided_slice %144 {offsets = [0, 0], sizes = [8, 128], strides = [1, 1]} : vector<8x384xbf16> to vector<8x128xbf16>
    %154 = vector.extract_strided_slice %152 {offsets = [0, 0], sizes = [8, 128], strides = [1, 1]} : vector<8x384xf32> to vector<8x128xf32>
    %155 = arith.extf %153 : vector<8x128xbf16> to vector<8x128xf32>
    %156 = arith.addf %155, %154 : vector<8x128xf32>
    %157 = arith.negf %156 : vector<8x128xf32>
    %158 = math.exp %157 : vector<8x128xf32>
    %cst_54 = arith.constant 1.000000e+00 : f32
    %159 = vector.broadcast %cst_54 : f32 to vector<8x128xf32>
    %160 = arith.addf %159, %158 : vector<8x128xf32>
    %161 = arith.divf %159, %160 : vector<8x128xf32>
    %162 = vector.extract_strided_slice %144 {offsets = [0, 128], sizes = [8, 128], strides = [1, 1]} : vector<8x384xbf16> to vector<8x128xbf16>
    %163 = vector.extract_strided_slice %152 {offsets = [0, 128], sizes = [8, 128], strides = [1, 1]} : vector<8x384xf32> to vector<8x128xf32>
    %164 = arith.extf %162 : vector<8x128xbf16> to vector<8x128xf32>
    %165 = arith.addf %164, %163 : vector<8x128xf32>
    %166 = arith.negf %165 : vector<8x128xf32>
    %167 = math.exp %166 : vector<8x128xf32>
    %cst_55 = arith.constant 1.000000e+00 : f32
    %168 = vector.broadcast %cst_55 : f32 to vector<8x128xf32>
    %169 = arith.addf %168, %167 : vector<8x128xf32>
    %170 = arith.divf %168, %169 : vector<8x128xf32>
    %171 = vector.extract_strided_slice %144 {offsets = [0, 256], sizes = [8, 128], strides = [1, 1]} : vector<8x384xbf16> to vector<8x128xbf16>
    %172 = vector.extract_strided_slice %152 {offsets = [0, 256], sizes = [8, 128], strides = [1, 1]} : vector<8x384xf32> to vector<8x128xf32>
    %173 = arith.mulf %161, %172 : vector<8x128xf32>
    %174 = arith.extf %171 : vector<8x128xbf16> to vector<8x128xf32>
    %175 = arith.addf %174, %173 : vector<8x128xf32>
    %176 = math.tanh %175 : vector<8x128xf32>
    %177 = arith.subf %134, %176 : vector<8x128xf32>
    %178 = arith.mulf %170, %177 : vector<8x128xf32>
    %179 = arith.addf %176, %178 : vector<8x128xf32>
    %180 = arith.truncf %179 : vector<8x128xf32> to vector<8x128xbf16>
    %181 = arith.index_cast %141 : i32 to index
    %c0_56 = arith.constant 0 : index
    %c0_57 = arith.constant 0 : index
    %182 = vector.load %arg6[%181, %c0_56, %c0_57] : memref<8x8x128xbf16, #tpu.memory_space<vmem>>, vector<1x8x128xbf16>
    %183 = vector.shape_cast %182 : vector<1x8x128xbf16> to vector<8x128xbf16>
    %184 = vector.shape_cast %180 : vector<8x128xbf16> to vector<1x8x128xbf16>
    tpu.vector_store %arg6[%181, %c0_56, %c0_57], %184 {strides = array<i32>} : memref<8x8x128xbf16, #tpu.memory_space<vmem>>, vector<1x8x128xbf16>,
    %c4_i32 = arith.constant 4 : i32
    %c7_i32_58 = arith.constant 7 : i32
    %185 = arith.subi %c7_i32_58, %c4_i32 : i32
    %186 = arith.select %0, %185, %c4_i32 : i32
    %187 = arith.index_cast %186 : i32 to index
    %c0_59 = arith.constant 0 : index
    %c0_60 = arith.constant 0 : index
    %188 = vector.load %arg2[%187, %c0_59, %c0_60] : memref<8x8x384xbf16, #tpu.memory_space<vmem>>, vector<1x8x384xbf16>
    %189 = vector.shape_cast %188 : vector<1x8x384xbf16> to vector<8x384xbf16>
    %190 = arith.truncf %179 : vector<8x128xf32> to vector<8x128xbf16>
    %c0_61 = arith.constant 0 : index
    %c0_62 = arith.constant 0 : index
    %c0_63 = arith.constant 0 : index
    %191 = vector.load %arg4[%c0_61, %c0_62, %c0_63] : memref<1x128x384xbf16, #tpu.memory_space<vmem>>, vector<1x128x384xbf16>
    %192 = vector.shape_cast %191 : vector<1x128x384xbf16> to vector<128x384xbf16>
    %cst_64 = arith.constant dense<0.000000e+00> : vector<8x384xf32>
    %193 = tpu.matmul %190, %192, %cst_64 {dimension_numbers = #tpu.dot_dimension_numbers<[1], [0], [0], [1], [0, 0, 1, 1], [], []>} : vector<8x128xbf16>, vector<128x384xbf16>, vector<8x384xf32> -> vector<8x384xf32>
    %c0_65 = arith.constant 0 : index
    %c0_66 = arith.constant 0 : index
    %c0_67 = arith.constant 0 : index
    %194 = vector.load %arg5[%c0_65, %c0_66, %c0_67] : memref<1x1x384xf32, #tpu.memory_space<vmem>>, vector<1x1x384xf32>
    %195 = vector.shape_cast %194 : vector<1x1x384xf32> to vector<1x384xf32>
    %196 = vector.broadcast %195 : vector<1x384xf32> to vector<8x384xf32>
    %197 = arith.addf %193, %196 : vector<8x384xf32>
    %198 = vector.extract_strided_slice %189 {offsets = [0, 0], sizes = [8, 128], strides = [1, 1]} : vector<8x384xbf16> to vector<8x128xbf16>
    %199 = vector.extract_strided_slice %197 {offsets = [0, 0], sizes = [8, 128], strides = [1, 1]} : vector<8x384xf32> to vector<8x128xf32>
    %200 = arith.extf %198 : vector<8x128xbf16> to vector<8x128xf32>
    %201 = arith.addf %200, %199 : vector<8x128xf32>
    %202 = arith.negf %201 : vector<8x128xf32>
    %203 = math.exp %202 : vector<8x128xf32>
    %cst_68 = arith.constant 1.000000e+00 : f32
    %204 = vector.broadcast %cst_68 : f32 to vector<8x128xf32>
    %205 = arith.addf %204, %203 : vector<8x128xf32>
    %206 = arith.divf %204, %205 : vector<8x128xf32>
    %207 = vector.extract_strided_slice %189 {offsets = [0, 128], sizes = [8, 128], strides = [1, 1]} : vector<8x384xbf16> to vector<8x128xbf16>
    %208 = vector.extract_strided_slice %197 {offsets = [0, 128], sizes = [8, 128], strides = [1, 1]} : vector<8x384xf32> to vector<8x128xf32>
    %209 = arith.extf %207 : vector<8x128xbf16> to vector<8x128xf32>
    %210 = arith.addf %209, %208 : vector<8x128xf32>
    %211 = arith.negf %210 : vector<8x128xf32>
    %212 = math.exp %211 : vector<8x128xf32>
    %cst_69 = arith.constant 1.000000e+00 : f32
    %213 = vector.broadcast %cst_69 : f32 to vector<8x128xf32>
    %214 = arith.addf %213, %212 : vector<8x128xf32>
    %215 = arith.divf %213, %214 : vector<8x128xf32>
    %216 = vector.extract_strided_slice %189 {offsets = [0, 256], sizes = [8, 128], strides = [1, 1]} : vector<8x384xbf16> to vector<8x128xbf16>
    %217 = vector.extract_strided_slice %197 {offsets = [0, 256], sizes = [8, 128], strides = [1, 1]} : vector<8x384xf32> to vector<8x128xf32>
    %218 = arith.mulf %206, %217 : vector<8x128xf32>
    %219 = arith.extf %216 : vector<8x128xbf16> to vector<8x128xf32>
    %220 = arith.addf %219, %218 : vector<8x128xf32>
    %221 = math.tanh %220 : vector<8x128xf32>
    %222 = arith.subf %179, %221 : vector<8x128xf32>
    %223 = arith.mulf %215, %222 : vector<8x128xf32>
    %224 = arith.addf %221, %223 : vector<8x128xf32>
    %225 = arith.truncf %224 : vector<8x128xf32> to vector<8x128xbf16>
    %226 = arith.index_cast %186 : i32 to index
    %c0_70 = arith.constant 0 : index
    %c0_71 = arith.constant 0 : index
    %227 = vector.load %arg6[%226, %c0_70, %c0_71] : memref<8x8x128xbf16, #tpu.memory_space<vmem>>, vector<1x8x128xbf16>
    %228 = vector.shape_cast %227 : vector<1x8x128xbf16> to vector<8x128xbf16>
    %229 = vector.shape_cast %225 : vector<8x128xbf16> to vector<1x8x128xbf16>
    tpu.vector_store %arg6[%226, %c0_70, %c0_71], %229 {strides = array<i32>} : memref<8x8x128xbf16, #tpu.memory_space<vmem>>, vector<1x8x128xbf16>,
    %c5_i32 = arith.constant 5 : i32
    %c7_i32_72 = arith.constant 7 : i32
    %230 = arith.subi %c7_i32_72, %c5_i32 : i32
    %231 = arith.select %0, %230, %c5_i32 : i32
    %232 = arith.index_cast %231 : i32 to index
    %c0_73 = arith.constant 0 : index
    %c0_74 = arith.constant 0 : index
    %233 = vector.load %arg2[%232, %c0_73, %c0_74] : memref<8x8x384xbf16, #tpu.memory_space<vmem>>, vector<1x8x384xbf16>
    %234 = vector.shape_cast %233 : vector<1x8x384xbf16> to vector<8x384xbf16>
    %235 = arith.truncf %224 : vector<8x128xf32> to vector<8x128xbf16>
    %c0_75 = arith.constant 0 : index
    %c0_76 = arith.constant 0 : index
    %c0_77 = arith.constant 0 : index
    %236 = vector.load %arg4[%c0_75, %c0_76, %c0_77] : memref<1x128x384xbf16, #tpu.memory_space<vmem>>, vector<1x128x384xbf16>
    %237 = vector.shape_cast %236 : vector<1x128x384xbf16> to vector<128x384xbf16>
    %cst_78 = arith.constant dense<0.000000e+00> : vector<8x384xf32>
    %238 = tpu.matmul %235, %237, %cst_78 {dimension_numbers = #tpu.dot_dimension_numbers<[1], [0], [0], [1], [0, 0, 1, 1], [], []>} : vector<8x128xbf16>, vector<128x384xbf16>, vector<8x384xf32> -> vector<8x384xf32>
    %c0_79 = arith.constant 0 : index
    %c0_80 = arith.constant 0 : index
    %c0_81 = arith.constant 0 : index
    %239 = vector.load %arg5[%c0_79, %c0_80, %c0_81] : memref<1x1x384xf32, #tpu.memory_space<vmem>>, vector<1x1x384xf32>
    %240 = vector.shape_cast %239 : vector<1x1x384xf32> to vector<1x384xf32>
    %241 = vector.broadcast %240 : vector<1x384xf32> to vector<8x384xf32>
    %242 = arith.addf %238, %241 : vector<8x384xf32>
    %243 = vector.extract_strided_slice %234 {offsets = [0, 0], sizes = [8, 128], strides = [1, 1]} : vector<8x384xbf16> to vector<8x128xbf16>
    %244 = vector.extract_strided_slice %242 {offsets = [0, 0], sizes = [8, 128], strides = [1, 1]} : vector<8x384xf32> to vector<8x128xf32>
    %245 = arith.extf %243 : vector<8x128xbf16> to vector<8x128xf32>
    %246 = arith.addf %245, %244 : vector<8x128xf32>
    %247 = arith.negf %246 : vector<8x128xf32>
    %248 = math.exp %247 : vector<8x128xf32>
    %cst_82 = arith.constant 1.000000e+00 : f32
    %249 = vector.broadcast %cst_82 : f32 to vector<8x128xf32>
    %250 = arith.addf %249, %248 : vector<8x128xf32>
    %251 = arith.divf %249, %250 : vector<8x128xf32>
    %252 = vector.extract_strided_slice %234 {offsets = [0, 128], sizes = [8, 128], strides = [1, 1]} : vector<8x384xbf16> to vector<8x128xbf16>
    %253 = vector.extract_strided_slice %242 {offsets = [0, 128], sizes = [8, 128], strides = [1, 1]} : vector<8x384xf32> to vector<8x128xf32>
    %254 = arith.extf %252 : vector<8x128xbf16> to vector<8x128xf32>
    %255 = arith.addf %254, %253 : vector<8x128xf32>
    %256 = arith.negf %255 : vector<8x128xf32>
    %257 = math.exp %256 : vector<8x128xf32>
    %cst_83 = arith.constant 1.000000e+00 : f32
    %258 = vector.broadcast %cst_83 : f32 to vector<8x128xf32>
    %259 = arith.addf %258, %257 : vector<8x128xf32>
    %260 = arith.divf %258, %259 : vector<8x128xf32>
    %261 = vector.extract_strided_slice %234 {offsets = [0, 256], sizes = [8, 128], strides = [1, 1]} : vector<8x384xbf16> to vector<8x128xbf16>
    %262 = vector.extract_strided_slice %242 {offsets = [0, 256], sizes = [8, 128], strides = [1, 1]} : vector<8x384xf32> to vector<8x128xf32>
    %263 = arith.mulf %251, %262 : vector<8x128xf32>
    %264 = arith.extf %261 : vector<8x128xbf16> to vector<8x128xf32>
    %265 = arith.addf %264, %263 : vector<8x128xf32>
    %266 = math.tanh %265 : vector<8x128xf32>
    %267 = arith.subf %224, %266 : vector<8x128xf32>
    %268 = arith.mulf %260, %267 : vector<8x128xf32>
    %269 = arith.addf %266, %268 : vector<8x128xf32>
    %270 = arith.truncf %269 : vector<8x128xf32> to vector<8x128xbf16>
    %271 = arith.index_cast %231 : i32 to index
    %c0_84 = arith.constant 0 : index
    %c0_85 = arith.constant 0 : index
    %272 = vector.load %arg6[%271, %c0_84, %c0_85] : memref<8x8x128xbf16, #tpu.memory_space<vmem>>, vector<1x8x128xbf16>
    %273 = vector.shape_cast %272 : vector<1x8x128xbf16> to vector<8x128xbf16>
    %274 = vector.shape_cast %270 : vector<8x128xbf16> to vector<1x8x128xbf16>
    tpu.vector_store %arg6[%271, %c0_84, %c0_85], %274 {strides = array<i32>} : memref<8x8x128xbf16, #tpu.memory_space<vmem>>, vector<1x8x128xbf16>,
    %c6_i32 = arith.constant 6 : i32
    %c7_i32_86 = arith.constant 7 : i32
    %275 = arith.subi %c7_i32_86, %c6_i32 : i32
    %276 = arith.select %0, %275, %c6_i32 : i32
    %277 = arith.index_cast %276 : i32 to index
    %c0_87 = arith.constant 0 : index
    %c0_88 = arith.constant 0 : index
    %278 = vector.load %arg2[%277, %c0_87, %c0_88] : memref<8x8x384xbf16, #tpu.memory_space<vmem>>, vector<1x8x384xbf16>
    %279 = vector.shape_cast %278 : vector<1x8x384xbf16> to vector<8x384xbf16>
    %280 = arith.truncf %269 : vector<8x128xf32> to vector<8x128xbf16>
    %c0_89 = arith.constant 0 : index
    %c0_90 = arith.constant 0 : index
    %c0_91 = arith.constant 0 : index
    %281 = vector.load %arg4[%c0_89, %c0_90, %c0_91] : memref<1x128x384xbf16, #tpu.memory_space<vmem>>, vector<1x128x384xbf16>
    %282 = vector.shape_cast %281 : vector<1x128x384xbf16> to vector<128x384xbf16>
    %cst_92 = arith.constant dense<0.000000e+00> : vector<8x384xf32>
    %283 = tpu.matmul %280, %282, %cst_92 {dimension_numbers = #tpu.dot_dimension_numbers<[1], [0], [0], [1], [0, 0, 1, 1], [], []>} : vector<8x128xbf16>, vector<128x384xbf16>, vector<8x384xf32> -> vector<8x384xf32>
    %c0_93 = arith.constant 0 : index
    %c0_94 = arith.constant 0 : index
    %c0_95 = arith.constant 0 : index
    %284 = vector.load %arg5[%c0_93, %c0_94, %c0_95] : memref<1x1x384xf32, #tpu.memory_space<vmem>>, vector<1x1x384xf32>
    %285 = vector.shape_cast %284 : vector<1x1x384xf32> to vector<1x384xf32>
    %286 = vector.broadcast %285 : vector<1x384xf32> to vector<8x384xf32>
    %287 = arith.addf %283, %286 : vector<8x384xf32>
    %288 = vector.extract_strided_slice %279 {offsets = [0, 0], sizes = [8, 128], strides = [1, 1]} : vector<8x384xbf16> to vector<8x128xbf16>
    %289 = vector.extract_strided_slice %287 {offsets = [0, 0], sizes = [8, 128], strides = [1, 1]} : vector<8x384xf32> to vector<8x128xf32>
    %290 = arith.extf %288 : vector<8x128xbf16> to vector<8x128xf32>
    %291 = arith.addf %290, %289 : vector<8x128xf32>
    %292 = arith.negf %291 : vector<8x128xf32>
    %293 = math.exp %292 : vector<8x128xf32>
    %cst_96 = arith.constant 1.000000e+00 : f32
    %294 = vector.broadcast %cst_96 : f32 to vector<8x128xf32>
    %295 = arith.addf %294, %293 : vector<8x128xf32>
    %296 = arith.divf %294, %295 : vector<8x128xf32>
    %297 = vector.extract_strided_slice %279 {offsets = [0, 128], sizes = [8, 128], strides = [1, 1]} : vector<8x384xbf16> to vector<8x128xbf16>
    %298 = vector.extract_strided_slice %287 {offsets = [0, 128], sizes = [8, 128], strides = [1, 1]} : vector<8x384xf32> to vector<8x128xf32>
    %299 = arith.extf %297 : vector<8x128xbf16> to vector<8x128xf32>
    %300 = arith.addf %299, %298 : vector<8x128xf32>
    %301 = arith.negf %300 : vector<8x128xf32>
    %302 = math.exp %301 : vector<8x128xf32>
    %cst_97 = arith.constant 1.000000e+00 : f32
    %303 = vector.broadcast %cst_97 : f32 to vector<8x128xf32>
    %304 = arith.addf %303, %302 : vector<8x128xf32>
    %305 = arith.divf %303, %304 : vector<8x128xf32>
    %306 = vector.extract_strided_slice %279 {offsets = [0, 256], sizes = [8, 128], strides = [1, 1]} : vector<8x384xbf16> to vector<8x128xbf16>
    %307 = vector.extract_strided_slice %287 {offsets = [0, 256], sizes = [8, 128], strides = [1, 1]} : vector<8x384xf32> to vector<8x128xf32>
    %308 = arith.mulf %296, %307 : vector<8x128xf32>
    %309 = arith.extf %306 : vector<8x128xbf16> to vector<8x128xf32>
    %310 = arith.addf %309, %308 : vector<8x128xf32>
    %311 = math.tanh %310 : vector<8x128xf32>
    %312 = arith.subf %269, %311 : vector<8x128xf32>
    %313 = arith.mulf %305, %312 : vector<8x128xf32>
    %314 = arith.addf %311, %313 : vector<8x128xf32>
    %315 = arith.truncf %314 : vector<8x128xf32> to vector<8x128xbf16>
    %316 = arith.index_cast %276 : i32 to index
    %c0_98 = arith.constant 0 : index
    %c0_99 = arith.constant 0 : index
    %317 = vector.load %arg6[%316, %c0_98, %c0_99] : memref<8x8x128xbf16, #tpu.memory_space<vmem>>, vector<1x8x128xbf16>
    %318 = vector.shape_cast %317 : vector<1x8x128xbf16> to vector<8x128xbf16>
    %319 = vector.shape_cast %315 : vector<8x128xbf16> to vector<1x8x128xbf16>
    tpu.vector_store %arg6[%316, %c0_98, %c0_99], %319 {strides = array<i32>} : memref<8x8x128xbf16, #tpu.memory_space<vmem>>, vector<1x8x128xbf16>,
    %c7_i32_100 = arith.constant 7 : i32
    %c7_i32_101 = arith.constant 7 : i32
    %320 = arith.subi %c7_i32_101, %c7_i32_100 : i32
    %321 = arith.select %0, %320, %c7_i32_100 : i32
    %322 = arith.index_cast %321 : i32 to index
    %c0_102 = arith.constant 0 : index
    %c0_103 = arith.constant 0 : index
    %323 = vector.load %arg2[%322, %c0_102, %c0_103] : memref<8x8x384xbf16, #tpu.memory_space<vmem>>, vector<1x8x384xbf16>
    %324 = vector.shape_cast %323 : vector<1x8x384xbf16> to vector<8x384xbf16>
    %325 = arith.truncf %314 : vector<8x128xf32> to vector<8x128xbf16>
    %c0_104 = arith.constant 0 : index
    %c0_105 = arith.constant 0 : index
    %c0_106 = arith.constant 0 : index
    %326 = vector.load %arg4[%c0_104, %c0_105, %c0_106] : memref<1x128x384xbf16, #tpu.memory_space<vmem>>, vector<1x128x384xbf16>
    %327 = vector.shape_cast %326 : vector<1x128x384xbf16> to vector<128x384xbf16>
    %cst_107 = arith.constant dense<0.000000e+00> : vector<8x384xf32>
    %328 = tpu.matmul %325, %327, %cst_107 {dimension_numbers = #tpu.dot_dimension_numbers<[1], [0], [0], [1], [0, 0, 1, 1], [], []>} : vector<8x128xbf16>, vector<128x384xbf16>, vector<8x384xf32> -> vector<8x384xf32>
    %c0_108 = arith.constant 0 : index
    %c0_109 = arith.constant 0 : index
    %c0_110 = arith.constant 0 : index
    %329 = vector.load %arg5[%c0_108, %c0_109, %c0_110] : memref<1x1x384xf32, #tpu.memory_space<vmem>>, vector<1x1x384xf32>
    %330 = vector.shape_cast %329 : vector<1x1x384xf32> to vector<1x384xf32>
    %331 = vector.broadcast %330 : vector<1x384xf32> to vector<8x384xf32>
    %332 = arith.addf %328, %331 : vector<8x384xf32>
    %333 = vector.extract_strided_slice %324 {offsets = [0, 0], sizes = [8, 128], strides = [1, 1]} : vector<8x384xbf16> to vector<8x128xbf16>
    %334 = vector.extract_strided_slice %332 {offsets = [0, 0], sizes = [8, 128], strides = [1, 1]} : vector<8x384xf32> to vector<8x128xf32>
    %335 = arith.extf %333 : vector<8x128xbf16> to vector<8x128xf32>
    %336 = arith.addf %335, %334 : vector<8x128xf32>
    %337 = arith.negf %336 : vector<8x128xf32>
    %338 = math.exp %337 : vector<8x128xf32>
    %cst_111 = arith.constant 1.000000e+00 : f32
    %339 = vector.broadcast %cst_111 : f32 to vector<8x128xf32>
    %340 = arith.addf %339, %338 : vector<8x128xf32>
    %341 = arith.divf %339, %340 : vector<8x128xf32>
    %342 = vector.extract_strided_slice %324 {offsets = [0, 128], sizes = [8, 128], strides = [1, 1]} : vector<8x384xbf16> to vector<8x128xbf16>
    %343 = vector.extract_strided_slice %332 {offsets = [0, 128], sizes = [8, 128], strides = [1, 1]} : vector<8x384xf32> to vector<8x128xf32>
    %344 = arith.extf %342 : vector<8x128xbf16> to vector<8x128xf32>
    %345 = arith.addf %344, %343 : vector<8x128xf32>
    %346 = arith.negf %345 : vector<8x128xf32>
    %347 = math.exp %346 : vector<8x128xf32>
    %cst_112 = arith.constant 1.000000e+00 : f32
    %348 = vector.broadcast %cst_112 : f32 to vector<8x128xf32>
    %349 = arith.addf %348, %347 : vector<8x128xf32>
    %350 = arith.divf %348, %349 : vector<8x128xf32>
    %351 = vector.extract_strided_slice %324 {offsets = [0, 256], sizes = [8, 128], strides = [1, 1]} : vector<8x384xbf16> to vector<8x128xbf16>
    %352 = vector.extract_strided_slice %332 {offsets = [0, 256], sizes = [8, 128], strides = [1, 1]} : vector<8x384xf32> to vector<8x128xf32>
    %353 = arith.mulf %341, %352 : vector<8x128xf32>
    %354 = arith.extf %351 : vector<8x128xbf16> to vector<8x128xf32>
    %355 = arith.addf %354, %353 : vector<8x128xf32>
    %356 = math.tanh %355 : vector<8x128xf32>
    %357 = arith.subf %314, %356 : vector<8x128xf32>
    %358 = arith.mulf %350, %357 : vector<8x128xf32>
    %359 = arith.addf %356, %358 : vector<8x128xf32>
    %360 = arith.truncf %359 : vector<8x128xf32> to vector<8x128xbf16>
    %361 = arith.index_cast %321 : i32 to index
    %c0_113 = arith.constant 0 : index
    %c0_114 = arith.constant 0 : index
    %362 = vector.load %arg6[%361, %c0_113, %c0_114] : memref<8x8x128xbf16, #tpu.memory_space<vmem>>, vector<1x8x128xbf16>
    %363 = vector.shape_cast %362 : vector<1x8x128xbf16> to vector<8x128xbf16>
    %364 = vector.shape_cast %360 : vector<8x128xbf16> to vector<1x8x128xbf16>
    tpu.vector_store %arg6[%361, %c0_113, %c0_114], %364 {strides = array<i32>} : memref<8x8x128xbf16, #tpu.memory_space<vmem>>, vector<1x8x128xbf16>,
    %c8_i32 = arith.constant 8 : i32
    %c0_115 = arith.constant 0 : index
    %c0_116 = arith.constant 0 : index
    %365 = vector.load %arg8[%c0_115, %c0_116] : memref<8x128xf32, #tpu.memory_space<vmem>>, vector<8x128xf32>
    tpu.vector_store %arg8[%c0_115, %c0_116], %359 {strides = array<i32>} : memref<8x128xf32, #tpu.memory_space<vmem>>, vector<8x128xf32>,
    %c0_i32_117 = arith.constant 0 : i32
    %366 = arith.cmpi eq, %arg1, %c0_i32_117 : i32
    %367 = arith.extui %366 : i1 to i32
    %c0_i32_118 = arith.constant 0 : i32
    %368 = arith.cmpi ne, %367, %c0_i32_118 : i32
    scf.if %368 {
      %c0_119 = arith.constant 0 : index
      %c0_120 = arith.constant 0 : index
      %c0_121 = arith.constant 0 : index
      %369 = vector.load %arg7[%c0_119, %c0_120, %c0_121] : memref<1x8x128xf32, #tpu.memory_space<vmem>>, vector<1x8x128xf32>
      %370 = vector.shape_cast %369 : vector<1x8x128xf32> to vector<8x128xf32>
      %371 = vector.shape_cast %359 : vector<8x128xf32> to vector<1x8x128xf32>
      tpu.vector_store %arg7[%c0_119, %c0_120, %c0_121], %371 {strides = array<i32>} : memref<1x8x128xf32, #tpu.memory_space<vmem>>, vector<1x8x128xf32>,
    } else {
    }
    return
  }
  func.func @transform_0(%arg0: i32, %arg1: i32) -> (i32, i32, i32) {
    %c0_i32 = arith.constant 0 : i32
    %0 = arith.subi %c0_i32, %arg1 : i32
    %1 = arith.muli %arg0, %0 : i32
    %c1_i32 = arith.constant 1 : i32
    %2 = arith.subi %c1_i32, %arg0 : i32
    %3 = arith.muli %2, %arg1 : i32
    %4 = arith.addi %1, %3 : i32
    %c0_i32_0 = arith.constant 0 : i32
    %c0_i32_1 = arith.constant 0 : i32
    return %4, %c0_i32_0, %arg0 : i32, i32, i32
  }
  func.func @transform_1(%arg0: i32, %arg1: i32) -> (i32, i32, i32) {
    %c0_i32 = arith.constant 0 : i32
    %c0_i32_0 = arith.constant 0 : i32
    %c0_i32_1 = arith.constant 0 : i32
    return %arg0, %c0_i32, %c0_i32_0 : i32, i32, i32
  }
  func.func @transform_2(%arg0: i32, %arg1: i32) -> (i32, i32, i32) {
    %c0_i32 = arith.constant 0 : i32
    %c0_i32_0 = arith.constant 0 : i32
    %c0_i32_1 = arith.constant 0 : i32
    return %arg0, %c0_i32, %c0_i32_0 : i32, i32, i32
  }
  func.func @transform_3(%arg0: i32, %arg1: i32) -> (i32, i32, i32) {
    %c0_i32 = arith.constant 0 : i32
    %c0_i32_0 = arith.constant 0 : i32
    %c0_i32_1 = arith.constant 0 : i32
    return %arg0, %c0_i32, %c0_i32_0 : i32, i32, i32
  }
  func.func @transform_4(%arg0: i32, %arg1: i32) -> (i32, i32, i32) {
    %c0_i32 = arith.constant 0 : i32
    %0 = arith.subi %c0_i32, %arg1 : i32
    %1 = arith.muli %arg0, %0 : i32
    %c1_i32 = arith.constant 1 : i32
    %2 = arith.subi %c1_i32, %arg0 : i32
    %3 = arith.muli %2, %arg1 : i32
    %4 = arith.addi %1, %3 : i32
    %c0_i32_0 = arith.constant 0 : i32
    %c0_i32_1 = arith.constant 0 : i32
    return %4, %c0_i32_0, %arg0 : i32, i32, i32
  }
  func.func @transform_5(%arg0: i32, %arg1: i32) -> (i32, i32, i32) {
    %c0_i32 = arith.constant 0 : i32
    %c0_i32_0 = arith.constant 0 : i32
    %c0_i32_1 = arith.constant 0 : i32
    return %arg0, %c0_i32, %c0_i32_0 : i32, i32, i32
  }
}

module attributes {stable_mosaic.version = 11 : i64} {
  func.func @gemm_bias_kernel(%arg0: i32, %arg1: i32, %arg2: memref<64x32xbf16, #tpu.memory_space<vmem>>, %arg3: memref<32x256xbf16, #tpu.memory_space<vmem>>, %arg4: memref<1x256xf32, #tpu.memory_space<vmem>>, %arg5: memref<64x256xbf16, #tpu.memory_space<vmem>>) attributes {dimension_semantics = [#tpu.dimension_semantics<parallel>, #tpu.dimension_semantics<parallel>], iteration_bounds = array<i64: 3, 1>, scalar_prefetch = 0 : i64, scratch_operands = 0 : i64, tpu.core_type = #tpu.core_type<tc>, window_params = [{transform_indices = @transform_0, window_bounds = array<i64: 64, 32>}, {transform_indices = @transform_1, window_bounds = array<i64: 32, 256>}, {transform_indices = @transform_2, window_bounds = array<i64: 1, 256>}, {transform_indices = @transform_3, window_bounds = array<i64: 64, 256>}]} {
    %c0 = arith.constant 0 : index
    %c0_0 = arith.constant 0 : index
    %0 = vector.load %arg2[%c0, %c0_0] : memref<64x32xbf16, #tpu.memory_space<vmem>>, vector<64x32xbf16>
    %c0_1 = arith.constant 0 : index
    %c0_2 = arith.constant 0 : index
    %1 = vector.load %arg3[%c0_1, %c0_2] : memref<32x256xbf16, #tpu.memory_space<vmem>>, vector<32x256xbf16>
    %cst = arith.constant dense<0.000000e+00> : vector<64x256xf32>
    %2 = tpu.matmul %0, %1, %cst {dimension_numbers = #tpu.dot_dimension_numbers<[1], [0], [0], [1], [0, 0, 1, 1], [], []>} : vector<64x32xbf16>, vector<32x256xbf16>, vector<64x256xf32> -> vector<64x256xf32>
    %c0_3 = arith.constant 0 : index
    %c0_4 = arith.constant 0 : index
    %3 = vector.load %arg4[%c0_3, %c0_4] : memref<1x256xf32, #tpu.memory_space<vmem>>, vector<1x256xf32>
    %4 = vector.broadcast %3 : vector<1x256xf32> to vector<64x256xf32>
    %5 = arith.addf %2, %4 : vector<64x256xf32>
    %6 = arith.truncf %5 : vector<64x256xf32> to vector<64x256xbf16>
    %c0_5 = arith.constant 0 : index
    %c0_6 = arith.constant 0 : index
    %7 = vector.load %arg5[%c0_5, %c0_6] : memref<64x256xbf16, #tpu.memory_space<vmem>>, vector<64x256xbf16>
    tpu.vector_store %arg5[%c0_5, %c0_6], %6 {strides = array<i32>} : memref<64x256xbf16, #tpu.memory_space<vmem>>, vector<64x256xbf16>,
    return
  }
  func.func @transform_0(%arg0: i32, %arg1: i32) -> (i32, i32) {
    %c0_i32 = arith.constant 0 : i32
    %c0_i32_0 = arith.constant 0 : i32
    return %arg1, %c0_i32 : i32, i32
  }
  func.func @transform_1(%arg0: i32, %arg1: i32) -> (i32, i32) {
    %c0_i32 = arith.constant 0 : i32
    %c0_i32_0 = arith.constant 0 : i32
    return %c0_i32, %arg0 : i32, i32
  }
  func.func @transform_2(%arg0: i32, %arg1: i32) -> (i32, i32) {
    %c0_i32 = arith.constant 0 : i32
    %c0_i32_0 = arith.constant 0 : i32
    return %c0_i32, %arg0 : i32, i32
  }
  func.func @transform_3(%arg0: i32, %arg1: i32) -> (i32, i32) {
    %c0_i32 = arith.constant 0 : i32
    return %arg1, %arg0 : i32, i32
  }
}

</mosaic_0001>

<bundles_post_ra>
// kernel: potry_forward.7
= control target key start
LH: loop header
LB: loop body
LE: loop exit
PB: predicated region body
PF: predicated region fallthrough
CT: control target
= control target key end

     0   :  { %8 = vsyncpa [#allocation3], 0  ;;  %s1433_s0 = inlined_call_operand.vmem [shape: bf16[64,256], index: 0, kind: input, shape index: {}]   ;;  %s1434_s1 = inlined_call_operand.hbm [shape: bf16[256,768], index: 1, kind: input, shape index: {}]   ;;  %s1435_s2 = inlined_call_operand.vmem [shape: f32[1,768], index: 2, kind: input, shape index: {}]   ;;  %s1436_s3 = inlined_call_operand.vmem [shape: bf16[64,768], index: 3, kind: output, shape index: {}]  }
   0x1   :  { %10 = vsyncpa [#allocation3 + $0x1], 0  ;;  %s1179_s12 = smov 0   ;;  %s1181_s13 = smov 0  }
   0x2   :  { %s1183_s14 = smov 0   ;;  %s1185_s15 = smov 0  }
   0x3   :  { %s1187_s16 = smov 0   ;;  %s1189_s17 = smov 0  }
   0x4 LB: > { %s797_s18 = sadd.s32 4294967295, %s1154_s17   ;;  %s28_s19 = sadd.s32 1, %s1150_s16  ;;  %s1154_s17 = sphi %s1189_s17, %s16_s17   ;;  %s1150_s16 = sphi %s1187_s16, %s1444_s16   ;;  %s1146_s15 = sphi %s1185_s15, %s1443_s15   ;;  %s1142_s14 = sphi %s1183_s14, %s1442_s14   ;;  %s1138_s13 = sphi %s1181_s13, %s1441_s13   ;;  %s1134_s12 = sphi %s1179_s12, %s1440_s12  }
   0x5   : > { %p30_p0 = scmp.ge.s32.totalorder %s28_s19, 3  ;;  %s61_s20 = sadd.s32 1, %s1142_s14 }
   0x6   : > { %p68_p1 = scmp.ne.s32.totalorder %s1142_s14, %s1138_s13  ;;  %p69_p2 = scmp.eq.s32.totalorder %s1154_s17, 0 }
   0x7   : > { %s1446_s19 = smov (%p30_p0, %s28_s19), 0  ;;  %p74_p4 = scmp.ne.s32.totalorder %s1138_s13, %s1134_s12 }
   0x8   : > { %p1215_p3 = por %p69_p2, %p68_p1  ;;  %s58_s22 = ssub.s32 %s1150_s16, %s1446_s19 }
   0x9   : > { %p75_p5 = scmp.eq.s32.totalorder %s797_s18, 0  ;;  %p59_p6 = scmp.eq.s32.totalorder %s58_s22, 0 }
   0xa   : > { %p126_p7 = scmp.eq.s32.totalorder %s797_s18, 2  ;;  %p1022_p10 = scmp.lt.s32.totalorder %s1154_s17, 3 }
   0xb   : > { %p1222_p8 = por %p75_p5, %p74_p4  ;;  %s162_s26 = sand.u32 1, %s1142_s14  }
   0xc   : > { %s1227_s24 = scalar_select %p59_p6, %s1142_s14, %s61_s20  }
   0xd   : > { %p1229_p9 = por %p126_p7, %p68_p1  ;;  %s974_s27 = sshll.u32 %s1150_s16, 3 }
   0xe   : > { %s802_s28 = sshll.u32 %s162_s26, 8  ;;  %s171_s4 = scalar_lea.hbm %s1434_s1, %s974_s27 }
   0xf   : > { %s172_s5 = sshll.u32 %s171_s4, 4  ;;  %s166_s6 = scalar_lea.vmem [#allocation2], %s802_s28  ;;  %s173_s5 = int_to_ptr.hbm [resolvable:$true] %s172_s5 }
  0x10   : > { %s174_s7 = sshll.u32 %s166_s6, 4  ;;  %p1019_p11 = pnand %p1022_p10, %p1215_p3  ;;  %s175_s7 = int_to_ptr.vmem [resolvable:$true] %s174_s7 }
  0x11   : > { %p805_p12 = scmp.ge.s32.totalorder %s1154_s17, 1  ;;  %s163_s8 = scalar_lea.sflag [#allocation3], %s162_s26 }
  0x12   : > { %s1156_s9 = smov 384   ;;  %s1157_s10 = smov 128  }
  0x13   : > { %s1158_s11 = smov 8   ;;  %p190_p13 = scmp.lt.s32.totalorder %s1154_s17, 4 }
  0x14   : > { %1021 = dma.hbm_to_vmem [thread:$0]  (!%p1019_p11), %s173_s5, 4096, %s175_s7, %s163_s8, %s1156_s9, %s1157_s10, %s1158_s11  }
  0x15   : > { %p191_p0 = pnand %p805_p12, %p190_p13 }
  0x16   : > { %s1244_s12 = sand.u32 (!%p191_p0), 1, %s1138_s13  }
  0x17   : > { %194 = sbr.rel (%p191_p0) target bundleno = 268 (0x10c), region = 32  ;;  %s806_s18 = sshll.u32 (!%p191_p0), %s1244_s12, 8 }
  0x18   : > { %s197_s20 = scalar_lea.sflag (!%p191_p0), [#allocation3], %s1244_s12  ;;  %s1248_s22 = scalar_lea.vmem (!%p191_p0), [#allocation2], %s806_s18 }
  0x1c   : > { %1129 = dma.done.wait (%p1222_p8), %s197_s20, 4096  }
  0x1d   : > { %1131 = vsyncadd (%p1222_p8), %s197_s20, 4294963200  ;;  %v899_v0 = vld [vmem:[%s1248_s22 + $0x70] sm:$0xf]  ;;  %v998_v1 = vld [vmem:[%s1248_s22 + $0x74] sm:$0xf0]  ;;  %s808_s11 = sshll.u32 %s1146_s15, 1 }
  0x1e   : > { %v963_v2 = vld [vmem:[%s1248_s22 + $0xf0] sm:$0xf]  ;;  %v900_v3 = vor.u32 %v998_v1, %v899_v0  ;;  %v1014_v4 = vld [vmem:[%s1248_s22 + $0xf4] sm:$0xf0]  ;;  %v997_v5 = vld [vmem:[%s1248_s22 + $0x74] sm:$0xf] }
  0x1f   : > { %v901_v6 = vld [vmem:[%s1248_s22 + $0x78] sm:$0xf0]  ;;  %v964_v7 = vor.u32 %v1014_v4, %v963_v2  ;;  %v1013_v9 = vld [vmem:[%s1248_s22 + $0xf4] sm:$0xf]  ;;  %v891_v11 = vld [vmem:[%s1248_s22 + $0x60] sm:$0xf] }
  0x20   : > { %v904_v8 = vor.u32 %v997_v5, %v901_v6  ;;  %v965_v10 = vld [vmem:[%s1248_s22 + $0xf8] sm:$0xf0]  ;;  %494 = vmatpush.bf16.msra.mxu0 %v900_v3  ;;  %v996_v13 = vld [vmem:[%s1248_s22 + $0x64] sm:$0xf0]  ;;  %v955_v14 = vld [vmem:[%s1248_s22 + $0xe0] sm:$0xf] }
  0x21   : > { %v968_v12 = vor.u32 %v1013_v9, %v965_v10  ;;  %v1012_v15 = vld [vmem:[%s1248_s22 + $0xe4] sm:$0xf0]  ;;  %523 = vmatpush.bf16.msra.mxu1 %v964_v7  ;;  %v892_v16 = vor.u32 %v996_v13, %v891_v11  ;;  %v995_v18 = vld [vmem:[%s1248_s22 + $0x64] sm:$0xf]  ;;  %v893_v19 = vld [vmem:[%s1248_s22 + $0x68] sm:$0xf0] }
  0x22   : > { %552 = vmatpush.bf16.msra.mxu2 %v904_v8  ;;  %v956_v17 = vor.u32 %v1012_v15, %v955_v14  ;;  %v1011_v20 = vld [vmem:[%s1248_s22 + $0xe4] sm:$0xf]  ;;  %v896_v21 = vor.u32 %v995_v18, %v893_v19  ;;  %v957_v22 = vld [vmem:[%s1248_s22 + $0xe8] sm:$0xf0]  ;;  %v883_v23 = vld [vmem:[%s1248_s22 + $0x50] sm:$0xf] }
  0x23   : > { %581 = vmatpush.bf16.msra.mxu3 %v968_v12  ;;  %v994_v24 = vld [vmem:[%s1248_s22 + $0x54] sm:$0xf0]  ;;  %v960_v25 = vor.u32 %v1011_v20, %v957_v22  ;;  %v947_v26 = vld [vmem:[%s1248_s22 + $0xd0] sm:$0xf]  ;;  %v993_v28 = vld [vmem:[%s1248_s22 + $0x54] sm:$0xf] }
  0x24   : > { %v1010_v27 = vld [vmem:[%s1248_s22 + $0xd4] sm:$0xf0]  ;;  %495 = vmatpush.bf16.msra.mxu0 %v892_v16  ;;  %v884_v29 = vor.u32 %v994_v24, %v883_v23  ;;  %v885_v30 = vld [vmem:[%s1248_s22 + $0x58] sm:$0xf0]  ;;  %v1009_v31 = vld [vmem:[%s1248_s22 + $0xd4] sm:$0xf] }
  0x25   : > { %v949_v32 = vld [vmem:[%s1248_s22 + $0xd8] sm:$0xf0]  ;;  %524 = vmatpush.bf16.msra.mxu1 %v956_v17  ;;  %v948_v33 = vor.u32 %v1010_v27, %v947_v26  ;;  %v888_v34 = vor.u32 %v993_v28, %v885_v30  ;;  %v875_v35 = vld [vmem:[%s1248_s22 + $0x40] sm:$0xf]  ;;  %v992_v36 = vld [vmem:[%s1248_s22 + $0x44] sm:$0xf0] }
  0x26   : > { %553 = vmatpush.bf16.msra.mxu2 %v896_v21  ;;  %v939_v37 = vld [vmem:[%s1248_s22 + $0xc0] sm:$0xf]  ;;  %v952_v38 = vor.u32 %v1009_v31, %v949_v32  ;;  %v1008_v39 = vld [vmem:[%s1248_s22 + $0xc4] sm:$0xf0]  ;;  %v991_v40 = vld [vmem:[%s1248_s22 + $0x44] sm:$0xf]  ;;  %v876_v44 = vor.u32 %v992_v36, %v875_v35 }
  0x27   : > { %582 = vmatpush.bf16.msra.mxu3 %v960_v25  ;;  %v877_v41 = vld [vmem:[%s1248_s22 + $0x48] sm:$0xf0]  ;;  %v1007_v42 = vld [vmem:[%s1248_s22 + $0xc4] sm:$0xf]  ;;  %v940_v45 = vor.u32 %v1008_v39, %v939_v37  ;;  %v867_v47 = vld [vmem:[%s1248_s22 + $0x30] sm:$0xf] }
  0x28   : > { %v941_v43 = vld [vmem:[%s1248_s22 + $0xc8] sm:$0xf0]  ;;  %496 = vmatpush.bf16.msra.mxu0 %v884_v29  ;;  %v880_v46 = vor.u32 %v991_v40, %v877_v41  ;;  %v990_v48 = vld [vmem:[%s1248_s22 + $0x34] sm:$0xf0]  ;;  %v931_v49 = vld [vmem:[%s1248_s22 + $0xb0] sm:$0xf] }
  0x29   : > { %525 = vmatpush.bf16.msra.mxu1 %v948_v33  ;;  %v944_v50 = vor.u32 %v1007_v42, %v941_v43  ;;  %v1006_v51 = vld [vmem:[%s1248_s22 + $0xb4] sm:$0xf0]  ;;  %v989_v52 = vld [vmem:[%s1248_s22 + $0x34] sm:$0xf]  ;;  %v869_v53 = vld [vmem:[%s1248_s22 + $0x38] sm:$0xf0]  ;;  %v868_v56 = vor.u32 %v990_v48, %v867_v47 }
  0x2a   : > { %554 = vmatpush.bf16.msra.mxu2 %v888_v34  ;;  %v1005_v54 = vld [vmem:[%s1248_s22 + $0xb4] sm:$0xf]  ;;  %v933_v55 = vld [vmem:[%s1248_s22 + $0xb8] sm:$0xf0]  ;;  %v932_v57 = vor.u32 %v1006_v51, %v931_v49  ;;  %v872_v58 = vor.u32 %v989_v52, %v869_v53  ;;  %v859_v59 = vld [vmem:[%s1248_s22 + $0x20] sm:$0xf] }
  0x2b   : > { %583 = vmatpush.bf16.msra.mxu3 %v952_v38  ;;  %v988_v60 = vld [vmem:[%s1248_s22 + $0x24] sm:$0xf0]  ;;  %v923_v61 = vld [vmem:[%s1248_s22 + $0xa0] sm:$0xf]  ;;  %v936_v62 = vor.u32 %v1005_v54, %v933_v55  ;;  %v987_v0 = vld [vmem:[%s1248_s22 + $0x24] sm:$0xf] }
  0x2c   : > { %497 = vmatpush.bf16.msra.mxu0 %v876_v44  ;;  %v1004_v63 = vld [vmem:[%s1248_s22 + $0xa4] sm:$0xf0]  ;;  %v861_v1 = vld [vmem:[%s1248_s22 + $0x28] sm:$0xf0]  ;;  %v1003_v2 = vld [vmem:[%s1248_s22 + $0xa4] sm:$0xf]  ;;  %v860_v4 = vor.u32 %v988_v60, %v859_v59 }
  0x2d   : > { %526 = vmatpush.bf16.msra.mxu1 %v940_v45  ;;  %v925_v3 = vld [vmem:[%s1248_s22 + $0xa8] sm:$0xf0]  ;;  %v924_v5 = vor.u32 %v1004_v63, %v923_v61  ;;  %v864_v6 = vor.u32 %v987_v0, %v861_v1  ;;  %v851_v7 = vld [vmem:[%s1248_s22 + $0x10] sm:$0xf]  ;;  %v986_v8 = vld [vmem:[%s1248_s22 + $0x14] sm:$0xf0] }
  0x2e   : > { %555 = vmatpush.bf16.msra.mxu2 %v880_v46  ;;  %v915_v9 = vld [vmem:[%s1248_s22 + $0x90] sm:$0xf]  ;;  %v928_v10 = vor.u32 %v1003_v2, %v925_v3  ;;  %v1002_v11 = vld [vmem:[%s1248_s22 + $0x94] sm:$0xf0]  ;;  %v985_v12 = vld [vmem:[%s1248_s22 + $0x14] sm:$0xf]  ;;  %v852_v16 = vor.u32 %v986_v8, %v851_v7 }
  0x2f   : > { %584 = vmatpush.bf16.msra.mxu3 %v944_v50  ;;  %v853_v13 = vld [vmem:[%s1248_s22 + $0x18] sm:$0xf0]  ;;  %v1001_v14 = vld [vmem:[%s1248_s22 + $0x94] sm:$0xf]  ;;  %v916_v17 = vor.u32 %v1002_v11, %v915_v9  ;;  %v843_v19 = vld [vmem:[%s1248_s22] sm:$0xf] }
  0x30   : > { %498 = vmatpush.bf16.msra.mxu0 %v868_v56  ;;  %v917_v15 = vld [vmem:[%s1248_s22 + $0x98] sm:$0xf0]  ;;  %v856_v18 = vor.u32 %v985_v12, %v853_v13  ;;  %v984_v20 = vld [vmem:[%s1248_s22 + $0x4] sm:$0xf0]  ;;  %v907_v21 = vld [vmem:[%s1248_s22 + $0x80] sm:$0xf] }
  0x31   : > { %527 = vmatpush.bf16.msra.mxu1 %v932_v57  ;;  %v920_v22 = vor.u32 %v1001_v14, %v917_v15  ;;  %v1000_v23 = vld [vmem:[%s1248_s22 + $0x84] sm:$0xf0]  ;;  %v983_v24 = vld [vmem:[%s1248_s22 + $0x4] sm:$0xf]  ;;  %v845_v25 = vld [vmem:[%s1248_s22 + $0x8] sm:$0xf0]  ;;  %v844_v28 = vor.u32 %v984_v20, %v843_v19 }
  0x32   : > { %556 = vmatpush.bf16.msra.mxu2 %v872_v58  ;;  %v999_v26 = vld [vmem:[%s1248_s22 + $0x84] sm:$0xf]  ;;  %v909_v27 = vld [vmem:[%s1248_s22 + $0x88] sm:$0xf0]  ;;  %v811_v29 = vld [vmem:[%s1433_s0] sm:$0xf]  ;;  %v908_v31 = vor.u32 %v1000_v23, %v907_v21  ;;  %v848_v32 = vor.u32 %v983_v24, %v845_v25 }
  0x33   : > { %585 = vmatpush.bf16.msra.mxu3 %v936_v62  ;;  %v976_v30 = vld [vmem:[%s1433_s0 + $0x4] sm:$0xf0]  ;;  %v975_v33 = vld [vmem:[%s1433_s0 + $0x4] sm:$0xf]  ;;  %v813_v34 = vld [vmem:[%s1433_s0 + $0x8] sm:$0xf0]  ;;  %v912_v35 = vor.u32 %v999_v26, %v909_v27 }
  0x34   : > { %499 = vmatpush.bf16.msra.mxu0 %v860_v4  ;;  %v812_v36 = vor.u32 %v976_v30, %v811_v29  ;;  %v816_v37 = vor.u32 %v975_v33, %v813_v34  ;;  %v819_v38 = vld [vmem:[%s1433_s0 + $0x10] sm:$0xf]  ;;  %v978_v39 = vld [vmem:[%s1433_s0 + $0x14] sm:$0xf0]  ;;  %v977_v40 = vld [vmem:[%s1433_s0 + $0x14] sm:$0xf] }
  0x35   : > { %528 = vmatpush.bf16.msra.mxu1 %v924_v5  ;;  %v821_v41 = vld [vmem:[%s1433_s0 + $0x18] sm:$0xf0]  ;;  %v820_v42 = vor.u32 %v978_v39, %v819_v38  ;;  %v827_v44 = vld [vmem:[%s1433_s0 + $0x20] sm:$0xf]  ;;  %v980_v45 = vld [vmem:[%s1433_s0 + $0x24] sm:$0xf0] }
  0x36   : > { %557 = vmatpush.bf16.msra.mxu2 %v864_v6  ;;  %v824_v43 = vor.u32 %v977_v40, %v821_v41  ;;  %v979_v46 = vld [vmem:[%s1433_s0 + $0x24] sm:$0xf]  ;;  %v829_v47 = vld [vmem:[%s1433_s0 + $0x28] sm:$0xf0]  ;;  %v828_v48 = vor.u32 %v980_v45, %v827_v44  ;;  %v835_v50 = vld [vmem:[%s1433_s0 + $0x30] sm:$0xf] }
  0x37   : > { %586 = vmatpush.bf16.msra.mxu3 %v928_v10  ;;  %v832_v49 = vor.u32 %v979_v46, %v829_v47  ;;  %v982_v51 = vld [vmem:[%s1433_s0 + $0x34] sm:$0xf0]  ;;  %v981_v52 = vld [vmem:[%s1433_s0 + $0x34] sm:$0xf]  ;;  %v837_v53 = vld [vmem:[%s1433_s0 + $0x38] sm:$0xf0] }
  0x38   : > { %500 = vmatpush.bf16.msra.mxu0 %v852_v16  ;;  %v836_v54 = vor.u32 %v982_v51, %v835_v50  ;;  %v840_v55 = vor.u32 %v981_v52, %v837_v53  ;;  %p242_p1 = scmp.lt.s32.totalorder %s808_s11, 5  ;;  %s807_s21 = sshll.u32 %s1244_s12, 6 }
  0x39   : > { %529 = vmatpush.bf16.msra.mxu1 %v916_v17  ;;  %s1377_s23 = scalar_lea.vmem [#allocation4], %s807_s21  ;;  %s1015_s12 = sshll.u32 (%p1229_p9), %s1146_s15, 3 }
  0x3a   : > { %558 = vmatpush.bf16.msra.mxu2 %v856_v18  ;;  %s1448_s11 = smov (!%p242_p1, %s808_s11), 5  ;;  %s638_s28 = scalar_lea.vmem (%p1229_p9), %s1436_s3, %s1015_s12 }
  0x3b   : > { %587 = vmatpush.bf16.msra.mxu3 %v920_v22  ;;  %s244_s22 = scalar_lea.vmem %s1435_s2, %s1448_s11 }
  0x3c   : > { %501 = vmatpush.bf16.msra.mxu0 %v844_v28  ;;  %v288_v56 = vld [vmem:[%s244_s22] sm:$0x3] }
  0x3d   : > { %530 = vmatpush.bf16.msra.mxu1 %v908_v31  ;;  %v1370_v57 = vperm.slane %v288_v56, 0  ;;  %v1373_v61 = vperm.slane %v288_v56, 1 }
  0x3e   : > { %559 = vmatpush.bf16.msra.mxu2 %v848_v32 }
  0x3f   : > { %588 = vmatpush.bf16.msra.mxu3 %v912_v35  ;;  %502 = vmatmul.bf16.vlgmr.msra.gmra.mxu0 %v812_v36 }
  0x40   : > { %531 = vmatmul.bf16.vlgmr.msra.gmra.mxu1 %v816_v37 }
  0x41   : > { %560 = vmatmul.bf16.vlgmr.msra.gmra.mxu2 %v812_v36 }
  0x42   : > { %589 = vmatmul.bf16.vlgmr.msra.gmra.mxu3 %v816_v37 }
  0x4f   : > { %507 = vmatmul.bf16.gmra.mxu0 %v820_v42 }
  0x50   : > { %536 = vmatmul.bf16.gmra.mxu1 %v824_v43 }
  0x51   : > { %565 = vmatmul.bf16.gmra.mxu2 %v820_v42 }
  0x52   : > { %594 = vmatmul.bf16.gmra.mxu3 %v824_v43 }
  0x5f   : > { %512 = vmatmul.bf16.gmra.mxu0 %v828_v48 }
  0x60   : > { %541 = vmatmul.bf16.gmra.mxu1 %v832_v49 }
  0x61   : > { %570 = vmatmul.bf16.gmra.mxu2 %v828_v48 }
  0x62   : > { %599 = vmatmul.bf16.gmra.mxu3 %v832_v49 }
  0x6f   : > { %517 = vmatmul.bf16.gmra.mxu0 %v836_v54 }
  0x70   : > { %546 = vmatmul.bf16.gmra.mxu1 %v840_v55 }
  0x71   : > { %575 = vmatmul.bf16.gmra.mxu2 %v836_v54 }
  0x72   : > { %604 = vmatmul.bf16.gmra.mxu3 %v840_v55 }
  0xbc   : > { %v503_v58 = vpop.f32.mrf.mxu0 }
  0xbd   : > { %v532_v59 = vpop.f32.mrf.mxu1  ;;  %v504_v60 = vadd.f32 %v503_v58, %v1370_v57 }
  0xbf   : > { %v533_v63 = vadd.f32 %v532_v59, %v504_v60 }
  0xc4   : > { %v561_v62 = vpop.f32.mrf.mxu2  ;;  %v505_v2 = vpop.f32.mrf.mxu0 }
  0xc5   : > { %v562_v0 = vadd.f32 %v561_v62, %v1373_v61  ;;  %v590_v1 = vpop.f32.mrf.mxu3  ;;  %v534_v3 = vpop.f32.mrf.mxu1  ;;  %v506_v6 = vadd.f32 %v505_v2, %v1370_v57 }
  0xc7   : > { %v591_v4 = vadd.f32 %v590_v1, %v562_v0  ;;  %v535_v12 = vadd.f32 %v534_v3, %v506_v6 }
  0xc9   : > { %v610_v5 = vpack.c.bf16 %v591_v4, %v533_v63 }
  0xcb   : > { %618 = vst [vmem:[%s1377_s23] sm:$0xff] %v610_v5 }
  0xcc   : > { %v563_v7 = vpop.f32.mrf.mxu2  ;;  %v508_v10 = vpop.f32.mrf.mxu0 }
  0xcd   : > { %v564_v8 = vadd.f32 %v563_v7, %v1373_v61  ;;  %v592_v9 = vpop.f32.mrf.mxu3  ;;  %v537_v11 = vpop.f32.mrf.mxu1  ;;  %v509_v15 = vadd.f32 %v508_v10, %v1370_v57 }
  0xcf   : > { %v593_v13 = vadd.f32 %v592_v9, %v564_v8  ;;  %v538_v17 = vadd.f32 %v537_v11, %v509_v15 }
  0xd1   : > { %v611_v14 = vpack.c.bf16 %v593_v13, %v535_v12 }
  0xd3   : > { %619 = vst [vmem:[%s1377_s23 + $0x8] sm:$0xff] %v611_v14 }
  0xd4   : > { %v566_v16 = vpop.f32.mrf.mxu2  ;;  %v510_v20 = vpop.f32.mrf.mxu0 }
  0xd5   : > { %v567_v18 = vadd.f32 %v566_v16, %v1373_v61  ;;  %v595_v19 = vpop.f32.mrf.mxu3  ;;  %v539_v21 = vpop.f32.mrf.mxu1  ;;  %v511_v24 = vadd.f32 %v510_v20, %v1370_v57 }
  0xd7   : > { %v596_v22 = vadd.f32 %v595_v19, %v567_v18  ;;  %v540_v29 = vadd.f32 %v539_v21, %v511_v24 }
  0xd9   : > { %v612_v23 = vpack.c.bf16 %v596_v22, %v538_v17 }
  0xdb   : > { %620 = vst [vmem:[%s1377_s23 + $0x10] sm:$0xff] %v612_v23 }
  0xdc   : > { %v568_v25 = vpop.f32.mrf.mxu2  ;;  %v513_v28 = vpop.f32.mrf.mxu0 }
  0xdd   : > { %v569_v26 = vadd.f32 %v568_v25, %v1373_v61  ;;  %v597_v27 = vpop.f32.mrf.mxu3  ;;  %v542_v31 = vpop.f32.mrf.mxu1  ;;  %v514_v33 = vadd.f32 %v513_v28, %v1370_v57 }
  0xdf   : > { %v598_v30 = vadd.f32 %v597_v27, %v569_v26  ;;  %v543_v35 = vadd.f32 %v542_v31, %v514_v33 }
  0xe1   : > { %v613_v32 = vpack.c.bf16 %v598_v30, %v540_v29 }
  0xe2   : > { %v685_v5 = vld [vmem:[%s1377_s23 + $0x10] sm:$0xff] (%p1229_p9) }
  0xe3   : > { %621 = vst [vmem:[%s1377_s23 + $0x18] sm:$0xff] %v613_v32 }
  0xe4   : > { %v571_v34 = vpop.f32.mrf.mxu2  ;;  %v515_v38 = vpop.f32.mrf.mxu0  ;;  %686 = vst [vmem:[%s638_s28 + $0x30] sm:$0xff] (%p1229_p9), %v685_v5 }
  0xe5   : > { %v572_v36 = vadd.f32 %v571_v34, %v1373_v61  ;;  %v600_v37 = vpop.f32.mrf.mxu3  ;;  %v544_v41 = vpop.f32.mrf.mxu1  ;;  %v516_v42 = vadd.f32 %v515_v38, %v1370_v57 }
  0xe7   : > { %v601_v39 = vadd.f32 %v600_v37, %v572_v36  ;;  %v545_v47 = vadd.f32 %v544_v41, %v516_v42 }
  0xe9   : > { %v614_v40 = vpack.c.bf16 %v601_v39, %v543_v35 }
  0xea   : > { %v687_v6 = vld [vmem:[%s1377_s23 + $0x18] sm:$0xff] (%p1229_p9) }
  0xeb   : > { %622 = vst [vmem:[%s1377_s23 + $0x20] sm:$0xff] %v614_v40 }
  0xec   : > { %v573_v43 = vpop.f32.mrf.mxu2  ;;  %v518_v46 = vpop.f32.mrf.mxu0  ;;  %688 = vst [vmem:[%s638_s28 + $0x48] sm:$0xff] (%p1229_p9), %v687_v6 }
  0xed   : > { %v574_v44 = vadd.f32 %v573_v43, %v1373_v61  ;;  %v602_v45 = vpop.f32.mrf.mxu3  ;;  %v519_v50 = vadd.f32 %v518_v46, %v1370_v57  ;;  %v547_v51 = vpop.f32.mrf.mxu1 }
  0xef   : > { %v603_v48 = vadd.f32 %v602_v45, %v574_v44  ;;  %v548_v53 = vadd.f32 %v547_v51, %v519_v50 }
  0xf1   : > { %v615_v49 = vpack.c.bf16 %v603_v48, %v545_v47 }
  0xf2   : > { %v689_v7 = vld [vmem:[%s1377_s23 + $0x20] sm:$0xff] (%p1229_p9) }
  0xf3   : > { %623 = vst [vmem:[%s1377_s23 + $0x28] sm:$0xff] %v615_v49 }
  0xf4   : > { %v576_v52 = vpop.f32.mrf.mxu2  ;;  %v520_v58 = vpop.f32.mrf.mxu0  ;;  %690 = vst [vmem:[%s638_s28 + $0x60] sm:$0xff] (%p1229_p9), %v689_v7 }
  0xf5   : > { %v577_v54 = vadd.f32 %v576_v52, %v1373_v61  ;;  %v605_v55 = vpop.f32.mrf.mxu3  ;;  %v521_v60 = vadd.f32 %v520_v58, %v1370_v57  ;;  %v549_v0 = vpop.f32.mrf.mxu1  ;;  %v681_v57 = vld [vmem:[%s1377_s23] sm:$0xff] (%p1229_p9) }
  0xf6   : > { %682 = vst [vmem:[%s638_s28] sm:$0xff] (%p1229_p9), %v681_v57 }
  0xf7   : > { %v606_v56 = vadd.f32 %v605_v55, %v577_v54  ;;  %v550_v2 = vadd.f32 %v549_v0, %v521_v60 }
  0xf9   : > { %v616_v59 = vpack.c.bf16 %v606_v56, %v548_v53 }
  0xfa   : > { %v691_v8 = vld [vmem:[%s1377_s23 + $0x28] sm:$0xff] (%p1229_p9) }
  0xfb   : > { %624 = vst [vmem:[%s1377_s23 + $0x30] sm:$0xff] %v616_v59 }
  0xfc   : > { %v578_v62 = vpop.f32.mrf.mxu2  ;;  %692 = vst [vmem:[%s638_s28 + $0x78] sm:$0xff] (%p1229_p9), %v691_v8 }
  0xfd   : > { %v579_v63 = vadd.f32 %v578_v62, %v1373_v61  ;;  %v607_v1 = vpop.f32.mrf.mxu3  ;;  %v683_v61 = vld [vmem:[%s1377_s23 + $0x8] sm:$0xff] (%p1229_p9) }
  0xfe   : > { %684 = vst [vmem:[%s638_s28 + $0x18] sm:$0xff] (%p1229_p9), %v683_v61 }
  0xff   : > { %v608_v3 = vadd.f32 %v607_v1, %v579_v63  ;;  %632 = sbr.rel (!%p1229_p9) target bundleno = 268 (0x10c), region = 40 }
 0x101   : > { %v617_v4 = vpack.c.bf16 %v608_v3, %v550_v2 }
 0x102   : > { %v693_v9 = vld [vmem:[%s1377_s23 + $0x30] sm:$0xff] (%p1229_p9) }
 0x103   : > { %625 = vst [vmem:[%s1377_s23 + $0x38] sm:$0xff] %v617_v4 }
 0x104   : > { %694 = vst [vmem:[%s638_s28 + $0x90] sm:$0xff] %v693_v9 }
 0x10a   : > { %v695_v10 = vld [vmem:[%s1377_s23 + $0x38] sm:$0xff] }
 0x10b   : > { %696 = vst [vmem:[%s638_s28 + $0xa8] sm:$0xff] %v695_v10 }
 0x10c PF: > { %s16_s17 = sadd.s32 1, %s1154_s17   ;;  %s1440_s12 = smov %s1138_s13 }
 0x10d   : > { %p13_p2 = scmp.ge.s32.totalorder %s16_s17, 5   ;;  %s1441_s13 = smov %s1142_s14 }
 0x10e   : > { %s1442_s14 = smov %s1227_s24  ;;  %s1443_s15 = smov %s1150_s16 }
 0x10f   : > { %s1444_s16 = smov %s1446_s19  ;;  %15 = sbr.rel (!%p13_p2) target bundleno = 4 (0x4), region = 116 }
 0x114   :  { %712 = vsyncpa [#allocation3], 1 }
 0x115   :  { %714 = vsyncpa [#allocation3 + $0x1], 1 }

// kernel: potry_forward.5
= control target key start
LH: loop header
LB: loop body
LE: loop exit
PB: predicated region body
PF: predicated region fallthrough
CT: control target
= control target key end

     0   :  { %s754_s12 = smov 0   ;;  %s756_s13 = smov 0   ;;  %s864_s0 = inlined_call_operand.vmem [shape: bf16[64,32], index: 0, kind: input, shape index: {}]   ;;  %s865_s1 = inlined_call_operand.vmem [shape: bf16[32,768], index: 1, kind: input, shape index: {}]   ;;  %s866_s2 = inlined_call_operand.vmem [shape: f32[1,768], index: 2, kind: input, shape index: {}]   ;;  %s867_s3 = inlined_call_operand.vmem [shape: bf16[64,768], index: 3, kind: output, shape index: {}]  }
   0x1   :  { %s758_s14 = smov 0   ;;  %s760_s15 = smov 0  }
   0x2   :  { %s762_s16 = smov 0  }
   0x3 LB: > { %s25_s17 = sadd.s32 1, %s728_s15  ;;  %s583_s18 = sadd.s32 4294967295, %s732_s16   ;;  %s732_s16 = sphi %s762_s16, %s13_s16   ;;  %s728_s15 = sphi %s760_s15, %s872_s15   ;;  %s724_s14 = sphi %s758_s14, %s871_s14   ;;  %s720_s13 = sphi %s756_s13, %s870_s13   ;;  %s716_s12 = sphi %s754_s12, %s869_s12  }
   0x4   : > { %p27_p0 = scmp.ge.s32.totalorder %s25_s17, 3  ;;  %p65_p1 = scmp.ne.s32.totalorder %s720_s13, %s716_s12 }
   0x5   : > { %p66_p2 = scmp.eq.s32.totalorder %s732_s16, 0  ;;  %p123_p4 = scmp.eq.s32.totalorder %s583_s18, 2 }
   0x6   : > { %s874_s17 = smov (%p27_p0, %s25_s17), 0  ;;  %s58_s20 = sadd.s32 1, %s720_s13 }
   0x7   : > { %p67_p3 = por %p66_p2, %p65_p1  ;;  %s55_s19 = ssub.s32 %s728_s15, %s874_s17 }
   0x8   : > { %p56_p5 = scmp.eq.s32.totalorder %s55_s19, 0  ;;  %p789_p6 = por %p123_p4, %p65_p1 }
   0x9   : > { %p587_p7 = scmp.ge.s32.totalorder %s732_s16, 3 }
   0xa   : > { %s794_s22 = scalar_select %p56_p5, %s720_s13, %s58_s20  }
   0xb   : > { %154 = sbr.rel (%p587_p7) target bundleno = 24 (0x18), region = 20 }
  0x10   : > { %157 = sbr.rel (!%p67_p3) target bundleno = 24 (0x18), region = 24  ;;  %s159_s23 = sand.u32 (%p67_p3), 1, %s720_s13  }
  0x11   : > { %s640_s24 = sshll.u32 (%p67_p3), %s728_s15, 3  ;;  %s588_s25 = sshll.u32 (%p67_p3), %s159_s23, 5 }
  0x12   : > { %s164_s28 = scalar_lea.vmem (%p67_p3), %s865_s1, %s640_s24  ;;  %s161_s29 = scalar_lea.vmem (%p67_p3), [#allocation2], %s588_s25 }
  0x13   : > { %v199_v0 = vld [vmem:[%s164_s28] sm:$0xff] (%p67_p3)  ;;  %v201_v1 = vld [vmem:[%s164_s28 + $0x18] sm:$0xff] (%p67_p3)  ;;  %v203_v2 = vld [vmem:[%s164_s28 + $0x30] sm:$0xff] (%p67_p3) }
  0x14   : > { %200 = vst [vmem:[%s161_s29] sm:$0xff] (%p67_p3), %v199_v0  ;;  %v205_v3 = vld [vmem:[%s164_s28 + $0x48] sm:$0xff] (%p67_p3) }
  0x15   : > { %202 = vst [vmem:[%s161_s29 + $0x8] sm:$0xff] %v201_v1 }
  0x16   : > { %204 = vst [vmem:[%s161_s29 + $0x10] sm:$0xff] %v203_v2 }
  0x17   : > { %206 = vst [vmem:[%s161_s29 + $0x18] sm:$0xff] %v205_v3 }
  0x18 PF: > { %p591_p8 = scmp.ge.s32.totalorder %s732_s16, 1  ;;  %p219_p9 = scmp.lt.s32.totalorder %s732_s16, 4 }
  0x1a   : > { %p220_p10 = pnand %p591_p8, %p219_p9 }
  0x1b   : > { %s226_s30 = sand.u32 (!%p220_p10), 1, %s716_s12   ;;  %s594_s20 = sshll.u32 (!%p220_p10), %s724_s14, 1 }
  0x1c   : > { %223 = sbr.rel (%p220_p10) target bundleno = 213 (0xd5), region = 66  ;;  %s592_s4 = sshll.u32 (!%p220_p10), %s226_s30, 5 }
  0x1d   : > { %s228_s5 = scalar_lea.vmem (!%p220_p10), [#allocation2], %s592_s4  ;;  %p265_p11 = scmp.lt.s32.totalorder (!%p220_p10), %s594_s20, 5 }
  0x1e   : > { %s593_s26 = sshll.u32 (!%p220_p10), %s226_s30, 6 }
  0x1f   : > { %s825_s27 = scalar_lea.vmem (!%p220_p10), [#allocation3], %s593_s26 }
  0x21   : > { %v621_v4 = vld [vmem:[%s228_s5 + $0x10] sm:$0xf]  ;;  %v648_v5 = vld [vmem:[%s228_s5 + $0x14] sm:$0xf0]  ;;  %v647_v6 = vld [vmem:[%s228_s5 + $0x14] sm:$0xf] }
  0x22   : > { %v622_v7 = vor.u32 %v648_v5, %v621_v4  ;;  %v623_v8 = vld [vmem:[%s228_s5 + $0x18] sm:$0xf0]  ;;  %v613_v9 = vld [vmem:[%s228_s5] sm:$0xf]  ;;  %v646_v10 = vld [vmem:[%s228_s5 + $0x4] sm:$0xf0] }
  0x23   : > { %v626_v11 = vor.u32 %v647_v6, %v623_v8  ;;  %v645_v12 = vld [vmem:[%s228_s5 + $0x4] sm:$0xf]  ;;  %v615_v13 = vld [vmem:[%s228_s5 + $0x8] sm:$0xf0]  ;;  %v614_v14 = vor.u32 %v646_v10, %v613_v9  ;;  %v643_v17 = vld [vmem:[%s864_s0 + $0x10] sm:$0xff]  ;;  %vm330_vm0 = vcmask 261120  }
  0x24   : > { %349 = vmatpush.bf16.msra.mxu0 %v622_v7  ;;  %650 = vmatpush.bf16.msra.mxu2 %v622_v7  ;;  %v618_v15 = vor.u32 %v645_v12, %v615_v13  ;;  %v641_v16 = vld [vmem:[%s864_s0] sm:$0xff]  ;;  %v642_v18 = vld [vmem:[%s864_s0 + $0x8] sm:$0xff]  ;;  %v644_v19 = vld [vmem:[%s864_s0 + $0x18] sm:$0xff]  ;;  %s876_s20 = smov (!%p265_p11, %s594_s20), 5  ;;  %s649_s12 = sshll.u32 (%p789_p6), %s724_s14, 3 }
  0x25   : > { %378 = vmatpush.bf16.msra.mxu1 %v626_v11  ;;  %652 = vmatpush.bf16.msra.mxu3 %v626_v11  ;;  %s267_s25 = scalar_lea.vmem %s866_s2, %s876_s20  ;;  %s429_s30 = scalar_lea.vmem (%p789_p6), %s867_s3, %s649_s12 }
  0x26   : > { %v284_v20 = vld [vmem:[%s267_s25] sm:$0x3] }
  0x27   : > { %v286_v21 = vperm.slane %v284_v20, 0  ;;  %v287_v22 = vperm.slane %v284_v20, 1 }
  0x28   : > { %350 = vmatpush.bf16.msra.mxu0 %v614_v14  ;;  %651 = vmatpush.bf16.msra.mxu2 %v614_v14 }
  0x29   : > { %379 = vmatpush.bf16.msra.mxu1 %v618_v15  ;;  %653 = vmatpush.bf16.msra.mxu3 %v618_v15 }
  0x2b   : > { %627 = vmatmul.msk.bf16.vlgmr.msra.gmra.mxu0 %vm330_vm0, %v641_v16  ;;  %629 = vmatmul.msk.bf16.vlgmr.msra.gmra.mxu2 %vm330_vm0, %v643_v17 }
  0x2c   : > { %631 = vmatmul.msk.bf16.vlgmr.msra.gmra.mxu1 %vm330_vm0, %v641_v16  ;;  %633 = vmatmul.msk.bf16.vlgmr.msra.gmra.mxu3 %vm330_vm0, %v643_v17 }
  0x3b   : > { %628 = vmatmul.msk.bf16.gmra.mxu0 %vm330_vm0, %v642_v18  ;;  %630 = vmatmul.msk.bf16.gmra.mxu2 %vm330_vm0, %v644_v19 }
  0x3c   : > { %632 = vmatmul.msk.bf16.gmra.mxu1 %vm330_vm0, %v642_v18  ;;  %634 = vmatmul.msk.bf16.gmra.mxu3 %vm330_vm0, %v644_v19 }
  0xa8   : > { %v352_v23 = vpop.f32.mrf.mxu0 }
  0xa9   : > { %v353_v24 = vadd.f32 %v352_v23, %v286_v21  ;;  %v381_v25 = vpop.f32.mrf.mxu1 }
  0xaa   : > { %v382_v26 = vadd.f32 %v381_v25, %v287_v22 }
  0xac   : > { %v401_v27 = vpack.c.bf16 %v382_v26, %v353_v24 }
  0xae   : > { %409 = vst [vmem:[%s825_s27] sm:$0xff] %v401_v27  ;;  %v362_v28 = vpop.f32.mrf.mxu2 }
  0xaf   : > { %v363_v29 = vadd.f32 %v362_v28, %v286_v21  ;;  %v391_v30 = vpop.f32.mrf.mxu3 }
  0xb0   : > { %v392_v31 = vadd.f32 %v391_v30, %v287_v22  ;;  %v354_v32 = vpop.f32.mrf.mxu0 }
  0xb1   : > { %v355_v33 = vadd.f32 %v354_v32, %v286_v21  ;;  %v383_v34 = vpop.f32.mrf.mxu1 }
  0xb2   : > { %v405_v35 = vpack.c.bf16 %v392_v31, %v363_v29  ;;  %v384_v36 = vadd.f32 %v383_v34, %v287_v22 }
  0xb4   : > { %413 = vst [vmem:[%s825_s27 + $0x20] sm:$0xff] %v405_v35  ;;  %v402_v37 = vpack.c.bf16 %v384_v36, %v355_v33 }
  0xb5   : > { %v472_v63 = vld [vmem:[%s825_s27] sm:$0xff] (%p789_p6) }
  0xb6   : > { %410 = vst [vmem:[%s825_s27 + $0x8] sm:$0xff] %v402_v37  ;;  %v364_v38 = vpop.f32.mrf.mxu2 }
  0xb7   : > { %v365_v39 = vadd.f32 %v364_v38, %v286_v21  ;;  %v393_v40 = vpop.f32.mrf.mxu3  ;;  %473 = vst [vmem:[%s429_s30] sm:$0xff] (%p789_p6), %v472_v63 }
  0xb8   : > { %v394_v41 = vadd.f32 %v393_v40, %v287_v22  ;;  %v357_v42 = vpop.f32.mrf.mxu0 }
  0xb9   : > { %v358_v43 = vadd.f32 %v357_v42, %v286_v21  ;;  %v386_v44 = vpop.f32.mrf.mxu1 }
  0xba   : > { %v406_v45 = vpack.c.bf16 %v394_v41, %v365_v39  ;;  %v387_v46 = vadd.f32 %v386_v44, %v287_v22 }
  0xbb   : > { %v480_v3 = vld [vmem:[%s825_s27 + $0x20] sm:$0xff] (%p789_p6) }
  0xbc   : > { %414 = vst [vmem:[%s825_s27 + $0x28] sm:$0xff] %v406_v45  ;;  %v403_v47 = vpack.c.bf16 %v387_v46, %v358_v43 }
  0xbd   : > { %v474_v0 = vld [vmem:[%s825_s27 + $0x8] sm:$0xff] (%p789_p6)  ;;  %481 = vst [vmem:[%s429_s30 + $0x60] sm:$0xff] (%p789_p6), %v480_v3 }
  0xbe   : > { %411 = vst [vmem:[%s825_s27 + $0x10] sm:$0xff] %v403_v47  ;;  %v367_v48 = vpop.f32.mrf.mxu2 }
  0xbf   : > { %v368_v49 = vadd.f32 %v367_v48, %v286_v21  ;;  %v396_v50 = vpop.f32.mrf.mxu3  ;;  %475 = vst [vmem:[%s429_s30 + $0x18] sm:$0xff] (%p789_p6), %v474_v0 }
  0xc0   : > { %v397_v51 = vadd.f32 %v396_v50, %v287_v22  ;;  %v359_v52 = vpop.f32.mrf.mxu0 }
  0xc1   : > { %v360_v53 = vadd.f32 %v359_v52, %v286_v21  ;;  %v388_v54 = vpop.f32.mrf.mxu1 }
  0xc2   : > { %v407_v55 = vpack.c.bf16 %v397_v51, %v368_v49  ;;  %v389_v56 = vadd.f32 %v388_v54, %v287_v22 }
  0xc3   : > { %v482_v4 = vld [vmem:[%s825_s27 + $0x28] sm:$0xff] (%p789_p6) }
  0xc4   : > { %415 = vst [vmem:[%s825_s27 + $0x30] sm:$0xff] %v407_v55  ;;  %v404_v57 = vpack.c.bf16 %v389_v56, %v360_v53 }
  0xc5   : > { %v476_v1 = vld [vmem:[%s825_s27 + $0x10] sm:$0xff] (%p789_p6)  ;;  %483 = vst [vmem:[%s429_s30 + $0x78] sm:$0xff] (%p789_p6), %v482_v4 }
  0xc6   : > { %412 = vst [vmem:[%s825_s27 + $0x18] sm:$0xff] %v404_v57  ;;  %v369_v58 = vpop.f32.mrf.mxu2 }
  0xc7   : > { %v370_v59 = vadd.f32 %v369_v58, %v286_v21  ;;  %v398_v60 = vpop.f32.mrf.mxu3  ;;  %477 = vst [vmem:[%s429_s30 + $0x30] sm:$0xff] (%p789_p6), %v476_v1 }
  0xc8   : > { %v399_v61 = vadd.f32 %v398_v60, %v287_v22  ;;  %423 = sbr.rel (!%p789_p6) target bundleno = 213 (0xd5), region = 74 }
  0xca   : > { %v408_v62 = vpack.c.bf16 %v399_v61, %v370_v59 }
  0xcb   : > { %v484_v5 = vld [vmem:[%s825_s27 + $0x30] sm:$0xff] (%p789_p6) }
  0xcc   : > { %416 = vst [vmem:[%s825_s27 + $0x38] sm:$0xff] %v408_v62 }
  0xcd   : > { %v478_v2 = vld [vmem:[%s825_s27 + $0x18] sm:$0xff]  ;;  %485 = vst [vmem:[%s429_s30 + $0x90] sm:$0xff] %v484_v5 }
  0xce   : > { %479 = vst [vmem:[%s429_s30 + $0x48] sm:$0xff] %v478_v2 }
  0xd3   : > { %v486_v6 = vld [vmem:[%s825_s27 + $0x38] sm:$0xff] }
  0xd4   : > { %487 = vst [vmem:[%s429_s30 + $0xa8] sm:$0xff] %v486_v6 }
  0xd5 PF: > { %s13_s16 = sadd.s32 1, %s732_s16   ;;  %s869_s12 = smov %s720_s13 }
  0xd6   : > { %p10_p12 = scmp.ge.s32.totalorder %s13_s16, 5   ;;  %s870_s13 = smov %s794_s22 }
  0xd7   : > { %s871_s14 = smov %s728_s15  ;;  %s872_s15 = smov %s874_s17 }
  0xd8   :  { %12 = sbr.rel (!%p10_p12) target bundleno = 3 (0x3), region = 149 }

// kernel: potry_forward.9
= control target key start
LH: loop header
LB: loop body
LE: loop exit
PB: predicated region body
PF: predicated region fallthrough
CT: control target
= control target key end

     0   :  { %s544_s1 = inlined_call_operand.vmem [shape: bf16[256,128], index: 1, kind: input, shape index: {}]   ;;  %s545_s2 = inlined_call_operand.vmem [shape: f32[1,128], index: 2, kind: input, shape index: {}]   ;;  %s546_s0 = inlined_call_operand.vmem [shape: bf16[64,256], index: 0, kind: input, shape index: {}]   ;;  %s547_s3 = inlined_call_operand.vmem [shape: f32[64,128], index: 3, kind: output, shape index: {}]  }
   0x1   :  { %v375_v0 = vld [vmem:[%s544_s1 + $0x38] sm:$0xff]  ;;  %v374_v2 = vld [vmem:[%s544_s1 + $0x30] sm:$0xff]  ;;  %v373_v4 = vld [vmem:[%s544_s1 + $0x28] sm:$0xff] }
   0x2   :  { %v383_v1 = vld [vmem:[%s544_s1 + $0x78] sm:$0xff]  ;;  %194 = vmatpush.bf16.msra.mxu0 %v375_v0  ;;  %384 = vmatpush.bf16.msra.mxu2 %v375_v0  ;;  %v382_v3 = vld [vmem:[%s544_s1 + $0x70] sm:$0xff]  ;;  %v381_v5 = vld [vmem:[%s544_s1 + $0x68] sm:$0xff] }
   0x3   :  { %223 = vmatpush.bf16.msra.mxu1 %v383_v1  ;;  %392 = vmatpush.bf16.msra.mxu3 %v383_v1  ;;  %v372_v6 = vld [vmem:[%s544_s1 + $0x20] sm:$0xff]  ;;  %v371_v8 = vld [vmem:[%s544_s1 + $0x18] sm:$0xff]  ;;  %v370_v10 = vld [vmem:[%s544_s1 + $0x10] sm:$0xff] }
   0x4   :  { %v380_v7 = vld [vmem:[%s544_s1 + $0x60] sm:$0xff]  ;;  %v379_v9 = vld [vmem:[%s544_s1 + $0x58] sm:$0xff]  ;;  %v378_v11 = vld [vmem:[%s544_s1 + $0x50] sm:$0xff] }
   0x5   :  { %v369_v12 = vld [vmem:[%s544_s1 + $0x8] sm:$0xff]  ;;  %v368_v14 = vld [vmem:[%s544_s1] sm:$0xff]  ;;  %v274_v28 = vld [vmem:[%s546_s0 + $0x10] sm:$0xf] }
   0x6   :  { %195 = vmatpush.bf16.msra.mxu0 %v374_v2  ;;  %385 = vmatpush.bf16.msra.mxu2 %v374_v2  ;;  %v377_v13 = vld [vmem:[%s544_s1 + $0x48] sm:$0xff]  ;;  %v376_v15 = vld [vmem:[%s544_s1 + $0x40] sm:$0xff]  ;;  %v363_v29 = vld [vmem:[%s546_s0 + $0x14] sm:$0xf0] }
   0x7   :  { %224 = vmatpush.bf16.msra.mxu1 %v382_v3  ;;  %393 = vmatpush.bf16.msra.mxu3 %v382_v3  ;;  %v266_v16 = vld [vmem:[%s546_s0] sm:$0xf]  ;;  %v361_v17 = vld [vmem:[%s546_s0 + $0x4] sm:$0xf0]  ;;  %v360_v20 = vld [vmem:[%s546_s0 + $0x4] sm:$0xf]  ;;  %v275_v36 = vor.u32 %v363_v29, %v274_v28 }
   0x8   :  { %v282_v18 = vld [vmem:[%s546_s0 + $0x20] sm:$0xf]  ;;  %v365_v19 = vld [vmem:[%s546_s0 + $0x24] sm:$0xf0]  ;;  %v268_v21 = vld [vmem:[%s546_s0 + $0x8] sm:$0xf0]  ;;  %v267_v24 = vor.u32 %v361_v17, %v266_v16 }
   0x9   :  { %v364_v22 = vld [vmem:[%s546_s0 + $0x24] sm:$0xf]  ;;  %v284_v23 = vld [vmem:[%s546_s0 + $0x28] sm:$0xf0]  ;;  %v283_v25 = vor.u32 %v365_v19, %v282_v18  ;;  %v271_v26 = vor.u32 %v360_v20, %v268_v21  ;;  %v290_v30 = vld [vmem:[%s546_s0 + $0x30] sm:$0xf] }
   0xa   :  { %196 = vmatpush.bf16.msra.mxu0 %v373_v4  ;;  %386 = vmatpush.bf16.msra.mxu2 %v373_v4  ;;  %v287_v27 = vor.u32 %v364_v22, %v284_v23  ;;  %v367_v31 = vld [vmem:[%s546_s0 + $0x34] sm:$0xf0]  ;;  %v362_v32 = vld [vmem:[%s546_s0 + $0x14] sm:$0xf]  ;;  %v276_v33 = vld [vmem:[%s546_s0 + $0x18] sm:$0xf0] }
   0xb   :  { %225 = vmatpush.bf16.msra.mxu1 %v381_v5  ;;  %394 = vmatpush.bf16.msra.mxu3 %v381_v5  ;;  %v366_v34 = vld [vmem:[%s546_s0 + $0x34] sm:$0xf]  ;;  %v292_v35 = vld [vmem:[%s546_s0 + $0x38] sm:$0xf0]  ;;  %v291_v37 = vor.u32 %v367_v31, %v290_v30  ;;  %v279_v38 = vor.u32 %v362_v32, %v276_v33  ;;  %v400_v40 = vld [vmem:[%s545_s2] ss:$0 sm:$0xff] }
   0xc   :  { %v295_v39 = vor.u32 %v366_v34, %v292_v35 }
   0xe   :  { %197 = vmatpush.bf16.msra.mxu0 %v372_v6  ;;  %387 = vmatpush.bf16.msra.mxu2 %v372_v6 }
   0xf   :  { %226 = vmatpush.bf16.msra.mxu1 %v380_v7  ;;  %395 = vmatpush.bf16.msra.mxu3 %v380_v7 }
  0x12   :  { %198 = vmatpush.bf16.msra.mxu0 %v371_v8  ;;  %388 = vmatpush.bf16.msra.mxu2 %v371_v8 }
  0x13   :  { %227 = vmatpush.bf16.msra.mxu1 %v379_v9  ;;  %396 = vmatpush.bf16.msra.mxu3 %v379_v9 }
  0x16   :  { %199 = vmatpush.bf16.msra.mxu0 %v370_v10  ;;  %389 = vmatpush.bf16.msra.mxu2 %v370_v10 }
  0x17   :  { %228 = vmatpush.bf16.msra.mxu1 %v378_v11  ;;  %397 = vmatpush.bf16.msra.mxu3 %v378_v11 }
  0x1a   :  { %200 = vmatpush.bf16.msra.mxu0 %v369_v12  ;;  %390 = vmatpush.bf16.msra.mxu2 %v369_v12 }
  0x1b   :  { %229 = vmatpush.bf16.msra.mxu1 %v377_v13  ;;  %398 = vmatpush.bf16.msra.mxu3 %v377_v13 }
  0x1e   :  { %201 = vmatpush.bf16.msra.mxu0 %v368_v14  ;;  %391 = vmatpush.bf16.msra.mxu2 %v368_v14 }
  0x1f   :  { %230 = vmatpush.bf16.msra.mxu1 %v376_v15  ;;  %399 = vmatpush.bf16.msra.mxu3 %v376_v15 }
  0x21   :  { %202 = vmatmul.bf16.vlgmr.msra.gmra.mxu0 %v267_v24  ;;  %212 = vmatmul.bf16.vlgmr.msra.gmra.mxu2 %v283_v25 }
  0x22   :  { %231 = vmatmul.bf16.vlgmr.msra.gmra.mxu1 %v271_v26  ;;  %241 = vmatmul.bf16.vlgmr.msra.gmra.mxu3 %v287_v27 }
  0x31   :  { %207 = vmatmul.bf16.gmra.mxu0 %v275_v36  ;;  %217 = vmatmul.bf16.gmra.mxu2 %v291_v37 }
  0x32   :  { %236 = vmatmul.bf16.gmra.mxu1 %v279_v38  ;;  %246 = vmatmul.bf16.gmra.mxu3 %v295_v39 }
  0x9e   :  { %v203_v41 = vpop.f32.mrf.mxu0 }
  0x9f   :  { %v204_v42 = vadd.f32 %v400_v40, %v203_v41  ;;  %v232_v43 = vpop.f32.mrf.mxu1 }
  0xa1   :  { %v233_v44 = vadd.f32 %v232_v43, %v204_v42 }
  0xa3   :  { %252 = vst [vmem:[%s547_s3] sm:$0xff] %v233_v44 }
  0xa4   :  { %v213_v45 = vpop.f32.mrf.mxu2 }
  0xa5   :  { %v214_v46 = vadd.f32 %v400_v40, %v213_v45  ;;  %v242_v47 = vpop.f32.mrf.mxu3 }
  0xa6   :  { %v205_v48 = vpop.f32.mrf.mxu0 }
  0xa7   :  { %v243_v49 = vadd.f32 %v242_v47, %v214_v46  ;;  %v206_v50 = vadd.f32 %v400_v40, %v205_v48  ;;  %v234_v51 = vpop.f32.mrf.mxu1 }
  0xa9   :  { %256 = vst [vmem:[%s547_s3 + $0x20] sm:$0xff] %v243_v49  ;;  %v235_v52 = vadd.f32 %v234_v51, %v206_v50 }
  0xab   :  { %253 = vst [vmem:[%s547_s3 + $0x8] sm:$0xff] %v235_v52 }
  0xac   :  { %v215_v53 = vpop.f32.mrf.mxu2 }
  0xad   :  { %v216_v54 = vadd.f32 %v400_v40, %v215_v53  ;;  %v244_v55 = vpop.f32.mrf.mxu3 }
  0xae   :  { %v208_v56 = vpop.f32.mrf.mxu0 }
  0xaf   :  { %v245_v57 = vadd.f32 %v244_v55, %v216_v54  ;;  %v209_v58 = vadd.f32 %v400_v40, %v208_v56  ;;  %v237_v59 = vpop.f32.mrf.mxu1 }
  0xb1   :  { %257 = vst [vmem:[%s547_s3 + $0x28] sm:$0xff] %v245_v57  ;;  %v238_v60 = vadd.f32 %v237_v59, %v209_v58 }
  0xb3   :  { %254 = vst [vmem:[%s547_s3 + $0x10] sm:$0xff] %v238_v60 }
  0xb4   :  { %v218_v61 = vpop.f32.mrf.mxu2 }
  0xb5   :  { %v219_v62 = vadd.f32 %v400_v40, %v218_v61  ;;  %v247_v63 = vpop.f32.mrf.mxu3 }
  0xb6   :  { %v210_v0 = vpop.f32.mrf.mxu0 }
  0xb7   :  { %v248_v1 = vadd.f32 %v247_v63, %v219_v62  ;;  %v211_v2 = vadd.f32 %v400_v40, %v210_v0  ;;  %v239_v3 = vpop.f32.mrf.mxu1 }
  0xb9   :  { %258 = vst [vmem:[%s547_s3 + $0x30] sm:$0xff] %v248_v1  ;;  %v240_v4 = vadd.f32 %v239_v3, %v211_v2 }
  0xbb   :  { %255 = vst [vmem:[%s547_s3 + $0x18] sm:$0xff] %v240_v4 }
  0xbc   :  { %v220_v5 = vpop.f32.mrf.mxu2 }
  0xbd   :  { %v221_v6 = vadd.f32 %v400_v40, %v220_v5  ;;  %v249_v7 = vpop.f32.mrf.mxu3 }
  0xbf   :  { %v250_v8 = vadd.f32 %v249_v7, %v221_v6 }
  0xc1   :  { %259 = vst [vmem:[%s547_s3 + $0x38] sm:$0xff] %v250_v8 }

// kernel: potry_forward.6
= control target key start
LH: loop header
LB: loop body
LE: loop exit
PB: predicated region body
PF: predicated region fallthrough
CT: control target
= control target key end

     0   :  { %11 = vsyncpa [#allocation5], 0  ;;  %s4891_s0 = inlined_call_operand.vmem [shape: bf16[8,8,768], index: 0, kind: input, shape index: {}]   ;;  %s4892_s1 = inlined_call_operand.vmem [shape: f32[2,8,128], index: 1, kind: input, shape index: {}]   ;;  %s4893_s2 = inlined_call_operand.hbm [shape: bf16[2,128,384], index: 2, kind: input, shape index: {}]   ;;  %s4894_s3 = inlined_call_operand.vmem [shape: f32[2,1,384], index: 3, kind: input, shape index: {}]   ;;  %s4895_s4 = inlined_call_operand.vmem [shape: bf16[8,8,256], index: 4, kind: output, shape index: {0}]   ;;  %s4896_s5 = inlined_call_operand.vmem [shape: f32[2,8,128], index: 5, kind: output, shape index: {1}]  }
   0x1   :  { %13 = vsyncpa [#allocation5 + $0x1], 0  ;;  %s4142_s18 = smov 0   ;;  %s4144_s19 = smov 0  }
   0x2   :  { %s4146_s20 = smov 0   ;;  %s4148_s21 = smov 0  }
   0x3   :  { %s4150_s22 = smov 0   ;;  %s4152_s23 = smov 0  }
   0x4 LB: > { %s2861_s24 = sadd.s32 4294967295, %s4108_s23   ;;  %s31_s25 = sadd.s32 1, %s4104_s22  ;;  %s4108_s23 = sphi %s4152_s23, %s19_s23   ;;  %s4104_s22 = sphi %s4150_s22, %s4904_s22   ;;  %s4100_s21 = sphi %s4148_s21, %s4903_s21   ;;  %s4096_s20 = sphi %s4146_s20, %s4902_s20   ;;  %s4092_s19 = sphi %s4144_s19, %s4901_s19   ;;  %s4088_s18 = sphi %s4142_s18, %s4900_s18  }
   0x5   : > { %p33_p0 = scmp.ge.s32.totalorder %s31_s25, 2  ;;  %s50_s26 = sadd.s32 1, %s4096_s20 }
   0x6   : > { %p57_p1 = scmp.ne.s32.totalorder %s4096_s20, %s4092_s19  ;;  %p58_p2 = scmp.eq.s32.totalorder %s4108_s23, 0 }
   0x7   : > { %s4906_s25 = smov (%p33_p0, %s31_s25), 0  ;;  %p115_p4 = scmp.ne.s32.totalorder %s4092_s19, %s4088_s18 }
   0x8   : > { %p4178_p3 = por %p58_p2, %p57_p1  ;;  %s46_s28 = ssub.s32 %s4104_s22, %s4906_s25 }
   0x9   : > { %p116_p5 = scmp.eq.s32.totalorder %s2861_s24, 0  ;;  %p48_p6 = scmp.eq.s32.totalorder %s46_s28, 0 }
   0xa   : > { %p177_p7 = scmp.eq.s32.totalorder %s2861_s24, 1  ;;  %p2864_p10 = scmp.ge.s32.totalorder %s4108_s23, 2 }
   0xb   : > { %p4185_p8 = por %p116_p5, %p115_p4 }
   0xc   : > { %s4190_s30 = scalar_select %p48_p6, %s4096_s20, %s50_s26  }
   0xd   : > { %p4192_p9 = por %p177_p7, %p57_p1  ;;  %225 = sbr.rel (%p2864_p10) target bundleno = 45 (0x2d), region = 16 }
  0x12   : > { %228 = sbr.rel (!%p4178_p3) target bundleno = 39 (0x27), region = 20  ;;  %s230_s7 = sand.u32 (%p4178_p3), 1, %s4096_s20  }
  0x13   : > { %s3691_s8 = smul.u32 (%p4178_p3), 12, %s4104_s22 }
  0x14   : > { %s3892_s9 = smul.u32 (%p4178_p3), 96, %s230_s7 }
  0x15   : > { %s4204_s12 = scalar_lea.vmem (%p4178_p3), %s4891_s0, %s3691_s8 }
  0x16   : > { %v258_v0 = vld [vmem:[%s4204_s12] sm:$0xff] (%p4178_p3)  ;;  %v260_v1 = vld [vmem:[%s4204_s12 + $0x18] sm:$0xff] (%p4178_p3)  ;;  %v262_v2 = vld [vmem:[%s4204_s12 + $0x30] sm:$0xff] (%p4178_p3)  ;;  %s232_s13 = scalar_lea.vmem (%p4178_p3), [#allocation3], %s3892_s9 }
  0x17   : > { %259 = vst [vmem:[%s232_s13] sm:$0xff] %v258_v0  ;;  %v264_v3 = vld [vmem:[%s4204_s12 + $0x48] sm:$0xff]  ;;  %v266_v4 = vld [vmem:[%s4204_s12 + $0x60] sm:$0xff]  ;;  %v268_v5 = vld [vmem:[%s4204_s12 + $0x78] sm:$0xff] }
  0x18   : > { %261 = vst [vmem:[%s232_s13 + $0xc] sm:$0xff] %v260_v1  ;;  %v270_v6 = vld [vmem:[%s4204_s12 + $0x90] sm:$0xff]  ;;  %v272_v7 = vld [vmem:[%s4204_s12 + $0xa8] sm:$0xff]  ;;  %v2868_v9 = vld [vmem:[%s4204_s12 + $0x20] sm:$0xf] }
  0x19   : > { %263 = vst [vmem:[%s232_s13 + $0x18] sm:$0xff] %v262_v2  ;;  %v2866_v8 = vld [vmem:[%s4204_s12 + $0x8] sm:$0xf]  ;;  %v2870_v10 = vld [vmem:[%s4204_s12 + $0x38] sm:$0xf] }
  0x1a   : > { %265 = vst [vmem:[%s232_s13 + $0x24] sm:$0xff] %v264_v3  ;;  %v2872_v11 = vld [vmem:[%s4204_s12 + $0x50] sm:$0xf]  ;;  %v2874_v12 = vld [vmem:[%s4204_s12 + $0x68] sm:$0xf] }
  0x1b   : > { %267 = vst [vmem:[%s232_s13 + $0x30] sm:$0xff] %v266_v4  ;;  %v2876_v13 = vld [vmem:[%s4204_s12 + $0x80] sm:$0xf]  ;;  %v2878_v14 = vld [vmem:[%s4204_s12 + $0x98] sm:$0xf] }
  0x1c   : > { %269 = vst [vmem:[%s232_s13 + $0x3c] sm:$0xff] %v268_v5  ;;  %v2880_v15 = vld [vmem:[%s4204_s12 + $0xb0] sm:$0xf] }
  0x1d   : > { %271 = vst [vmem:[%s232_s13 + $0x48] sm:$0xff] %v270_v6 }
  0x1e   : > { %273 = vst [vmem:[%s232_s13 + $0x54] sm:$0xff] %v272_v7 }
  0x1f   : > { %2867 = vst [vmem:[%s232_s13 + $0x8] sm:$0xf] %v2866_v8 }
  0x20   : > { %2869 = vst [vmem:[%s232_s13 + $0x14] sm:$0xf] %v2868_v9 }
  0x21   : > { %2871 = vst [vmem:[%s232_s13 + $0x20] sm:$0xf] %v2870_v10 }
  0x22   : > { %2873 = vst [vmem:[%s232_s13 + $0x2c] sm:$0xf] %v2872_v11 }
  0x23   : > { %2875 = vst [vmem:[%s232_s13 + $0x38] sm:$0xf] %v2874_v12 }
  0x24   : > { %2877 = vst [vmem:[%s232_s13 + $0x44] sm:$0xf] %v2876_v13 }
  0x25   : > { %2879 = vst [vmem:[%s232_s13 + $0x50] sm:$0xf] %v2878_v14 }
  0x26   : > { %2881 = vst [vmem:[%s232_s13 + $0x5c] sm:$0xf] %v2880_v15 }
  0x27 PF: > { %s311_s14 = sand.u32 1, %s4096_s20   ;;  %s3894_s15 = smul.u32 192, %s4104_s22 }
  0x28   : > { %s3893_s16 = smul.u32 192, %s311_s14  ;;  %s312_s8 = scalar_lea.sflag [#allocation5], %s311_s14 }
  0x29   : > { %s320_s24 = scalar_lea.hbm %s4893_s2, %s3894_s15  ;;  %s4110_s9 = smov 192  }
  0x2a   : > { %s321_s26 = sshll.u32 %s320_s24, 4  ;;  %s315_s28 = scalar_lea.vmem [#allocation4], %s3893_s16  ;;  %s322_s26 = int_to_ptr.hbm [resolvable:$true] %s321_s26 }
  0x2b   : > { %s323_s7 = sshll.u32 %s315_s28, 4  ;;  %s4111_s10 = smov 12   ;;  %s324_s7 = int_to_ptr.vmem [resolvable:$true] %s323_s7 }
  0x2c   : > { %3898 = dma.hbm_to_vmem [thread:$0]  (%p4178_p3), %s322_s26, 3072, %s324_s7, %s312_s8, %s4110_s9, %s4110_s9, %s4111_s10  }
  0x2d PF: > { %p2883_p11 = scmp.ge.s32.totalorder %s4108_s23, 1  ;;  %p338_p12 = scmp.lt.s32.totalorder %s4108_s23, 3 }
  0x2f   : > { %p339_p13 = pnand %p2883_p11, %p338_p12 }
  0x30   : > { %s4232_s11 = sand.u32 (!%p339_p13), 1, %s4092_s19  }
  0x31   : > { %342 = sbr.rel (%p339_p13) target bundleno = 1545 (0x609), region = 58  ;;  %s352_s27 = scalar_lea.sflag (!%p339_p13), [#allocation5], %s4232_s11 }
  0x32   : > { %s3895_s12 = smul.u32 (!%p339_p13), 96, %s4232_s11 }
  0x33   : > { %s3896_s13 = smul.u32 (!%p339_p13), 192, %s4232_s11 }
  0x34   : > { %s4236_s14 = scalar_lea.vmem (!%p339_p13), [#allocation3], %s3895_s12 }
  0x35   : > { %s4239_s15 = scalar_lea.vmem (!%p339_p13), [#allocation4], %s3896_s13 }
  0x36   : > { %4083 = dma.done.wait (%p4185_p8), %s352_s27, 3072  }
  0x37   : > { %4085 = vsyncadd (%p4185_p8), %s352_s27, 4294964224  ;;  %v2974_v16 = vld [vmem:[%s4239_s15 + $0xa8] sm:$0xf]  ;;  %v3715_v17 = vld [vmem:[%s4239_s15 + $0xb0] sm:$0xf0]  ;;  %p405_p0 = scmp.lt.s32.totalorder %s4100_s21, 1 }
  0x38   : > { %v3714_v18 = vld [vmem:[%s4239_s15 + $0xac] sm:$0xf]  ;;  %v2975_v19 = vor.u32 %v3715_v17, %v2974_v16  ;;  %v2976_v20 = vld [vmem:[%s4239_s15 + $0xb4] sm:$0xf0]  ;;  %v2962_v21 = vld [vmem:[%s4239_s15 + $0x90] sm:$0xf] }
  0x39   : > { %v3712_v22 = vld [vmem:[%s4239_s15 + $0x98] sm:$0xf0]  ;;  %v2979_v23 = vor.u32 %v3714_v18, %v2976_v20  ;;  %v3711_v24 = vld [vmem:[%s4239_s15 + $0x94] sm:$0xf]  ;;  %v2964_v25 = vld [vmem:[%s4239_s15 + $0x9c] sm:$0xf0] }
  0x3a   : > { %606 = vmatpush.bf16.msra.mxu0 %v2975_v19  ;;  %v2963_v26 = vor.u32 %v3712_v22, %v2962_v21  ;;  %v2967_v27 = vor.u32 %v3711_v24, %v2964_v25  ;;  %v2950_v28 = vld [vmem:[%s4239_s15 + $0x78] sm:$0xf]  ;;  %v3709_v29 = vld [vmem:[%s4239_s15 + $0x80] sm:$0xf0]  ;;  %v3708_v30 = vld [vmem:[%s4239_s15 + $0x7c] sm:$0xf] }
  0x3b   : > { %619 = vmatpush.bf16.msra.mxu1 %v2979_v23  ;;  %v2952_v31 = vld [vmem:[%s4239_s15 + $0x84] sm:$0xf0]  ;;  %v2982_v32 = vld [vmem:[%s4239_s15 + $0xb0] sm:$0xf]  ;;  %v2951_v33 = vor.u32 %v3709_v29, %v2950_v28  ;;  %v3716_v34 = vld [vmem:[%s4239_s15 + $0xb8] sm:$0xf0] }
  0x3c   : > { %v2955_v35 = vor.u32 %v3708_v30, %v2952_v31  ;;  %v2938_v36 = vld [vmem:[%s4239_s15 + $0x60] sm:$0xf]  ;;  %v3706_v37 = vld [vmem:[%s4239_s15 + $0x68] sm:$0xf0]  ;;  %v2983_v38 = vor.u32 %v3716_v34, %v2982_v32  ;;  %v2970_v39 = vld [vmem:[%s4239_s15 + $0x98] sm:$0xf] }
  0x3d   : > { %v3705_v40 = vld [vmem:[%s4239_s15 + $0x64] sm:$0xf]  ;;  %v2940_v41 = vld [vmem:[%s4239_s15 + $0x6c] sm:$0xf0]  ;;  %v2939_v44 = vor.u32 %v3706_v37, %v2938_v36  ;;  %v2958_v45 = vld [vmem:[%s4239_s15 + $0x80] sm:$0xf] }
  0x3e   : > { %607 = vmatpush.bf16.msra.mxu0 %v2963_v26  ;;  %v3713_v42 = vld [vmem:[%s4239_s15 + $0xa0] sm:$0xf0]  ;;  %632 = vmatpush.bf16.msra.mxu2 %v2983_v38  ;;  %v3710_v46 = vld [vmem:[%s4239_s15 + $0x88] sm:$0xf0]  ;;  %v2943_v47 = vor.u32 %v3705_v40, %v2940_v41  ;;  %v2926_v48 = vld [vmem:[%s4239_s15 + $0x48] sm:$0xf] }
  0x3f   : > { %620 = vmatpush.bf16.msra.mxu1 %v2967_v27  ;;  %v2971_v43 = vor.u32 %v3713_v42, %v2970_v39  ;;  %v3703_v49 = vld [vmem:[%s4239_s15 + $0x50] sm:$0xf0]  ;;  %v3702_v50 = vld [vmem:[%s4239_s15 + $0x4c] sm:$0xf]  ;;  %v2928_v51 = vld [vmem:[%s4239_s15 + $0x54] sm:$0xf0]  ;;  %v2959_v52 = vor.u32 %v3710_v46, %v2958_v45 }
  0x40   : > { %v2927_v53 = vor.u32 %v3703_v49, %v2926_v48  ;;  %v2946_v54 = vld [vmem:[%s4239_s15 + $0x68] sm:$0xf]  ;;  %v3707_v55 = vld [vmem:[%s4239_s15 + $0x70] sm:$0xf0]  ;;  %v2931_v56 = vor.u32 %v3702_v50, %v2928_v51  ;;  %v2914_v57 = vld [vmem:[%s4239_s15 + $0x30] sm:$0xf] }
  0x41   : > { %v3700_v58 = vld [vmem:[%s4239_s15 + $0x38] sm:$0xf0]  ;;  %v3699_v59 = vld [vmem:[%s4239_s15 + $0x34] sm:$0xf]  ;;  %v2916_v60 = vld [vmem:[%s4239_s15 + $0x3c] sm:$0xf0]  ;;  %v2947_v61 = vor.u32 %v3707_v55, %v2946_v54 }
  0x42   : > { %608 = vmatpush.bf16.msra.mxu0 %v2951_v33  ;;  %633 = vmatpush.bf16.msra.mxu2 %v2971_v43  ;;  %s4279_s29 = scalar_select %p405_p0, %s4100_s21, 1  ;;  %v2915_v62 = vor.u32 %v3700_v58, %v2914_v57  ;;  %v2934_v63 = vld [vmem:[%s4239_s15 + $0x50] sm:$0xf]  ;;  %v3704_v0 = vld [vmem:[%s4239_s15 + $0x58] sm:$0xf0]  ;;  %v2919_v1 = vor.u32 %v3699_v59, %v2916_v60 }
  0x43   : > { %621 = vmatpush.bf16.msra.mxu1 %v2955_v35  ;;  %v2902_v2 = vld [vmem:[%s4239_s15 + $0x18] sm:$0xf]  ;;  %v3697_v3 = vld [vmem:[%s4239_s15 + $0x20] sm:$0xf0]  ;;  %v3696_v4 = vld [vmem:[%s4239_s15 + $0x1c] sm:$0xf]  ;;  %v2935_v6 = vor.u32 %v3704_v0, %v2934_v63 }
  0x44   : > { %v2904_v5 = vld [vmem:[%s4239_s15 + $0x24] sm:$0xf0]  ;;  %s2885_s16 = sshll.u32 %s4279_s29, 3  ;;  %v2903_v7 = vor.u32 %v3697_v3, %v2902_v2  ;;  %v2922_v8 = vld [vmem:[%s4239_s15 + $0x38] sm:$0xf]  ;;  %p423_p1 = scmp.eq.s32.totalorder %s4100_s21, 1 }
  0x45   : > { %v3701_v9 = vld [vmem:[%s4239_s15 + $0x40] sm:$0xf0]  ;;  %v2907_v10 = vor.u32 %v3696_v4, %v2904_v5  ;;  %v2890_v11 = vld [vmem:[%s4239_s15] sm:$0xf]  ;;  %v3694_v12 = vld [vmem:[%s4239_s15 + $0x8] sm:$0xf0]  ;;  %s408_s24 = scalar_lea.vmem %s4892_s1, %s2885_s16 }
  0x46   : > { %609 = vmatpush.bf16.msra.mxu0 %v2939_v44  ;;  %634 = vmatpush.bf16.msra.mxu2 %v2959_v52  ;;  %v3693_v13 = vld [vmem:[%s4239_s15 + $0x4] sm:$0xf]  ;;  %v2892_v14 = vld [vmem:[%s4239_s15 + $0xc] sm:$0xf0]  ;;  %v2923_v15 = vor.u32 %v3701_v9, %v2922_v8  ;;  %v2891_v16 = vor.u32 %v3694_v12, %v2890_v11  ;;  %v2910_v18 = vld [vmem:[%s4239_s15 + $0x20] sm:$0xf] }
  0x47   : > { %622 = vmatpush.bf16.msra.mxu1 %v2943_v47  ;;  %v4299_v17 = vld [vmem:[%s408_s24] sm:$0xff]  ;;  %v3698_v19 = vld [vmem:[%s4239_s15 + $0x28] sm:$0xf0]  ;;  %v2895_v20 = vor.u32 %v3693_v13, %v2892_v14  ;;  %v2898_v23 = vld [vmem:[%s4239_s15 + $0x8] sm:$0xf]  ;;  %s3897_s28 = smul.u32 3, %s4279_s29 }
  0x48   : > { %v437_v21 = vpack.c.bf16 %v4299_v17, %v4299_v17  ;;  %v2911_v22 = vor.u32 %v3698_v19, %v2910_v18  ;;  %v3695_v24 = vld [vmem:[%s4239_s15 + $0x10] sm:$0xf0]  ;;  %s4310_s26 = scalar_select %p423_p1, 7, 0  ;;  %v3074_v26 = vld [vmem:[%s4239_s15 + $0xa8] sm:$0xf] }
  0x49   : > { %v2899_v25 = vor.u32 %v3695_v24, %v2898_v23  ;;  %v3740_v27 = vld [vmem:[%s4239_s15 + $0xb0] sm:$0xf0]  ;;  %v3739_v28 = vld [vmem:[%s4239_s15 + $0xac] sm:$0xf]  ;;  %v3076_v30 = vld [vmem:[%s4239_s15 + $0xb4] sm:$0xf0]  ;;  %s4326_s12 = scalar_lea.vmem %s4894_s3, %s3897_s28 }
  0x4a   : > { %610 = vmatpush.bf16.msra.mxu0 %v2927_v53  ;;  %635 = vmatpush.bf16.msra.mxu2 %v2947_v61  ;;  %s3692_s7 = smul.u32 12, %s4310_s26  ;;  %v3075_v29 = vor.u32 %v3740_v27, %v3074_v26  ;;  %v3082_v31 = vld [vmem:[%s4239_s15 + $0xb0] sm:$0xf]  ;;  %v3741_v32 = vld [vmem:[%s4239_s15 + $0xb8] sm:$0xf0]  ;;  %v3079_v33 = vor.u32 %v3739_v28, %v3076_v30  ;;  %s2884_s13 = sshll.u32 %s4232_s11, 5 }
  0x4b   : > { %623 = vmatpush.bf16.msra.mxu1 %v2931_v56  ;;  %v3083_v34 = vor.u32 %v3741_v32, %v3082_v31  ;;  %v3062_v35 = vld [vmem:[%s4239_s15 + $0x90] sm:$0xf]  ;;  %v3737_v36 = vld [vmem:[%s4239_s15 + $0x98] sm:$0xf0]  ;;  %v3736_v37 = vld [vmem:[%s4239_s15 + $0x94] sm:$0xf] }
  0x4c   : > { %s4321_s8 = scalar_lea.vmem %s4236_s14, %s3692_s7 [#allocation3]  ;;  %875 = vmatpush.bf16.msra.mxu3 %v3075_v29  ;;  %v3063_v38 = vor.u32 %v3737_v36, %v3062_v35  ;;  %v3064_v39 = vld [vmem:[%s4239_s15 + $0x9c] sm:$0xf0]  ;;  %v3070_v40 = vld [vmem:[%s4239_s15 + $0x98] sm:$0xf]  ;;  %v3738_v41 = vld [vmem:[%s4239_s15 + $0xa0] sm:$0xf0] }
  0x4d   : > { %v435_v42 = vld [vmem:[%s4321_s8] sm:$0xff]  ;;  %v3067_v43 = vor.u32 %v3736_v37, %v3064_v39  ;;  %v3071_v44 = vor.u32 %v3738_v41, %v3070_v40  ;;  %v3050_v46 = vld [vmem:[%s4239_s15 + $0x78] sm:$0xf]  ;;  %v3733_v48 = vld [vmem:[%s4239_s15 + $0x7c] sm:$0xf]  ;;  %s2986_s27 = sshll.u32 %s4310_s26, 2 }
  0x4e   : > { %611 = vmatpush.bf16.msra.mxu0 %v2915_v62  ;;  %636 = vmatpush.bf16.msra.mxu2 %v2935_v6  ;;  %v4336_v45 = vld [vmem:[%s4326_s12] sm:$0x7]  ;;  %v3734_v47 = vld [vmem:[%s4239_s15 + $0x80] sm:$0xf0]  ;;  %v667_v49 = vrot.slane %v435_v42, 4  ;;  %v645_v58 = vunpack.c.l.bf16 %v435_v42  ;;  %s4383_s17 = scalar_lea.vmem [#allocation6], %s2884_s13 }
  0x4f   : > { %624 = vmatpush.bf16.msra.mxu1 %v2919_v1  ;;  %v3051_v50 = vor.u32 %v3734_v47, %v3050_v46  ;;  %v3052_v51 = vld [vmem:[%s4239_s15 + $0x84] sm:$0xf0]  ;;  %v472_v52 = vperm.slane %v4336_v45, 0  ;;  %v3058_v54 = vld [vmem:[%s4239_s15 + $0x80] sm:$0xf]  ;;  %v473_v56 = vperm.slane %v4336_v45, 1  ;;  %s699_s18 = scalar_lea.vmem %s4383_s17, %s2986_s27 [#allocation6] }
  0x50   : > { %876 = vmatpush.bf16.msra.mxu3 %v3063_v38  ;;  %v3055_v53 = vor.u32 %v3733_v48, %v3052_v51  ;;  %v3735_v55 = vld [vmem:[%s4239_s15 + $0x88] sm:$0xf0]  ;;  %v3038_v59 = vld [vmem:[%s4239_s15 + $0x60] sm:$0xf]  ;;  %v3730_v61 = vld [vmem:[%s4239_s15 + $0x64] sm:$0xf]  ;;  %v669_v63 = vunpack.c.l.bf16 %v667_v49 }
  0x51   : > { %v3059_v57 = vor.u32 %v3735_v55, %v3058_v54  ;;  %v3731_v60 = vld [vmem:[%s4239_s15 + $0x68] sm:$0xf0]  ;;  %v3040_v1 = vld [vmem:[%s4239_s15 + $0x6c] sm:$0xf0]  ;;  %v3046_v2 = vld [vmem:[%s4239_s15 + $0x68] sm:$0xf] }
  0x52   : > { %612 = vmatpush.bf16.msra.mxu0 %v2903_v7  ;;  %637 = vmatpush.bf16.msra.mxu2 %v2923_v15  ;;  %v3039_v0 = vor.u32 %v3731_v60, %v3038_v59  ;;  %v3732_v3 = vld [vmem:[%s4239_s15 + $0x70] sm:$0xf0]  ;;  %v3043_v6 = vor.u32 %v3730_v61, %v3040_v1  ;;  %v3727_v12 = vld [vmem:[%s4239_s15 + $0x4c] sm:$0xf]  ;;  %v3028_v15 = vld [vmem:[%s4239_s15 + $0x54] sm:$0xf0] }
  0x53   : > { %625 = vmatpush.bf16.msra.mxu1 %v2907_v10  ;;  %v3047_v7 = vor.u32 %v3732_v3, %v3046_v2  ;;  %v3026_v10 = vld [vmem:[%s4239_s15 + $0x48] sm:$0xf]  ;;  %v3728_v11 = vld [vmem:[%s4239_s15 + $0x50] sm:$0xf0]  ;;  %v3729_v18 = vld [vmem:[%s4239_s15 + $0x58] sm:$0xf0] }
  0x54   : > { %877 = vmatpush.bf16.msra.mxu3 %v3051_v50  ;;  %v3027_v14 = vor.u32 %v3728_v11, %v3026_v10  ;;  %v3014_v23 = vld [vmem:[%s4239_s15 + $0x30] sm:$0xf]  ;;  %v3725_v24 = vld [vmem:[%s4239_s15 + $0x38] sm:$0xf0]  ;;  %v3016_v28 = vld [vmem:[%s4239_s15 + $0x3c] sm:$0xf0] }
  0x55   : > { %v3015_v27 = vor.u32 %v3725_v24, %v3014_v23  ;;  %v3022_v29 = vld [vmem:[%s4239_s15 + $0x38] sm:$0xf]  ;;  %v3726_v30 = vld [vmem:[%s4239_s15 + $0x40] sm:$0xf0]  ;;  %v3721_v36 = vld [vmem:[%s4239_s15 + $0x1c] sm:$0xf] }
  0x56   : > { %613 = vmatpush.bf16.msra.mxu0 %v2891_v16  ;;  %638 = vmatpush.bf16.msra.mxu2 %v2911_v22  ;;  %v3034_v16 = vld [vmem:[%s4239_s15 + $0x50] sm:$0xf]  ;;  %v3722_v35 = vld [vmem:[%s4239_s15 + $0x20] sm:$0xf0]  ;;  %v3004_v38 = vld [vmem:[%s4239_s15 + $0x24] sm:$0xf0] }
  0x57   : > { %626 = vmatpush.bf16.msra.mxu1 %v2895_v20  ;;  %v3031_v20 = vor.u32 %v3727_v12, %v3028_v15  ;;  %v3010_v39 = vld [vmem:[%s4239_s15 + $0x20] sm:$0xf]  ;;  %v3723_v40 = vld [vmem:[%s4239_s15 + $0x28] sm:$0xf0]  ;;  %v3718_v48 = vld [vmem:[%s4239_s15 + $0x4] sm:$0xf] }
  0x58   : > { %878 = vmatpush.bf16.msra.mxu3 %v3039_v0  ;;  %v2990_v46 = vld [vmem:[%s4239_s15] sm:$0xf]  ;;  %v3719_v47 = vld [vmem:[%s4239_s15 + $0x8] sm:$0xf0]  ;;  %s4390_s11 = scalar_select %p423_p1, 6, 1 }
  0x59   : > { %614 = vmatmul.bf16.vlgmr.msra.gmra.mxu0 %v437_v21  ;;  %v2991_v51 = vor.u32 %v3719_v47, %v2990_v46  ;;  %s3688_s29 = sshll.u32 (%p4192_p9), %s4100_s21, 2 }
  0x5a   : > { %627 = vmatmul.bf16.vlgmr.msra.gmra.mxu1 %v437_v21  ;;  %639 = vmatpush.bf16.msra.mxu2 %v2899_v25  ;;  %v3724_v25 = vld [vmem:[%s4239_s15 + $0x34] sm:$0xf]  ;;  %s3717_s24 = smul.u32 12, %s4390_s11  ;;  %s3086_s28 = sshll.u32 %s4390_s11, 2 }
  0x5b   : > { %888 = vmatpush.bf16.msrb.mxu0 %v3079_v33  ;;  %901 = vmatpush.bf16.msrb.mxu1 %v3083_v34  ;;  %v3019_v32 = vor.u32 %v3724_v25, %v3016_v28  ;;  %v3023_v33 = vor.u32 %v3726_v30, %v3022_v29  ;;  %v3002_v34 = vld [vmem:[%s4239_s15 + $0x18] sm:$0xf]  ;;  %v3765_v28 = vld [vmem:[%s4239_s15 + $0xb0] sm:$0xf0]  ;;  %v3764_v29 = vld [vmem:[%s4239_s15 + $0xac] sm:$0xf]  ;;  %s968_s7 = scalar_lea.vmem %s4383_s17, %s3086_s28 [#allocation6] }
  0x5c   : > { %879 = vmatpush.bf16.msra.mxu3 %v3027_v14  ;;  %v3003_v37 = vor.u32 %v3722_v35, %v3002_v34  ;;  %s4394_s26 = scalar_lea.vmem %s4236_s14, %s3717_s24 [#allocation3] }
  0x5d   : > { %640 = vmatmul.bf16.vlgmr.msra.gmra.mxu2 %v437_v21  ;;  %v3035_v21 = vor.u32 %v3729_v18, %v3034_v16 }
  0x5f   : > { %889 = vmatpush.bf16.msrb.mxu0 %v3067_v43  ;;  %902 = vmatpush.bf16.msrb.mxu1 %v3071_v44  ;;  %v3007_v43 = vor.u32 %v3721_v36, %v3004_v38  ;;  %v3011_v44 = vor.u32 %v3723_v40, %v3010_v39  ;;  %v3162_v38 = vld [vmem:[%s4239_s15 + $0x90] sm:$0xf]  ;;  %v3762_v39 = vld [vmem:[%s4239_s15 + $0x98] sm:$0xf0]  ;;  %v3761_v40 = vld [vmem:[%s4239_s15 + $0x94] sm:$0xf] }
  0x60   : > { %880 = vmatpush.bf16.msra.mxu3 %v3015_v27  ;;  %v3174_v27 = vld [vmem:[%s4239_s15 + $0xa8] sm:$0xf] }
  0x61   : > { %v3175_v30 = vor.u32 %v3765_v28, %v3174_v27  ;;  %v3749_v27 = vld [vmem:[%s4239_s15 + $0x34] sm:$0xf]  ;;  %v3116_v28 = vld [vmem:[%s4239_s15 + $0x3c] sm:$0xf0] }
  0x63   : > { %890 = vmatpush.bf16.msrb.mxu0 %v3055_v53  ;;  %903 = vmatpush.bf16.msrb.mxu1 %v3059_v57  ;;  %v2998_v53 = vld [vmem:[%s4239_s15 + $0x8] sm:$0xf] }
  0x64   : > { %881 = vmatpush.bf16.msra.mxu3 %v3003_v37  ;;  %1144 = vmatpush.bf16.msrb.mxu2 %v3175_v30  ;;  %v3122_v30 = vld [vmem:[%s4239_s15 + $0x38] sm:$0xf] }
  0x67   : > { %891 = vmatpush.bf16.msrb.mxu0 %v3043_v6  ;;  %904 = vmatpush.bf16.msrb.mxu1 %v3047_v7 }
  0x68   : > { %882 = vmatpush.bf16.msra.mxu3 %v2991_v51 }
  0x6b   : > { %892 = vmatpush.bf16.msrb.mxu0 %v3031_v20  ;;  %905 = vmatpush.bf16.msrb.mxu1 %v3035_v21 }
  0x6f   : > { %893 = vmatpush.bf16.msrb.mxu0 %v3019_v32  ;;  %906 = vmatpush.bf16.msrb.mxu1 %v3023_v33  ;;  %v3182_v32 = vld [vmem:[%s4239_s15 + $0xb0] sm:$0xf]  ;;  %v3766_v33 = vld [vmem:[%s4239_s15 + $0xb8] sm:$0xf0] }
  0x70   : > { %v3183_v36 = vor.u32 %v3766_v33, %v3182_v32  ;;  %v3119_v33 = vor.u32 %v3749_v27, %v3116_v28  ;;  %v3789_v27 = vld [vmem:[%s4239_s15 + $0xac] sm:$0xf] }
  0x73   : > { %894 = vmatpush.bf16.msrb.mxu0 %v3007_v43  ;;  %907 = vmatpush.bf16.msrb.mxu1 %v3011_v44  ;;  %v3170_v43 = vld [vmem:[%s4239_s15 + $0x98] sm:$0xf]  ;;  %v3763_v44 = vld [vmem:[%s4239_s15 + $0xa0] sm:$0xf0] }
  0xd6   : > { %v615_v62 = vpop.f32.mrf.mxu0 }
  0xd7   : > { %v616_v4 = vadd.f32 %v615_v62, %v472_v52  ;;  %v628_v5 = vpop.f32.mrf.mxu1  ;;  %v2992_v52 = vld [vmem:[%s4239_s15 + $0xc] sm:$0xf0]  ;;  %v474_v62 = vperm.slane %v4336_v45, 2 }
  0xd8   : > { %v629_v8 = vadd.f32 %v628_v5, %v473_v56  ;;  %v2995_v55 = vor.u32 %v3718_v48, %v2992_v52  ;;  %v3720_v56 = vld [vmem:[%s4239_s15 + $0x10] sm:$0xf0]  ;;  %v3171_v48 = vor.u32 %v3763_v44, %v3170_v43  ;;  %v3150_v52 = vld [vmem:[%s4239_s15 + $0x78] sm:$0xf] }
  0xd9   : > { %v646_v9 = vadd.f32 %v645_v58, %v616_v4  ;;  %v2999_v57 = vor.u32 %v3720_v56, %v2998_v53  ;;  %v436_v4 = vld [vmem:[%s4321_s8 + $0x8] sm:$0xf]  ;;  %v3759_v53 = vld [vmem:[%s4239_s15 + $0x80] sm:$0xf0]  ;;  %s4468_s8 = scalar_select %p423_p1, 5, 2 }
  0xda   : > { %v670_v13 = vadd.f32 %v669_v63, %v629_v8  ;;  %895 = vmatpush.bf16.msrb.mxu0 %v2995_v55  ;;  %v691_v10 = vunpack.c.l.bf16 %v436_v4  ;;  %v3151_v55 = vor.u32 %v3759_v53, %v3150_v52  ;;  %v3152_v56 = vld [vmem:[%s4239_s15 + $0x84] sm:$0xf0] }
  0xdb   : > { %v2984_v19 = vmul.f32 -1.442695, %v646_v9  ;;  %908 = vmatpush.bf16.msrb.mxu1 %v2999_v57  ;;  %v3158_v57 = vld [vmem:[%s4239_s15 + $0x80] sm:$0xf]  ;;  %s3742_s9 = smul.u32 12, %s4468_s8  ;;  %s3186_s13 = sshll.u32 %s4468_s8, 2 }
  0xdc   : > { %v2985_v22 = vmul.f32 -1.442695, %v670_v13  ;;  %s1237_s27 = scalar_lea.vmem %s4383_s17, %s3186_s13 [#allocation6] }
  0xdd   : > { %3950 = vpow2.f32 %v2984_v19  ;;  %s4472_s10 = scalar_lea.vmem %s4236_s14, %s3742_s9 [#allocation3] }
  0xde   : > { %3952 = vpow2.f32 %v2985_v22  ;;  %v617_v26 = vpop.f32.mrf.mxu0  ;;  %1170 = vmatpush.bf16.msra.mxu0 %v3183_v36 }
  0xdf   : > { %v630_v31 = vpop.f32.mrf.mxu1  ;;  %v4400_v26 = vld [vmem:[%s4326_s12] sm:$0x7] }
  0xe0   : > { %v641_v42 = vpop.f32.mrf.mxu2  ;;  %v3176_v31 = vld [vmem:[%s4239_s15 + $0xb4] sm:$0xf0]  ;;  %v742_v37 = vperm.slane %v4400_v26, 1 }
  0xe1   : > { %v642_v5 = vadd.f32 %v641_v42, %v474_v62  ;;  %v3179_v35 = vor.u32 %v3764_v29, %v3176_v31  ;;  %v3164_v42 = vld [vmem:[%s4239_s15 + $0x9c] sm:$0xf0]  ;;  %v3751_v31 = vld [vmem:[%s4239_s15 + $0x40] sm:$0xf0] }
  0xe2   : > { %v3167_v47 = vor.u32 %v3761_v40, %v3164_v42  ;;  %1171 = vmatpush.bf16.msra.mxu0 %v3171_v48  ;;  %v3110_v40 = vld [vmem:[%s4239_s15 + $0x20] sm:$0xf] }
  0xe3   : > { %v3951_v41 = vpop.eup %3950  ;;  %1157 = vmatpush.bf16.msrb.mxu3 %v3179_v35  ;;  %v3747_v35 = vld [vmem:[%s4239_s15 + $0x20] sm:$0xf0] }
  0xe4   : > { %v3953_v49 = vpop.eup %3952  ;;  %v650_v50 = vadd.f32 1.0, %v3951_v41  ;;  %v3163_v41 = vor.u32 %v3762_v39, %v3162_v38  ;;  %v3746_v38 = vld [vmem:[%s4239_s15 + $0x1c] sm:$0xf]  ;;  %v3104_v39 = vld [vmem:[%s4239_s15 + $0x24] sm:$0xf0] }
  0xe5   : > { %v674_v54 = vadd.f32 1.0, %v3953_v49  ;;  %v3107_v44 = vor.u32 %v3746_v38, %v3104_v39  ;;  %v3264_v39 = vld [vmem:[%s4239_s15 + $0x9c] sm:$0xf0] }
  0xe6   : > { %3954 = vrcp.f32 %v650_v50  ;;  %v662_v1 = vand.u32 2147483648, %v650_v50  ;;  %v660_v3 = vand.u32 2147483647, %v650_v50  ;;  %vm656_vm1 = vweird.f32 %v650_v50  ;;  %1145 = vmatpush.bf16.msrb.mxu2 %v3163_v41  ;;  %v3748_v41 = vld [vmem:[%s4239_s15 + $0x28] sm:$0xf0] }
  0xe7   : > { %3956 = vrcp.f32 %v674_v54  ;;  %vm680_vm4 = vweird.f32 %v674_v54  ;;  %v686_v14 = vand.u32 2147483648, %v674_v54  ;;  %v684_v16 = vand.u32 2147483647, %v674_v54  ;;  %1158 = vmatpush.bf16.msrb.mxu3 %v3167_v47  ;;  %v3744_v47 = vld [vmem:[%s4239_s15 + $0x8] sm:$0xf0] }
  0xe8   : > { %v643_v58 = vpop.f32.mrf.mxu2  ;;  %v663_v8 = vor.u32 1.1754944e-38, %v662_v1  ;;  %vm661_vm3 = vcmp.eq.f32.partialorder %v660_v3, 8.507059e+37  ;;  %v3138_v1 = vld [vmem:[%s4239_s15 + $0x60] sm:$0xf]  ;;  %v3111_v48 = vor.u32 %v3748_v41, %v3110_v40  ;;  %v3270_v40 = vld [vmem:[%s4239_s15 + $0x98] sm:$0xf] }
  0xe9   : > { %v687_v18 = vor.u32 1.1754944e-38, %v686_v14  ;;  %vm685_vm7 = vcmp.eq.f32.partialorder %v684_v16, 8.507059e+37  ;;  %v3760_v58 = vld [vmem:[%s4239_s15 + $0x88] sm:$0xf0]  ;;  %v3128_v16 = vld [vmem:[%s4239_s15 + $0x54] sm:$0xf0] }
  0xea   : > { %v3159_v62 = vor.u32 %v3760_v58, %v3158_v57  ;;  %1146 = vmatpush.bf16.msrb.mxu2 %v3151_v55  ;;  %v3745_v55 = vld [vmem:[%s4239_s15 + $0x10] sm:$0xf0]  ;;  %v3788_v41 = vld [vmem:[%s4239_s15 + $0xa0] sm:$0xf0] }
  0xec   : > { %v3955_v59 = vpop.eup %3954  ;;  %1172 = vmatpush.bf16.msra.mxu0 %v3159_v62 }
  0xed   : > { %v3957_v60 = vpop.eup %3956  ;;  %v652_v61 = vmul.f32 %v3955_v59, %v650_v50  ;;  %vm657_vm0 = vweird.f32 %v3955_v59 }
  0xee   : > { %v676_v0 = vmul.f32 %v3957_v60, %v674_v54  ;;  %vm658_vm2 = vmor %vm656_vm1, %vm657_vm0  ;;  %vm681_vm5 = vweird.f32 %v3957_v60  ;;  %v3758_v54 = vld [vmem:[%s4239_s15 + $0x7c] sm:$0xf] }
  0xef   : > { %v653_v63 = vsub.f32 1.0, %v652_v61  ;;  %vm682_vm6 = vmor %vm680_vm4, %vm681_vm5  ;;  %v3155_v61 = vor.u32 %v3758_v54, %v3152_v56  ;;  %v3098_v54 = vld [vmem:[%s4239_s15 + $0x8] sm:$0xf] }
  0xf0   : > { %v677_v7 = vsub.f32 1.0, %v676_v0 }
  0xf1   : > { %v654_v2 = vmul.f32 %v3955_v59, %v653_v63  ;;  %1159 = vmatpush.bf16.msrb.mxu3 %v3155_v61 }
  0xf2   : > { %v678_v45 = vmul.f32 %v3957_v60, %v677_v7  ;;  %v3146_v7 = vld [vmem:[%s4239_s15 + $0x68] sm:$0xf] }
  0xf3   : > { %v655_v6 = vadd.f32 %v3955_v59, %v654_v2  ;;  %v3756_v2 = vld [vmem:[%s4239_s15 + $0x68] sm:$0xf0] }
  0xf4   : > { %v679_v15 = vadd.f32 %v3957_v60, %v678_v45  ;;  %v3139_v4 = vor.u32 %v3756_v2, %v3138_v1  ;;  %v743_v2 = vperm.slane %v4400_v26, 2 }
  0xf5   : > { %v659_v9 = vsel %vm658_vm2, %v3955_v59, %v655_v6  ;;  %v3140_v6 = vld [vmem:[%s4239_s15 + $0x6c] sm:$0xf0] }
  0xf6   : > { %v664_v11 = vsel %vm661_vm3, %v663_v8, %v659_v9  ;;  %v683_v19 = vsel %vm682_vm6, %v3957_v60, %v679_v15  ;;  %v741_v60 = vperm.slane %v4400_v26, 0  ;;  %1147 = vmatpush.bf16.msrb.mxu2 %v3139_v4  ;;  %v3752_v15 = vld [vmem:[%s4239_s15 + $0x4c] sm:$0xf] }
  0xf7   : > { %v690_v12 = vmul.f32 %v664_v11, %v642_v5  ;;  %v688_v22 = vsel %vm685_vm7, %v687_v18, %v683_v19  ;;  %v3755_v5 = vld [vmem:[%s4239_s15 + $0x64] sm:$0xf]  ;;  %v3126_v11 = vld [vmem:[%s4239_s15 + $0x48] sm:$0xf]  ;;  %v3134_v18 = vld [vmem:[%s4239_s15 + $0x50] sm:$0xf] }
  0xf8   : > { %v3143_v9 = vor.u32 %v3755_v5, %v3140_v6  ;;  %v706_v5 = vld [vmem:[%s4394_s26 + $0x8] sm:$0xf] }
  0xf9   : > { %v692_v13 = vadd.f32 %v691_v10, %v690_v12  ;;  %v3757_v10 = vld [vmem:[%s4239_s15 + $0x70] sm:$0xf0] }
  0xfa   : > { %v3753_v12 = vld [vmem:[%s4239_s15 + $0x50] sm:$0xf0]  ;;  %1160 = vmatpush.bf16.msrb.mxu3 %v3143_v9  ;;  %v960_v9 = vunpack.c.l.bf16 %v706_v5  ;;  %v3246_v5 = vld [vmem:[%s4239_s15 + $0x68] sm:$0xf] }
  0xfb   : > { %3958 = vtanh.f32 %v692_v13  ;;  %v3147_v13 = vor.u32 %v3757_v10, %v3146_v7  ;;  %v3127_v14 = vor.u32 %v3753_v12, %v3126_v11 }
  0xfd   : > { %1173 = vmatpush.bf16.msra.mxu0 %v3147_v13  ;;  %1148 = vmatpush.bf16.msrb.mxu2 %v3127_v14 }
 0x101   : > { %v3959_v20 = vpop.eup %3958 }
 0x102   : > { %v694_v21 = vsub.f32 %v4299_v17, %v3959_v20  ;;  %v4397_v17 = vld [vmem:[%s4394_s26] sm:$0xff] }
 0x103   : > { %v936_v34 = vrot.slane %v4397_v17, 4  ;;  %v914_v0 = vunpack.c.l.bf16 %v4397_v17 }
 0x104   : > { %v695_v23 = vmul.f32 %v694_v21, %v688_v22  ;;  %v3131_v21 = vor.u32 %v3752_v15, %v3128_v16  ;;  %v3754_v22 = vld [vmem:[%s4239_s15 + $0x58] sm:$0xf0] }
 0x105   : > { %v938_v46 = vunpack.c.l.bf16 %v936_v34  ;;  %v3135_v17 = vor.u32 %v3754_v22, %v3134_v18  ;;  %v3102_v34 = vld [vmem:[%s4239_s15 + $0x18] sm:$0xf] }
 0x106   : > { %v4381_v24 = vadd.f32 %v3959_v20, %v695_v23  ;;  %v3114_v23 = vld [vmem:[%s4239_s15 + $0x30] sm:$0xf]  ;;  %1161 = vmatpush.bf16.msrb.mxu3 %v3131_v21  ;;  %v3103_v43 = vor.u32 %v3747_v35, %v3102_v34  ;;  %v974_v34 = vld [vmem:[%s4472_s10] sm:$0xff] }
 0x107   : > { %1174 = vmatpush.bf16.msra.mxu0 %v3135_v17  ;;  %v3790_v17 = vld [vmem:[%s4239_s15 + $0xb0] sm:$0xf0]  ;;  %v3262_v35 = vld [vmem:[%s4239_s15 + $0x90] sm:$0xf] }
 0x108   : > { %v697_v25 = vpack.c.bf16 %v4381_v24, %v4381_v24 }
 0x10a   : > { %700 = vst [vmem:[%s699_s18] sm:$0xf] %v697_v25  ;;  %883 = vmatmul.bf16.vlgmr.msra.gmra.mxu3 %v697_v25  ;;  %896 = vmatmul.bf16.vlgmr.msrb.gmra.mxu0 %v697_v25  ;;  %s4542_s18 = scalar_select %p423_p1, 4, 3 }
 0x10b   : > { %909 = vmatmul.bf16.vlgmr.msrb.gmra.mxu1 %v697_v25  ;;  %v3750_v25 = vld [vmem:[%s4239_s15 + $0x38] sm:$0xf0]  ;;  %1162 = vmatpush.bf16.msrb.mxu3 %v3119_v33 }
 0x10c   : > { %v3115_v32 = vor.u32 %v3750_v25, %v3114_v23  ;;  %s3767_s11 = smul.u32 12, %s4542_s18  ;;  %s3286_s26 = sshll.u32 %s4542_s18, 2 }
 0x10d   : > { %s1506_s28 = scalar_lea.vmem %s4383_s17, %s3286_s26 [#allocation6] }
 0x10e   : > { %1149 = vmatpush.bf16.msrb.mxu2 %v3115_v32  ;;  %s4552_s24 = scalar_lea.vmem %s4236_s14, %s3767_s11 [#allocation3] }
 0x10f   : > { %1163 = vmatpush.bf16.msrb.mxu3 %v3107_v44  ;;  %v4488_v44 = vld [vmem:[%s4326_s12] sm:$0x7] }
 0x112   : > { %1150 = vmatpush.bf16.msrb.mxu2 %v3103_v43  ;;  %v3271_v43 = vor.u32 %v3788_v41, %v3270_v40  ;;  %v3773_v40 = vld [vmem:[%s4239_s15 + $0x28] sm:$0xf0] }
 0x187   : > { %v897_v49 = vpop.f32.mrf.mxu0 }
 0x188   : > { %v898_v50 = vadd.f32 %v897_v49, %v742_v37  ;;  %v4416_v51 = vpop.f32.mrf.mxu1  ;;  %v3123_v37 = vor.u32 %v3751_v31, %v3122_v30  ;;  %v3743_v49 = vld [vmem:[%s4239_s15 + $0x4] sm:$0xf]  ;;  %v3282_v30 = vld [vmem:[%s4239_s15 + $0xb0] sm:$0xf]  ;;  %v3791_v31 = vld [vmem:[%s4239_s15 + $0xb8] sm:$0xf0] }
 0x189   : > { %v911_v10 = vadd.f32 %v4416_v51, %v743_v2  ;;  %v3283_v33 = vor.u32 %v3791_v31, %v3282_v30  ;;  %v3222_v30 = vld [vmem:[%s4239_s15 + $0x38] sm:$0xf]  ;;  %v3776_v31 = vld [vmem:[%s4239_s15 + $0x40] sm:$0xf0] }
 0x18a   : > { %v939_v59 = vadd.f32 %v938_v46, %v898_v50  ;;  %v3090_v46 = vld [vmem:[%s4239_s15] sm:$0xf]  ;;  %1175 = vmatpush.bf16.msra.mxu0 %v3123_v37  ;;  %v3092_v50 = vld [vmem:[%s4239_s15 + $0xc] sm:$0xf0]  ;;  %v3786_v37 = vld [vmem:[%s4239_s15 + $0x94] sm:$0xf] }
 0x18b   : > { %v3091_v57 = vor.u32 %v3744_v47, %v3090_v46  ;;  %v3095_v58 = vor.u32 %v3743_v49, %v3092_v50  ;;  %v1205_v46 = vrot.slane %v974_v34, 4  ;;  %v3784_v49 = vld [vmem:[%s4239_s15 + $0x80] sm:$0xf0]  ;;  %v3783_v50 = vld [vmem:[%s4239_s15 + $0x7c] sm:$0xf] }
 0x18c   : > { %v3085_v63 = vmul.f32 -1.442695, %v939_v59  ;;  %v3099_v59 = vor.u32 %v3745_v55, %v3098_v54  ;;  %v3258_v54 = vld [vmem:[%s4239_s15 + $0x80] sm:$0xf]  ;;  %v3785_v55 = vld [vmem:[%s4239_s15 + $0x88] sm:$0xf0] }
 0x18d   : > { %v884_v3 = vpop.f32.mrf.mxu3  ;;  %1151 = vmatpush.bf16.msrb.mxu2 %v3091_v57  ;;  %1164 = vmatpush.bf16.msrb.mxu3 %v3095_v58  ;;  %v1011_v57 = vperm.slane %v4488_v44, 1 }
 0x18e   : > { %v885_v8 = vadd.f32 %v884_v3, %v741_v60  ;;  %3960 = vpow2.f32 %v3085_v63  ;;  %1176 = vmatpush.bf16.msra.mxu0 %v3111_v48  ;;  %v3250_v48 = vld [vmem:[%s4239_s15 + $0x78] sm:$0xf] }
 0x18f   : > { %v899_v45 = vpop.f32.mrf.mxu0 }
 0x190   : > { %v915_v19 = vadd.f32 %v914_v0, %v885_v8  ;;  %v912_v20 = vpop.f32.mrf.mxu1 }
 0x191   : > { %1439 = vmatpush.bf16.msra.mxu3 %v3283_v33 }
 0x192   : > { %v3084_v29 = vmul.f32 -1.442695, %v915_v19  ;;  %1177 = vmatpush.bf16.msra.mxu0 %v3099_v59  ;;  %v3259_v59 = vor.u32 %v3785_v55, %v3258_v54  ;;  %v3770_v54 = vld [vmem:[%s4239_s15 + $0x10] sm:$0xf0] }
 0x194   : > { %3962 = vpow2.f32 %v3084_v29  ;;  %v3961_v42 = vpop.eup %3960  ;;  %v3276_v29 = vld [vmem:[%s4239_s15 + $0xb4] sm:$0xf0] }
 0x195   : > { %v886_v36 = vpop.f32.mrf.mxu3  ;;  %v943_v53 = vadd.f32 1.0, %v3961_v42  ;;  %v3279_v32 = vor.u32 %v3789_v27, %v3276_v29  ;;  %v3267_v42 = vor.u32 %v3786_v37, %v3264_v39  ;;  %1440 = vmatpush.bf16.msra.mxu3 %v3271_v43  ;;  %v3216_v27 = vld [vmem:[%s4239_s15 + $0x3c] sm:$0xf0]  ;;  %v3771_v37 = vld [vmem:[%s4239_s15 + $0x1c] sm:$0xf] }
 0x196   : > { %v3787_v36 = vld [vmem:[%s4239_s15 + $0x98] sm:$0xf0]  ;;  %v3210_v39 = vld [vmem:[%s4239_s15 + $0x20] sm:$0xf] }
 0x197   : > { %v955_v15 = vand.u32 2147483648, %v943_v53  ;;  %vm949_vm13 = vweird.f32 %v943_v53  ;;  %v953_v16 = vand.u32 2147483647, %v943_v53  ;;  %1426 = vmatpush.bf16.msra.mxu2 %v3279_v32  ;;  %v3263_v38 = vor.u32 %v3787_v36, %v3262_v35  ;;  %v3202_v32 = vld [vmem:[%s4239_s15 + $0x18] sm:$0xf] }
 0x198   : > { %v3223_v35 = vor.u32 %v3776_v31, %v3222_v30  ;;  %v3772_v36 = vld [vmem:[%s4239_s15 + $0x20] sm:$0xf0]  ;;  %v3190_v43 = vld [vmem:[%s4239_s15] sm:$0xf]  ;;  %v3816_v30 = vld [vmem:[%s4239_s15 + $0xb8] sm:$0xf0] }
 0x199   : > { %v956_v51 = vor.u32 1.1754944e-38, %v955_v15  ;;  %vm954_vm15 = vcmp.eq.f32.partialorder %v953_v16, 8.507059e+37  ;;  %1441 = vmatpush.bf16.msra.mxu3 %v3259_v59  ;;  %v3228_v16 = vld [vmem:[%s4239_s15 + $0x54] sm:$0xf0]  ;;  %v3203_v41 = vor.u32 %v3772_v36, %v3202_v32 }
 0x19a   : > { %v3963_v52 = vpop.eup %3962 }
 0x19b   : > { %v919_v56 = vadd.f32 1.0, %v3963_v52  ;;  %1427 = vmatpush.bf16.msra.mxu2 %v3267_v42  ;;  %v3251_v52 = vor.u32 %v3784_v49, %v3250_v48  ;;  %v3211_v48 = vor.u32 %v3773_v40, %v3210_v39  ;;  %v3768_v49 = vld [vmem:[%s4239_s15 + $0x4] sm:$0xf] }
 0x19c   : > { %v3813_v39 = vld [vmem:[%s4239_s15 + $0xa0] sm:$0xf0] }
 0x19d   : > { %3964 = vrcp.f32 %v919_v56  ;;  %v931_v1 = vand.u32 2147483648, %v919_v56  ;;  %v929_v4 = vand.u32 2147483647, %v919_v56  ;;  %vm925_vm9 = vweird.f32 %v919_v56 }
 0x19e   : > { %3966 = vrcp.f32 %v943_v53 }
 0x19f   : > { %v932_v8 = vor.u32 1.1754944e-38, %v931_v1  ;;  %vm930_vm11 = vcmp.eq.f32.partialorder %v929_v4, 8.507059e+37  ;;  %v3240_v4 = vld [vmem:[%s4239_s15 + $0x6c] sm:$0xf0] }
 0x1a3   : > { %v3965_v60 = vpop.eup %3964 }
 0x1a4   : > { %v3967_v61 = vpop.eup %3966  ;;  %v921_v62 = vmul.f32 %v3965_v60, %v919_v56  ;;  %vm926_vm8 = vweird.f32 %v3965_v60  ;;  %v1010_v56 = vperm.slane %v4488_v44, 0 }
 0x1a5   : > { %v945_v0 = vmul.f32 %v3967_v61, %v943_v53  ;;  %vm927_vm10 = vmor %vm925_vm9, %vm926_vm8  ;;  %vm950_vm12 = vweird.f32 %v3967_v61  ;;  %v3252_v53 = vld [vmem:[%s4239_s15 + $0x84] sm:$0xf0] }
 0x1a6   : > { %v922_v63 = vsub.f32 1.0, %v921_v62  ;;  %vm951_vm14 = vmor %vm949_vm13, %vm950_vm12  ;;  %v3255_v58 = vor.u32 %v3783_v50, %v3252_v53  ;;  %v3238_v62 = vld [vmem:[%s4239_s15 + $0x60] sm:$0xf]  ;;  %v3192_v50 = vld [vmem:[%s4239_s15 + $0xc] sm:$0xf0] }
 0x1a7   : > { %v946_v7 = vsub.f32 1.0, %v945_v0  ;;  %v3780_v0 = vld [vmem:[%s4239_s15 + $0x64] sm:$0xf]  ;;  %v3198_v53 = vld [vmem:[%s4239_s15 + $0x8] sm:$0xf]  ;;  %v3195_v59 = vor.u32 %v3768_v49, %v3192_v50 }
 0x1a8   : > { %v923_v3 = vmul.f32 %v3965_v60, %v922_v63  ;;  %1428 = vmatpush.bf16.msra.mxu2 %v3255_v58  ;;  %v3781_v63 = vld [vmem:[%s4239_s15 + $0x68] sm:$0xf0]  ;;  %v3808_v49 = vld [vmem:[%s4239_s15 + $0x7c] sm:$0xf] }
 0x1a9   : > { %v947_v13 = vmul.f32 %v3967_v61, %v946_v7 }
 0x1aa   : > { %v924_v6 = vadd.f32 %v3965_v60, %v923_v3  ;;  %v3239_v3 = vor.u32 %v3781_v63, %v3238_v62 }
 0x1ab   : > { %v948_v26 = vadd.f32 %v3967_v61, %v947_v13  ;;  %v3226_v13 = vld [vmem:[%s4239_s15 + $0x48] sm:$0xf] }
 0x1ac   : > { %v928_v11 = vsel %vm927_vm10, %v3965_v60, %v924_v6  ;;  %v1183_v60 = vunpack.c.l.bf16 %v974_v34  ;;  %v3782_v6 = vld [vmem:[%s4239_s15 + $0x70] sm:$0xf0] }
 0x1ad   : > { %v933_v12 = vsel %vm930_vm11, %v932_v8, %v928_v11  ;;  %v952_v18 = vsel %vm951_vm14, %v3967_v61, %v948_v26  ;;  %v1207_v61 = vunpack.c.l.bf16 %v1205_v46  ;;  %v3777_v26 = vld [vmem:[%s4239_s15 + $0x4c] sm:$0xf] }
 0x1ae   : > { %v959_v45 = vmul.f32 %v933_v12, %v911_v10  ;;  %v957_v21 = vsel %vm954_vm15, %v956_v51, %v952_v18  ;;  %v3247_v10 = vor.u32 %v3782_v6, %v3246_v5  ;;  %v3234_v18 = vld [vmem:[%s4239_s15 + $0x50] sm:$0xf]  ;;  %v3769_v46 = vld [vmem:[%s4239_s15 + $0x8] sm:$0xf0]  ;;  %v975_v6 = vld [vmem:[%s4472_s10 + $0x8] sm:$0xf] }
 0x1b0   : > { %v961_v14 = vadd.f32 %v960_v9, %v959_v45  ;;  %v3243_v9 = vor.u32 %v3780_v0, %v3240_v4  ;;  %1442 = vmatpush.bf16.msra.mxu3 %v3247_v10 }
 0x1b2   : > { %3968 = vtanh.f32 %v961_v14  ;;  %1429 = vmatpush.bf16.msra.mxu2 %v3243_v9  ;;  %v3778_v14 = vld [vmem:[%s4239_s15 + $0x50] sm:$0xf0] }
 0x1b3   : > { %v3227_v15 = vor.u32 %v3778_v14, %v3226_v13 }
 0x1b8   : > { %v3969_v19 = vpop.eup %3968 }
 0x1b9   : > { %v963_v20 = vsub.f32 %v4381_v24, %v3969_v19  ;;  %v3274_v24 = vld [vmem:[%s4239_s15 + $0xa8] sm:$0xf] }
 0x1ba   : > { %v3275_v28 = vor.u32 %v3790_v17, %v3274_v24  ;;  %v3775_v24 = vld [vmem:[%s4239_s15 + $0x38] sm:$0xf0]  ;;  %v3774_v17 = vld [vmem:[%s4239_s15 + $0x34] sm:$0xf] }
 0x1bb   : > { %v964_v22 = vmul.f32 %v963_v20, %v957_v21  ;;  %v3231_v21 = vor.u32 %v3777_v26, %v3228_v16  ;;  %v3219_v29 = vor.u32 %v3774_v17, %v3216_v27  ;;  %v3814_v17 = vld [vmem:[%s4239_s15 + $0xac] sm:$0xf] }
 0x1bc   : > { %1413 = vmatpush.bf16.msra.mxu1 %v3275_v28 }
 0x1bd   : > { %v4461_v23 = vadd.f32 %v3969_v19, %v964_v22  ;;  %v3779_v19 = vld [vmem:[%s4239_s15 + $0x58] sm:$0xf0]  ;;  %1430 = vmatpush.bf16.msra.mxu2 %v3231_v21 }
 0x1be   : > { %v3235_v22 = vor.u32 %v3779_v19, %v3234_v18 }
 0x1bf   : > { %v966_v25 = vpack.c.bf16 %v4461_v23, %v4461_v23 }
 0x1c0   : > { %1414 = vmatpush.bf16.msra.mxu1 %v3263_v38  ;;  %1443 = vmatpush.bf16.msra.mxu3 %v3235_v22  ;;  %v3204_v38 = vld [vmem:[%s4239_s15 + $0x24] sm:$0xf0] }
 0x1c1   : > { %969 = vst [vmem:[%s968_s7] sm:$0xf] %v966_v25  ;;  %1152 = vmatmul.bf16.vlgmr.msrb.gmra.mxu2 %v966_v25  ;;  %1165 = vmatmul.bf16.vlgmr.msrb.gmra.mxu3 %v966_v25  ;;  %v3207_v42 = vor.u32 %v3771_v37, %v3204_v38  ;;  %v3364_v37 = vld [vmem:[%s4239_s15 + $0x9c] sm:$0xf0]  ;;  %v3370_v38 = vld [vmem:[%s4239_s15 + $0x98] sm:$0xf] }
 0x1c2   : > { %1178 = vmatmul.bf16.vlgmr.msra.gmra.mxu0 %v966_v25  ;;  %v3214_v25 = vld [vmem:[%s4239_s15 + $0x30] sm:$0xf]  ;;  %1431 = vmatpush.bf16.msra.mxu2 %v3219_v29  ;;  %s4616_s7 = scalar_select %p423_p1, 3, 4 }
 0x1c3   : > { %v3215_v28 = vor.u32 %v3775_v24, %v3214_v25  ;;  %v3815_v24 = vld [vmem:[%s4239_s15 + $0xb0] sm:$0xf0]  ;;  %v3382_v29 = vld [vmem:[%s4239_s15 + $0xb0] sm:$0xf] }
 0x1c4   : > { %1415 = vmatpush.bf16.msra.mxu1 %v3251_v52  ;;  %1444 = vmatpush.bf16.msra.mxu3 %v3223_v35  ;;  %v3383_v32 = vor.u32 %v3816_v30, %v3382_v29  ;;  %v3811_v35 = vld [vmem:[%s4239_s15 + $0x94] sm:$0xf]  ;;  %s3792_s8 = smul.u32 12, %s4616_s7  ;;  %s3386_s10 = sshll.u32 %s4616_s7, 2 }
 0x1c5   : > { %v3367_v40 = vor.u32 %v3811_v35, %v3364_v37  ;;  %v3796_v35 = vld [vmem:[%s4239_s15 + $0x1c] sm:$0xf]  ;;  %v3310_v37 = vld [vmem:[%s4239_s15 + $0x20] sm:$0xf]  ;;  %s1775_s13 = scalar_lea.vmem %s4383_s17, %s3386_s10 [#allocation6] }
 0x1c6   : > { %1432 = vmatpush.bf16.msra.mxu2 %v3207_v42  ;;  %v1243_v42 = vld [vmem:[%s4552_s24] sm:$0xff]  ;;  %s4620_s9 = scalar_lea.vmem %s4236_s14, %s3792_s8 [#allocation3] }
 0x1c7   : > { %s4842_s10 = scalar_select %p423_p1, 0, 7 }
 0x1c8   : > { %1416 = vmatpush.bf16.msra.mxu1 %v3239_v3  ;;  %1445 = vmatpush.bf16.msra.mxu3 %v3211_v48  ;;  %v1012_v3 = vperm.slane %v4488_v44, 2  ;;  %v3809_v48 = vld [vmem:[%s4239_s15 + $0x80] sm:$0xf0] }
 0x1ca   : > { %1433 = vmatpush.bf16.msra.mxu2 %v3195_v59  ;;  %v3338_v59 = vld [vmem:[%s4239_s15 + $0x60] sm:$0xf] }
 0x1cc   : > { %1417 = vmatpush.bf16.msra.mxu1 %v3227_v15 }
 0x1ce   : > { %1708 = vmatpush.bf16.msrb.mxu2 %v3383_v32  ;;  %v3302_v32 = vld [vmem:[%s4239_s15 + $0x18] sm:$0xf] }
 0x1d0   : > { %1418 = vmatpush.bf16.msra.mxu1 %v3215_v28  ;;  %v3376_v28 = vld [vmem:[%s4239_s15 + $0xb4] sm:$0xf0] }
 0x1d1   : > { %v3379_v31 = vor.u32 %v3814_v17, %v3376_v28  ;;  %v3322_v17 = vld [vmem:[%s4239_s15 + $0x38] sm:$0xf] }
 0x1d4   : > { %1419 = vmatpush.bf16.msra.mxu1 %v3203_v41  ;;  %v3371_v41 = vor.u32 %v3813_v39, %v3370_v38 }
 0x1d6   : > { %1709 = vmatpush.bf16.msrb.mxu2 %v3371_v41  ;;  %v3290_v41 = vld [vmem:[%s4239_s15] sm:$0xf] }
 0x23f   : > { %v4490_v47 = vpop.f32.mrf.mxu0 }
 0x240   : > { %v1180_v10 = vadd.f32 %v4490_v47, %v1012_v3 }
 0x244   : > { %v1153_v1 = vpop.f32.mrf.mxu2  ;;  %v1166_v2 = vpop.f32.mrf.mxu3 }
 0x245   : > { %v1154_v7 = vadd.f32 %v1153_v1, %v1010_v56  ;;  %v1167_v8 = vadd.f32 %v1166_v2, %v1011_v57  ;;  %v3191_v57 = vor.u32 %v3769_v46, %v3190_v43  ;;  %v4562_v43 = vld [vmem:[%s4326_s12] sm:$0x7]  ;;  %v3350_v46 = vld [vmem:[%s4239_s15 + $0x78] sm:$0xf] }
 0x246   : > { %v3351_v50 = vor.u32 %v3809_v48, %v3350_v46 }
 0x247   : > { %v1184_v11 = vadd.f32 %v1183_v60, %v1154_v7  ;;  %v1208_v12 = vadd.f32 %v1207_v61, %v1167_v8  ;;  %v1181_v45 = vpop.f32.mrf.mxu0  ;;  %v3199_v60 = vor.u32 %v3770_v54, %v3198_v53  ;;  %1420 = vmatpush.bf16.msra.mxu1 %v3191_v57  ;;  %v3358_v53 = vld [vmem:[%s4239_s15 + $0x80] sm:$0xf]  ;;  %v3810_v54 = vld [vmem:[%s4239_s15 + $0x88] sm:$0xf0] }
 0x248   : > { %v3359_v57 = vor.u32 %v3810_v54, %v3358_v53  ;;  %v3292_v53 = vld [vmem:[%s4239_s15 + $0xc] sm:$0xf0] }
 0x249   : > { %v3184_v51 = vmul.f32 -1.442695, %v1184_v11  ;;  %v3185_v20 = vmul.f32 -1.442695, %v1208_v12  ;;  %1446 = vmatpush.bf16.msra.mxu3 %v3199_v60  ;;  %v1229_v12 = vunpack.c.l.bf16 %v975_v6  ;;  %v3806_v60 = vld [vmem:[%s4239_s15 + $0x68] sm:$0xf0] }
 0x24a   : > { %1710 = vmatpush.bf16.msrb.mxu2 %v3359_v57  ;;  %v3795_v57 = vld [vmem:[%s4239_s15 + $0x10] sm:$0xf0] }
 0x24b   : > { %3970 = vpow2.f32 %v3184_v51  ;;  %1695 = vmatpush.bf16.msrb.mxu1 %v3379_v31 }
 0x24c   : > { %3972 = vpow2.f32 %v3185_v20  ;;  %v1155_v33 = vpop.f32.mrf.mxu2  ;;  %v1168_v34 = vpop.f32.mrf.mxu3 }
 0x24d   : > { %v3362_v33 = vld [vmem:[%s4239_s15 + $0x90] sm:$0xf]  ;;  %v3812_v34 = vld [vmem:[%s4239_s15 + $0x98] sm:$0xf0] }
 0x24e   : > { %v3363_v36 = vor.u32 %v3812_v34, %v3362_v33  ;;  %v3797_v33 = vld [vmem:[%s4239_s15 + $0x20] sm:$0xf0] }
 0x24f   : > { %1696 = vmatpush.bf16.msrb.mxu1 %v3367_v40  ;;  %v3303_v34 = vor.u32 %v3797_v33, %v3302_v32  ;;  %v3798_v40 = vld [vmem:[%s4239_s15 + $0x28] sm:$0xf0]  ;;  %v1512_v32 = vld [vmem:[%s4620_s9] sm:$0xff]  ;;  %v3462_v33 = vld [vmem:[%s4239_s15 + $0x90] sm:$0xf] }
 0x251   : > { %v3971_v52 = vpop.eup %3970 }
 0x252   : > { %v3973_v55 = vpop.eup %3972  ;;  %v1188_v56 = vadd.f32 1.0, %v3971_v52  ;;  %v3352_v52 = vld [vmem:[%s4239_s15 + $0x84] sm:$0xf0] }
 0x253   : > { %v1212_v58 = vadd.f32 1.0, %v3973_v55  ;;  %v1279_v55 = vperm.slane %v4562_v43, 0 }
 0x254   : > { %3974 = vrcp.f32 %v1188_v56  ;;  %v1200_v1 = vand.u32 2147483648, %v1188_v56  ;;  %v1198_v5 = vand.u32 2147483647, %v1188_v56  ;;  %vm1194_vm1 = vweird.f32 %v1188_v56 }
 0x255   : > { %3976 = vrcp.f32 %v1212_v58  ;;  %v1224_v15 = vand.u32 2147483648, %v1212_v58  ;;  %vm1218_vm5 = vweird.f32 %v1212_v58  ;;  %v1222_v16 = vand.u32 2147483647, %v1212_v58 }
 0x256   : > { %v1201_v8 = vor.u32 1.1754944e-38, %v1200_v1  ;;  %vm1199_vm3 = vcmp.eq.f32.partialorder %v1198_v5, 8.507059e+37  ;;  %v3346_v1 = vld [vmem:[%s4239_s15 + $0x68] sm:$0xf] }
 0x257   : > { %v1225_v47 = vor.u32 1.1754944e-38, %v1224_v15  ;;  %vm1223_vm7 = vcmp.eq.f32.partialorder %v1222_v16, 8.507059e+37 }
 0x25a   : > { %v3975_v61 = vpop.eup %3974 }
 0x25b   : > { %v3977_v62 = vpop.eup %3976  ;;  %v1190_v63 = vmul.f32 %v3975_v61, %v1188_v56  ;;  %vm1195_vm0 = vweird.f32 %v3975_v61  ;;  %v3355_v56 = vor.u32 %v3808_v49, %v3352_v52  ;;  %v3311_v49 = vor.u32 %v3798_v40, %v3310_v37  ;;  %v3793_v52 = vld [vmem:[%s4239_s15 + $0x4] sm:$0xf]  ;;  %v3464_v37 = vld [vmem:[%s4239_s15 + $0x9c] sm:$0xf0] }
 0x25c   : > { %v1214_v2 = vmul.f32 %v3977_v62, %v1212_v58  ;;  %vm1196_vm2 = vmor %vm1194_vm1, %vm1195_vm0  ;;  %vm1219_vm4 = vweird.f32 %v3977_v62  ;;  %v1452_v58 = vunpack.c.l.bf16 %v1243_v42 }
 0x25d   : > { %v1191_v0 = vsub.f32 1.0, %v1190_v63  ;;  %vm1220_vm6 = vmor %vm1218_vm5, %vm1219_vm4  ;;  %1697 = vmatpush.bf16.msrb.mxu1 %v3355_v56  ;;  %v3339_v63 = vor.u32 %v3806_v60, %v3338_v59  ;;  %v3298_v56 = vld [vmem:[%s4239_s15 + $0x8] sm:$0xf] }
 0x25e   : > { %v1215_v9 = vsub.f32 1.0, %v1214_v2  ;;  %v3807_v2 = vld [vmem:[%s4239_s15 + $0x70] sm:$0xf0] }
 0x25f   : > { %v1192_v4 = vmul.f32 %v3975_v61, %v1191_v0  ;;  %v3340_v0 = vld [vmem:[%s4239_s15 + $0x6c] sm:$0xf0]  ;;  %v3347_v6 = vor.u32 %v3807_v2, %v3346_v1  ;;  %v1244_v1 = vld [vmem:[%s4552_s24 + $0x8] sm:$0xf]  ;;  %v1281_v2 = vperm.slane %v4562_v43, 2 }
 0x260   : > { %v1216_v14 = vmul.f32 %v3977_v62, %v1215_v9  ;;  %v3326_v9 = vld [vmem:[%s4239_s15 + $0x48] sm:$0xf] }
 0x261   : > { %v1193_v7 = vadd.f32 %v3975_v61, %v1192_v4  ;;  %v1474_v4 = vrot.slane %v1243_v42, 4  ;;  %1711 = vmatpush.bf16.msrb.mxu2 %v3347_v6  ;;  %v3794_v42 = vld [vmem:[%s4239_s15 + $0x8] sm:$0xf0] }
 0x262   : > { %v1217_v44 = vadd.f32 %v3977_v62, %v1216_v14  ;;  %v3804_v14 = vld [vmem:[%s4239_s15 + $0x58] sm:$0xf0] }
 0x263   : > { %v1197_v11 = vsel %vm1196_vm2, %v3975_v61, %v1193_v7  ;;  %v3805_v61 = vld [vmem:[%s4239_s15 + $0x64] sm:$0xf]  ;;  %v1280_v7 = vperm.slane %v4562_v43, 1 }
 0x264   : > { %v1202_v45 = vsel %vm1199_vm3, %v1201_v8, %v1197_v11  ;;  %v1221_v18 = vsel %vm1220_vm6, %v3977_v62, %v1217_v44  ;;  %v3343_v5 = vor.u32 %v3805_v61, %v3340_v0  ;;  %v3802_v11 = vld [vmem:[%s4239_s15 + $0x4c] sm:$0xf]  ;;  %v1476_v44 = vunpack.c.l.bf16 %v1474_v4 }
 0x265   : > { %v1228_v13 = vmul.f32 %v1202_v45, %v1180_v10  ;;  %v1226_v20 = vsel %vm1223_vm7, %v1225_v47, %v1221_v18  ;;  %v3803_v10 = vld [vmem:[%s4239_s15 + $0x50] sm:$0xf0]  ;;  %v3328_v45 = vld [vmem:[%s4239_s15 + $0x54] sm:$0xf0] }
 0x266   : > { %1698 = vmatpush.bf16.msrb.mxu1 %v3343_v5  ;;  %v3331_v15 = vor.u32 %v3802_v11, %v3328_v45 }
 0x267   : > { %v1230_v26 = vadd.f32 %v1229_v12, %v1228_v13  ;;  %v3327_v12 = vor.u32 %v3803_v10, %v3326_v9  ;;  %v3334_v13 = vld [vmem:[%s4239_s15 + $0x50] sm:$0xf]  ;;  %v1498_v9 = vunpack.c.l.bf16 %v1244_v1 }
 0x268   : > { %v3335_v16 = vor.u32 %v3804_v14, %v3334_v13 }
 0x269   : > { %3978 = vtanh.f32 %v1230_v26 }
 0x26a   : > { %1699 = vmatpush.bf16.msrb.mxu1 %v3331_v15  ;;  %1712 = vmatpush.bf16.msrb.mxu2 %v3335_v16 }
 0x26f   : > { %v3979_v19 = vpop.eup %3978 }
 0x270   : > { %v1232_v51 = vsub.f32 %v4461_v23, %v3979_v19  ;;  %v3374_v23 = vld [vmem:[%s4239_s15 + $0xa8] sm:$0xf] }
 0x271   : > { %v3375_v27 = vor.u32 %v3815_v24, %v3374_v23  ;;  %v3316_v24 = vld [vmem:[%s4239_s15 + $0x3c] sm:$0xf0] }
 0x272   : > { %v1233_v21 = vmul.f32 %v1232_v51, %v1226_v20  ;;  %v3314_v51 = vld [vmem:[%s4239_s15 + $0x30] sm:$0xf]  ;;  %v3800_v20 = vld [vmem:[%s4239_s15 + $0x38] sm:$0xf0] }
 0x273   : > { %1682 = vmatpush.bf16.msrb.mxu0 %v3375_v27  ;;  %v3315_v23 = vor.u32 %v3800_v20, %v3314_v51  ;;  %v3801_v27 = vld [vmem:[%s4239_s15 + $0x40] sm:$0xf0] }
 0x274   : > { %v4535_v22 = vadd.f32 %v3979_v19, %v1233_v21  ;;  %v3799_v21 = vld [vmem:[%s4239_s15 + $0x34] sm:$0xf]  ;;  %v3323_v30 = vor.u32 %v3801_v27, %v3322_v17  ;;  %v3476_v27 = vld [vmem:[%s4239_s15 + $0xb4] sm:$0xf0] }
 0x275   : > { %v3319_v29 = vor.u32 %v3799_v21, %v3316_v24  ;;  %v3839_v24 = vld [vmem:[%s4239_s15 + $0xac] sm:$0xf] }
 0x276   : > { %v1235_v25 = vpack.c.bf16 %v4535_v22, %v4535_v22  ;;  %1713 = vmatpush.bf16.msrb.mxu2 %v3323_v30  ;;  %v3479_v30 = vor.u32 %v3839_v24, %v3476_v27  ;;  %v3416_v27 = vld [vmem:[%s4239_s15 + $0x3c] sm:$0xf0] }
 0x277   : > { %1683 = vmatpush.bf16.msrb.mxu0 %v3363_v36  ;;  %1700 = vmatpush.bf16.msrb.mxu1 %v3319_v29  ;;  %v3304_v36 = vld [vmem:[%s4239_s15 + $0x24] sm:$0xf0]  ;;  %v3841_v29 = vld [vmem:[%s4239_s15 + $0xb8] sm:$0xf0] }
 0x278   : > { %1238 = vst [vmem:[%s1237_s27] sm:$0xf] %v1235_v25  ;;  %1421 = vmatmul.bf16.vlgmr.msra.gmra.mxu1 %v1235_v25  ;;  %1434 = vmatmul.bf16.vlgmr.msra.gmra.mxu2 %v1235_v25  ;;  %v3307_v39 = vor.u32 %v3796_v35, %v3304_v36  ;;  %v3836_v35 = vld [vmem:[%s4239_s15 + $0x94] sm:$0xf]  ;;  %s4690_s27 = scalar_select %p423_p1, 2, 5 }
 0x279   : > { %1447 = vmatmul.bf16.vlgmr.msra.gmra.mxu3 %v1235_v25  ;;  %v3467_v40 = vor.u32 %v3836_v35, %v3464_v37  ;;  %v3410_v37 = vld [vmem:[%s4239_s15 + $0x20] sm:$0xf] }
 0x27a   : > { %1714 = vmatpush.bf16.msrb.mxu2 %v3311_v49  ;;  %v3834_v49 = vld [vmem:[%s4239_s15 + $0x80] sm:$0xf0]  ;;  %s3817_s18 = smul.u32 12, %s4690_s27  ;;  %s3486_s24 = sshll.u32 %s4690_s27, 2 }
 0x27b   : > { %1684 = vmatpush.bf16.msrb.mxu0 %v3351_v50  ;;  %v3291_v50 = vor.u32 %v3794_v42, %v3290_v41  ;;  %1701 = vmatpush.bf16.msrb.mxu1 %v3307_v39  ;;  %v3838_v39 = vld [vmem:[%s4239_s15 + $0xa0] sm:$0xf0]  ;;  %v4636_v42 = vld [vmem:[%s4326_s12] sm:$0x7]  ;;  %s2044_s26 = scalar_lea.vmem %s4383_s17, %s3486_s24 [#allocation6] }
 0x27c   : > { %s4694_s11 = scalar_lea.vmem %s4236_s14, %s3817_s18 [#allocation3] }
 0x27f   : > { %1685 = vmatpush.bf16.msrb.mxu0 %v3339_v63 }
 0x283   : > { %1686 = vmatpush.bf16.msrb.mxu0 %v3327_v12 }
 0x287   : > { %1687 = vmatpush.bf16.msrb.mxu0 %v3315_v23  ;;  %v3840_v23 = vld [vmem:[%s4239_s15 + $0xb0] sm:$0xf0] }
 0x28b   : > { %1688 = vmatpush.bf16.msrb.mxu0 %v3303_v34  ;;  %v3837_v34 = vld [vmem:[%s4239_s15 + $0x98] sm:$0xf0] }
 0x28c   : > { %v3463_v36 = vor.u32 %v3837_v34, %v3462_v33  ;;  %v3822_v33 = vld [vmem:[%s4239_s15 + $0x20] sm:$0xf0]  ;;  %v3821_v34 = vld [vmem:[%s4239_s15 + $0x1c] sm:$0xf] }
 0x28f   : > { %1689 = vmatpush.bf16.msrb.mxu0 %v3291_v50  ;;  %v3833_v50 = vld [vmem:[%s4239_s15 + $0x7c] sm:$0xf] }
 0x293   : > { %1964 = vmatpush.bf16.msra.mxu0 %v3479_v30 }
 0x297   : > { %1965 = vmatpush.bf16.msra.mxu0 %v3467_v40 }
 0x2f5   : > { %v1422_v62 = vpop.f32.mrf.mxu1 }
 0x2f6   : > { %v1423_v3 = vadd.f32 %v1422_v62, %v1279_v55  ;;  %v3295_v55 = vor.u32 %v3793_v52, %v3292_v53  ;;  %v3452_v53 = vld [vmem:[%s4239_s15 + $0x84] sm:$0xf0] }
 0x2f8   : > { %v1453_v8 = vadd.f32 %v1452_v58, %v1423_v3  ;;  %v3299_v58 = vor.u32 %v3795_v57, %v3298_v56  ;;  %1702 = vmatpush.bf16.msrb.mxu1 %v3295_v55  ;;  %v1548_v55 = vperm.slane %v4636_v42, 0  ;;  %v1549_v56 = vperm.slane %v4636_v42, 1 }
 0x2f9   : > { %v3455_v57 = vor.u32 %v3833_v50, %v3452_v53 }
 0x2fa   : > { %v3284_v26 = vmul.f32 -1.442695, %v1453_v8  ;;  %1715 = vmatpush.bf16.msrb.mxu2 %v3299_v58  ;;  %v3835_v58 = vld [vmem:[%s4239_s15 + $0x88] sm:$0xf0] }
 0x2fb   : > { %v1435_v18 = vpop.f32.mrf.mxu2  ;;  %1966 = vmatpush.bf16.msra.mxu0 %v3455_v57 }
 0x2fc   : > { %3980 = vpow2.f32 %v3284_v26  ;;  %v1436_v19 = vadd.f32 %v1435_v18, %v1280_v7  ;;  %v4584_v47 = vpop.f32.mrf.mxu3 }
 0x2fd   : > { %v1424_v25 = vpop.f32.mrf.mxu1  ;;  %v1449_v11 = vadd.f32 %v4584_v47, %v1281_v2 }
 0x2fe   : > { %v1477_v28 = vadd.f32 %v1476_v44, %v1436_v19 }
 0x300   : > { %v3285_v31 = vmul.f32 -1.442695, %v1477_v28  ;;  %v3482_v28 = vld [vmem:[%s4239_s15 + $0xb0] sm:$0xf] }
 0x302   : > { %v3981_v38 = vpop.eup %3980  ;;  %3982 = vpow2.f32 %v3285_v31  ;;  %v3483_v31 = vor.u32 %v3841_v29, %v3482_v28  ;;  %v3422_v28 = vld [vmem:[%s4239_s15 + $0x38] sm:$0xf]  ;;  %v3826_v29 = vld [vmem:[%s4239_s15 + $0x40] sm:$0xf0] }
 0x303   : > { %v1457_v46 = vadd.f32 1.0, %v3981_v38  ;;  %v1437_v48 = vpop.f32.mrf.mxu2  ;;  %v3470_v38 = vld [vmem:[%s4239_s15 + $0x98] sm:$0xf] }
 0x304   : > { %v1450_v54 = vpop.f32.mrf.mxu3  ;;  %1977 = vmatpush.bf16.msra.mxu1 %v3483_v31  ;;  %v3471_v41 = vor.u32 %v3838_v39, %v3470_v38  ;;  %v3450_v48 = vld [vmem:[%s4239_s15 + $0x78] sm:$0xf]  ;;  %v3423_v31 = vor.u32 %v3826_v29, %v3422_v28  ;;  %v3823_v38 = vld [vmem:[%s4239_s15 + $0x28] sm:$0xf0] }
 0x305   : > { %3984 = vrcp.f32 %v1457_v46  ;;  %v1469_v0 = vand.u32 2147483648, %v1457_v46  ;;  %v1467_v4 = vand.u32 2147483647, %v1457_v46  ;;  %vm1463_vm9 = vweird.f32 %v1457_v46  ;;  %v3458_v54 = vld [vmem:[%s4239_s15 + $0x80] sm:$0xf] }
 0x306   : > { %v3451_v52 = vor.u32 %v3834_v49, %v3450_v48  ;;  %v3819_v48 = vld [vmem:[%s4239_s15 + $0x8] sm:$0xf0]  ;;  %v3818_v49 = vld [vmem:[%s4239_s15 + $0x4] sm:$0xf]  ;;  %v3576_v29 = vld [vmem:[%s4239_s15 + $0xb4] sm:$0xf0] }
 0x307   : > { %v1470_v8 = vor.u32 1.1754944e-38, %v1469_v0  ;;  %vm1468_vm11 = vcmp.eq.f32.partialorder %v1467_v4, 8.507059e+37  ;;  %v3830_v0 = vld [vmem:[%s4239_s15 + $0x64] sm:$0xf]  ;;  %v3440_v4 = vld [vmem:[%s4239_s15 + $0x6c] sm:$0xf0] }
 0x308   : > { %v3983_v59 = vpop.eup %3982  ;;  %1978 = vmatpush.bf16.msra.mxu1 %v3471_v41  ;;  %v3411_v41 = vor.u32 %v3823_v38, %v3410_v37  ;;  %v3861_v37 = vld [vmem:[%s4239_s15 + $0x94] sm:$0xf] }
 0x309   : > { %v1481_v60 = vadd.f32 1.0, %v3983_v59  ;;  %v3459_v59 = vor.u32 %v3835_v58, %v3458_v54  ;;  %v3392_v54 = vld [vmem:[%s4239_s15 + $0xc] sm:$0xf0] }
 0x30a   : > { %v3395_v58 = vor.u32 %v3818_v49, %v3392_v54 }
 0x30b   : > { %v3985_v61 = vpop.eup %3984  ;;  %3986 = vrcp.f32 %v1481_v60  ;;  %v1493_v44 = vand.u32 2147483648, %v1481_v60  ;;  %vm1487_vm13 = vweird.f32 %v1481_v60  ;;  %v1491_v15 = vand.u32 2147483647, %v1481_v60 }
 0x30c   : > { %v1459_v62 = vmul.f32 %v3985_v61, %v1457_v46  ;;  %vm1464_vm8 = vweird.f32 %v3985_v61  ;;  %v1743_v46 = vrot.slane %v1512_v32, 4  ;;  %1979 = vmatpush.bf16.msra.mxu1 %v3459_v59  ;;  %v3820_v59 = vld [vmem:[%s4239_s15 + $0x10] sm:$0xf0] }
 0x30d   : > { %vm1465_vm10 = vmor %vm1463_vm9, %vm1464_vm8  ;;  %v1494_v19 = vor.u32 1.1754944e-38, %v1493_v44  ;;  %vm1492_vm15 = vcmp.eq.f32.partialorder %v1491_v15, 8.507059e+37  ;;  %v3434_v44 = vld [vmem:[%s4239_s15 + $0x50] sm:$0xf]  ;;  %v3829_v15 = vld [vmem:[%s4239_s15 + $0x58] sm:$0xf0] }
 0x30e   : > { %v1460_v63 = vsub.f32 1.0, %v1459_v62  ;;  %v3438_v62 = vld [vmem:[%s4239_s15 + $0x60] sm:$0xf] }
 0x310   : > { %v1461_v3 = vmul.f32 %v3985_v61, %v1460_v63  ;;  %v3831_v63 = vld [vmem:[%s4239_s15 + $0x68] sm:$0xf0] }
 0x311   : > { %v3987_v5 = vpop.eup %3986 }
 0x312   : > { %v1483_v6 = vmul.f32 %v3987_v5, %v1481_v60  ;;  %v1462_v7 = vadd.f32 %v3985_v61, %v1461_v3  ;;  %vm1488_vm12 = vweird.f32 %v3987_v5  ;;  %v1721_v60 = vunpack.c.l.bf16 %v1512_v32  ;;  %v3402_v32 = vld [vmem:[%s4239_s15 + $0x18] sm:$0xf] }
 0x313   : > { %vm1489_vm14 = vmor %vm1487_vm13, %vm1488_vm12  ;;  %v3439_v3 = vor.u32 %v3831_v63, %v3438_v62  ;;  %v3403_v35 = vor.u32 %v3822_v33, %v3402_v32 }
 0x314   : > { %v1484_v10 = vsub.f32 1.0, %v1483_v6  ;;  %v1466_v12 = vsel %vm1465_vm10, %v3985_v61, %v1462_v7  ;;  %v1745_v61 = vunpack.c.l.bf16 %v1743_v46  ;;  %v3832_v6 = vld [vmem:[%s4239_s15 + $0x70] sm:$0xf0]  ;;  %v3390_v46 = vld [vmem:[%s4239_s15] sm:$0xf] }
 0x315   : > { %v1471_v45 = vsel %vm1468_vm11, %v1470_v8, %v1466_v12  ;;  %v3391_v53 = vor.u32 %v3819_v48, %v3390_v46  ;;  %v3863_v46 = vld [vmem:[%s4239_s15 + $0xa0] sm:$0xf0] }
 0x316   : > { %v1497_v13 = vmul.f32 %v1471_v45, %v1449_v11  ;;  %v1485_v14 = vmul.f32 %v3987_v5, %v1484_v10  ;;  %v3426_v45 = vld [vmem:[%s4239_s15 + $0x48] sm:$0xf] }
 0x318   : > { %v1499_v43 = vadd.f32 %v1498_v9, %v1497_v13  ;;  %v1486_v26 = vadd.f32 %v3987_v5, %v1485_v14  ;;  %v3443_v9 = vor.u32 %v3830_v0, %v3440_v4  ;;  %v3828_v13 = vld [vmem:[%s4239_s15 + $0x50] sm:$0xf0]  ;;  %v3827_v14 = vld [vmem:[%s4239_s15 + $0x4c] sm:$0xf] }
 0x31a   : > { %3988 = vtanh.f32 %v1499_v43  ;;  %v1490_v16 = vsel %vm1489_vm14, %v3987_v5, %v1486_v26  ;;  %v3446_v5 = vld [vmem:[%s4239_s15 + $0x68] sm:$0xf]  ;;  %1967 = vmatpush.bf16.msra.mxu0 %v3443_v9  ;;  %v3427_v43 = vor.u32 %v3828_v13, %v3426_v45  ;;  %v3428_v26 = vld [vmem:[%s4239_s15 + $0x54] sm:$0xf0] }
 0x31b   : > { %v1495_v51 = vsel %vm1492_vm15, %v1494_v19, %v1490_v16  ;;  %v3447_v10 = vor.u32 %v3832_v6, %v3446_v5  ;;  %v3431_v19 = vor.u32 %v3827_v14, %v3428_v26  ;;  %v1513_v6 = vld [vmem:[%s4620_s9 + $0x8] sm:$0xf] }
 0x31d   : > { %1980 = vmatpush.bf16.msra.mxu1 %v3447_v10 }
 0x31e   : > { %1968 = vmatpush.bf16.msra.mxu0 %v3431_v19 }
 0x320   : > { %v3989_v18 = vpop.eup %3988 }
 0x321   : > { %v1501_v47 = vsub.f32 %v4535_v22, %v3989_v18  ;;  %v3474_v22 = vld [vmem:[%s4239_s15 + $0xa8] sm:$0xf] }
 0x322   : > { %v3475_v17 = vor.u32 %v3840_v23, %v3474_v22  ;;  %v3824_v22 = vld [vmem:[%s4239_s15 + $0x34] sm:$0xf] }
 0x323   : > { %v1502_v20 = vmul.f32 %v1501_v47, %v1495_v51  ;;  %v3435_v47 = vor.u32 %v3829_v15, %v3434_v44  ;;  %v3419_v30 = vor.u32 %v3824_v22, %v3416_v27  ;;  %v4700_v22 = vld [vmem:[%s4326_s12] sm:$0x7]  ;;  %v3864_v27 = vld [vmem:[%s4239_s15 + $0xac] sm:$0xf] }
 0x324   : > { %1951 = vmatpush.bf16.msrb.mxu3 %v3475_v17  ;;  %v3579_v32 = vor.u32 %v3864_v27, %v3576_v29  ;;  %v1817_v54 = vperm.slane %v4700_v22, 0  ;;  %v3522_v27 = vld [vmem:[%s4239_s15 + $0x38] sm:$0xf] }
 0x325   : > { %v4609_v21 = vadd.f32 %v3989_v18, %v1502_v20  ;;  %v3414_v20 = vld [vmem:[%s4239_s15 + $0x30] sm:$0xf]  ;;  %1981 = vmatpush.bf16.msra.mxu1 %v3435_v47  ;;  %1969 = vmatpush.bf16.msra.mxu0 %v3419_v30 }
 0x326   : > { %v3582_v30 = vld [vmem:[%s4239_s15 + $0xb0] sm:$0xf] }
 0x327   : > { %v1504_v25 = vpack.c.bf16 %v4609_v21, %v4609_v21 }
 0x328   : > { %1952 = vmatpush.bf16.msrb.mxu3 %v3463_v36  ;;  %v3404_v36 = vld [vmem:[%s4239_s15 + $0x24] sm:$0xf0] }
 0x329   : > { %1507 = vst [vmem:[%s1506_s28] sm:$0xf] %v1504_v25  ;;  %1690 = vmatmul.bf16.vlgmr.msrb.gmra.mxu0 %v1504_v25  ;;  %1703 = vmatmul.bf16.vlgmr.msrb.gmra.mxu1 %v1504_v25  ;;  %v3407_v40 = vor.u32 %v3821_v34, %v3404_v36  ;;  %v1818_v34 = vperm.slane %v4700_v22, 1  ;;  %v3862_v36 = vld [vmem:[%s4239_s15 + $0x98] sm:$0xf0]  ;;  %s4768_s28 = scalar_select %p423_p1, 1, 6 }
 0x32a   : > { %1716 = vmatmul.bf16.vlgmr.msrb.gmra.mxu2 %v1504_v25  ;;  %v3825_v25 = vld [vmem:[%s4239_s15 + $0x38] sm:$0xf0]  ;;  %1982 = vmatpush.bf16.msra.mxu1 %v3423_v31 }
 0x32b   : > { %v3415_v17 = vor.u32 %v3825_v25, %v3414_v20  ;;  %1970 = vmatpush.bf16.msra.mxu0 %v3407_v40  ;;  %v3866_v31 = vld [vmem:[%s4239_s15 + $0xb8] sm:$0xf0]  ;;  %v3564_v40 = vld [vmem:[%s4239_s15 + $0x9c] sm:$0xf0]  ;;  %s3842_s7 = smul.u32 12, %s4768_s28 }
 0x32c   : > { %1953 = vmatpush.bf16.msrb.mxu3 %v3451_v52  ;;  %v3583_v33 = vor.u32 %v3866_v31, %v3582_v30  ;;  %v3567_v49 = vor.u32 %v3861_v37, %v3564_v40  ;;  %v3504_v37 = vld [vmem:[%s4239_s15 + $0x24] sm:$0xf0] }
 0x32d   : > { %s4772_s8 = scalar_lea.vmem %s4236_s14, %s3842_s7 [#allocation3] }
 0x32e   : > { %1983 = vmatpush.bf16.msra.mxu1 %v3411_v41  ;;  %v3570_v41 = vld [vmem:[%s4239_s15 + $0x98] sm:$0xf] }
 0x32f   : > { %1971 = vmatpush.bf16.msra.mxu0 %v3395_v58 }
 0x330   : > { %1954 = vmatpush.bf16.msrb.mxu3 %v3439_v3  ;;  %v1550_v3 = vperm.slane %v4636_v42, 2 }
 0x333   : > { %2246 = vmatpush.bf16.msrb.mxu0 %v3583_v33  ;;  %v3502_v33 = vld [vmem:[%s4239_s15 + $0x18] sm:$0xf] }
 0x334   : > { %1955 = vmatpush.bf16.msrb.mxu3 %v3427_v43 }
 0x338   : > { %1956 = vmatpush.bf16.msrb.mxu3 %v3415_v17  ;;  %v3865_v17 = vld [vmem:[%s4239_s15 + $0xb0] sm:$0xf0] }
 0x33c   : > { %1957 = vmatpush.bf16.msrb.mxu3 %v3403_v35  ;;  %v3562_v35 = vld [vmem:[%s4239_s15 + $0x90] sm:$0xf] }
 0x340   : > { %1958 = vmatpush.bf16.msrb.mxu3 %v3391_v53 }
 0x344   : > { %2233 = vmatpush.bf16.msra.mxu3 %v3579_v32 }
 0x348   : > { %2234 = vmatpush.bf16.msra.mxu3 %v3567_v49 }
 0x3a6   : > { %v1691_v1 = vpop.f32.mrf.mxu0  ;;  %v1704_v2 = vpop.f32.mrf.mxu1 }
 0x3a7   : > { %v1692_v7 = vadd.f32 %v1691_v1, %v1548_v55  ;;  %v1705_v8 = vadd.f32 %v1704_v2, %v1549_v56  ;;  %v3398_v55 = vld [vmem:[%s4239_s15 + $0x8] sm:$0xf] }
 0x3a9   : > { %v1722_v11 = vadd.f32 %v1721_v60, %v1692_v7  ;;  %v1746_v12 = vadd.f32 %v1745_v61, %v1705_v8  ;;  %v3399_v60 = vor.u32 %v3820_v59, %v3398_v55  ;;  %v3550_v55 = vld [vmem:[%s4239_s15 + $0x78] sm:$0xf] }
 0x3ab   : > { %v3384_v16 = vmul.f32 -1.442695, %v1722_v11  ;;  %v3385_v18 = vmul.f32 -1.442695, %v1746_v12  ;;  %1984 = vmatpush.bf16.msra.mxu1 %v3399_v60  ;;  %v1767_v12 = vunpack.c.l.bf16 %v1513_v6  ;;  %v3552_v60 = vld [vmem:[%s4239_s15 + $0x84] sm:$0xf0] }
 0x3ad   : > { %3990 = vpow2.f32 %v3384_v16  ;;  %v4658_v51 = vpop.f32.mrf.mxu2 }
 0x3ae   : > { %3992 = vpow2.f32 %v3385_v18  ;;  %v1693_v23 = vpop.f32.mrf.mxu0  ;;  %v1706_v24 = vpop.f32.mrf.mxu1  ;;  %v1718_v10 = vadd.f32 %v4658_v51, %v1550_v3  ;;  %v3538_v3 = vld [vmem:[%s4239_s15 + $0x60] sm:$0xf] }
 0x3af   : > { %v3574_v24 = vld [vmem:[%s4239_s15 + $0xa8] sm:$0xf] }
 0x3b0   : > { %v3575_v28 = vor.u32 %v3865_v17, %v3574_v24  ;;  %v3516_v24 = vld [vmem:[%s4239_s15 + $0x3c] sm:$0xf0] }
 0x3b2   : > { %2220 = vmatpush.bf16.msra.mxu2 %v3575_v28  ;;  %v3851_v28 = vld [vmem:[%s4239_s15 + $0x40] sm:$0xf0] }
 0x3b3   : > { %v3991_v39 = vpop.eup %3990  ;;  %v3523_v32 = vor.u32 %v3851_v28, %v3522_v27  ;;  %v3682_v27 = vld [vmem:[%s4239_s15 + $0xb0] sm:$0xf]  ;;  %v3891_v28 = vld [vmem:[%s4239_s15 + $0xb8] sm:$0xf0] }
 0x3b4   : > { %v3993_v50 = vpop.eup %3992  ;;  %v1726_v52 = vadd.f32 1.0, %v3991_v39  ;;  %v3563_v39 = vor.u32 %v3862_v36, %v3562_v35  ;;  %v3846_v35 = vld [vmem:[%s4239_s15 + $0x1c] sm:$0xf] }
 0x3b5   : > { %v1750_v56 = vadd.f32 1.0, %v3993_v50  ;;  %v1719_v57 = vpop.f32.mrf.mxu2  ;;  %v3571_v50 = vor.u32 %v3863_v46, %v3570_v41  ;;  %v3490_v41 = vld [vmem:[%s4239_s15] sm:$0xf] }
 0x3b6   : > { %3994 = vrcp.f32 %v1726_v52  ;;  %v1738_v2 = vand.u32 2147483648, %v1726_v52  ;;  %v1736_v5 = vand.u32 2147483647, %v1726_v52  ;;  %vm1732_vm1 = vweird.f32 %v1726_v52  ;;  %2221 = vmatpush.bf16.msra.mxu2 %v3563_v39  ;;  %v3858_v57 = vld [vmem:[%s4239_s15 + $0x7c] sm:$0xf] }
 0x3b7   : > { %3996 = vrcp.f32 %v1750_v56  ;;  %v1762_v26 = vand.u32 2147483648, %v1750_v56  ;;  %vm1756_vm5 = vweird.f32 %v1750_v56  ;;  %v1760_v44 = vand.u32 2147483647, %v1750_v56  ;;  %2247 = vmatpush.bf16.msrb.mxu0 %v3571_v50  ;;  %v3848_v39 = vld [vmem:[%s4239_s15 + $0x28] sm:$0xf0] }
 0x3b8   : > { %v1739_v9 = vor.u32 1.1754944e-38, %v1738_v2  ;;  %vm1737_vm3 = vcmp.eq.f32.partialorder %v1736_v5, 8.507059e+37  ;;  %v3844_v50 = vld [vmem:[%s4239_s15 + $0x8] sm:$0xf0] }
 0x3b9   : > { %v1763_v18 = vor.u32 1.1754944e-38, %v1762_v26  ;;  %vm1761_vm7 = vcmp.eq.f32.partialorder %v1760_v44, 8.507059e+37  ;;  %v3528_v26 = vld [vmem:[%s4239_s15 + $0x54] sm:$0xf0]  ;;  %v3534_v44 = vld [vmem:[%s4239_s15 + $0x50] sm:$0xf] }
 0x3bc   : > { %v3995_v61 = vpop.eup %3994 }
 0x3bd   : > { %v3997_v62 = vpop.eup %3996  ;;  %v1728_v63 = vmul.f32 %v3995_v61, %v1726_v52  ;;  %vm1733_vm0 = vweird.f32 %v3995_v61 }
 0x3be   : > { %v1752_v1 = vmul.f32 %v3997_v62, %v1750_v56  ;;  %vm1734_vm2 = vmor %vm1732_vm1, %vm1733_vm0  ;;  %vm1757_vm4 = vweird.f32 %v3997_v62  ;;  %v3859_v56 = vld [vmem:[%s4239_s15 + $0x80] sm:$0xf0] }
 0x3bf   : > { %v1729_v0 = vsub.f32 1.0, %v1728_v63  ;;  %vm1758_vm6 = vmor %vm1756_vm5, %vm1757_vm4  ;;  %v3551_v59 = vor.u32 %v3859_v56, %v3550_v55  ;;  %v3555_v63 = vor.u32 %v3858_v57, %v3552_v60  ;;  %v3492_v55 = vld [vmem:[%s4239_s15 + $0xc] sm:$0xf0]  ;;  %v3498_v56 = vld [vmem:[%s4239_s15 + $0x8] sm:$0xf] }
 0x3c0   : > { %v1753_v8 = vsub.f32 1.0, %v1752_v1  ;;  %v3845_v57 = vld [vmem:[%s4239_s15 + $0x10] sm:$0xf0] }
 0x3c1   : > { %v1730_v4 = vmul.f32 %v3995_v61, %v1729_v0  ;;  %2222 = vmatpush.bf16.msra.mxu2 %v3551_v59  ;;  %2235 = vmatpush.bf16.msra.mxu3 %v3555_v63  ;;  %v3491_v59 = vor.u32 %v3844_v50, %v3490_v41 }
 0x3c2   : > { %v1754_v14 = vmul.f32 %v3997_v62, %v1753_v8  ;;  %v3540_v8 = vld [vmem:[%s4239_s15 + $0x6c] sm:$0xf0] }
 0x3c3   : > { %v1731_v7 = vadd.f32 %v3995_v61, %v1730_v4  ;;  %v3856_v4 = vld [vmem:[%s4239_s15 + $0x68] sm:$0xf0] }
 0x3c4   : > { %v1755_v42 = vadd.f32 %v3997_v62, %v1754_v14  ;;  %v3539_v6 = vor.u32 %v3856_v4, %v3538_v3  ;;  %v1819_v4 = vperm.slane %v4700_v22, 2 }
 0x3c5   : > { %v1735_v11 = vsel %vm1734_vm2, %v3995_v61, %v1731_v7  ;;  %v3558_v61 = vld [vmem:[%s4239_s15 + $0x80] sm:$0xf]  ;;  %v3855_v7 = vld [vmem:[%s4239_s15 + $0x64] sm:$0xf] }
 0x3c6   : > { %v1740_v45 = vsel %vm1737_vm3, %v1739_v9, %v1735_v11  ;;  %v1759_v15 = vsel %vm1758_vm6, %v3997_v62, %v1755_v42  ;;  %v3860_v62 = vld [vmem:[%s4239_s15 + $0x88] sm:$0xf0]  ;;  %v3546_v9 = vld [vmem:[%s4239_s15 + $0x68] sm:$0xf]  ;;  %v3543_v11 = vor.u32 %v3855_v7, %v3540_v8  ;;  %2223 = vmatpush.bf16.msra.mxu2 %v3539_v6 }
 0x3c7   : > { %v1766_v13 = vmul.f32 %v1740_v45, %v1718_v10  ;;  %v1764_v47 = vsel %vm1761_vm7, %v1763_v18, %v1759_v15  ;;  %v3559_v0 = vor.u32 %v3860_v62, %v3558_v61  ;;  %v3526_v45 = vld [vmem:[%s4239_s15 + $0x48] sm:$0xf]  ;;  %v3852_v42 = vld [vmem:[%s4239_s15 + $0x4c] sm:$0xf]  ;;  %v3499_v61 = vor.u32 %v3845_v57, %v3498_v56 }
 0x3c8   : > { %2236 = vmatpush.bf16.msra.mxu3 %v3543_v11  ;;  %v1782_v7 = vld [vmem:[%s4694_s11 + $0x8] sm:$0xf] }
 0x3c9   : > { %v1768_v43 = vadd.f32 %v1767_v12, %v1766_v13  ;;  %2248 = vmatpush.bf16.msrb.mxu0 %v3559_v0  ;;  %v3857_v12 = vld [vmem:[%s4239_s15 + $0x70] sm:$0xf0]  ;;  %v2036_v11 = vunpack.c.l.bf16 %v1782_v7  ;;  %v3652_v57 = vld [vmem:[%s4239_s15 + $0x84] sm:$0xf0] }
 0x3ca   : > { %v3853_v13 = vld [vmem:[%s4239_s15 + $0x50] sm:$0xf0] }
 0x3cb   : > { %3998 = vtanh.f32 %v1768_v43  ;;  %v3547_v43 = vor.u32 %v3857_v12, %v3546_v9  ;;  %v3527_v18 = vor.u32 %v3853_v13, %v3526_v45 }
 0x3cd   : > { %2249 = vmatpush.bf16.msrb.mxu0 %v3547_v43  ;;  %2224 = vmatpush.bf16.msra.mxu2 %v3527_v18 }
 0x3d1   : > { %v3999_v16 = vpop.eup %3998 }
 0x3d2   : > { %v1770_v19 = vsub.f32 %v4609_v21, %v3999_v16  ;;  %v4697_v21 = vld [vmem:[%s4694_s11] sm:$0xff]  ;;  %s422_s11 = scalar_lea.vmem %s4896_s5, %s2885_s16 }
 0x3d3   : > { %v2012_v23 = vrot.slane %v4697_v21, 4  ;;  %v1990_v2 = vunpack.c.l.bf16 %v4697_v21  ;;  %v3850_v21 = vld [vmem:[%s4239_s15 + $0x38] sm:$0xf0] }
 0x3d4   : > { %v1771_v51 = vmul.f32 %v1770_v19, %v1764_v47  ;;  %v3854_v19 = vld [vmem:[%s4239_s15 + $0x58] sm:$0xf0]  ;;  %v3514_v47 = vld [vmem:[%s4239_s15 + $0x30] sm:$0xf] }
 0x3d5   : > { %v2014_v38 = vunpack.c.l.bf16 %v2012_v23  ;;  %v3849_v23 = vld [vmem:[%s4239_s15 + $0x34] sm:$0xf]  ;;  %v3515_v29 = vor.u32 %v3850_v21, %v3514_v47 }
 0x3d6   : > { %v4683_v20 = vadd.f32 %v3999_v16, %v1771_v51  ;;  %v3531_v51 = vor.u32 %v3852_v42, %v3528_v26  ;;  %v3519_v31 = vor.u32 %v3849_v23, %v3516_v24  ;;  %v3890_v21 = vld [vmem:[%s4239_s15 + $0xb0] sm:$0xf0]  ;;  %v3889_v23 = vld [vmem:[%s4239_s15 + $0xac] sm:$0xf] }
 0x3d7   : > { %2225 = vmatpush.bf16.msra.mxu2 %v3515_v29 }
 0x3d8   : > { %v1773_v25 = vpack.c.bf16 %v4683_v20, %v4683_v20  ;;  %2237 = vmatpush.bf16.msra.mxu3 %v3531_v51 }
 0x3da   : > { %1776 = vst [vmem:[%s1775_s13] sm:$0xf] %v1773_v25  ;;  %1959 = vmatmul.bf16.vlgmr.msrb.gmra.mxu3 %v1773_v25  ;;  %1972 = vmatmul.bf16.vlgmr.msra.gmra.mxu0 %v1773_v25  ;;  %s3867_s13 = smul.u32 12, %s4842_s10 }
 0x3db   : > { %1985 = vmatmul.bf16.vlgmr.msra.gmra.mxu1 %v1773_v25  ;;  %v3535_v25 = vor.u32 %v3854_v19, %v3534_v44 }
 0x3dc   : > { %2238 = vmatpush.bf16.msra.mxu3 %v3519_v31  ;;  %v2050_v31 = vld [vmem:[%s4772_s8] sm:$0xff]  ;;  %s4846_s27 = scalar_lea.vmem %s4236_s14, %s3867_s13 [#allocation3]  ;;  %s3686_s14 = sshll.u32 %s4842_s10, 2 }
 0x3dd   : > { %2250 = vmatpush.bf16.msrb.mxu0 %v3535_v25  ;;  %v2281_v50 = vrot.slane %v2050_v31, 4  ;;  %s2582_s24 = scalar_lea.vmem %s4383_s17, %s3686_s14 [#allocation6] }
 0x3e1   : > { %2251 = vmatpush.bf16.msrb.mxu0 %v3523_v32  ;;  %v3662_v32 = vld [vmem:[%s4239_s15 + $0x90] sm:$0xf] }
 0x457   : > { %v1973_v48 = vpop.f32.mrf.mxu0 }
 0x458   : > { %v1974_v52 = vadd.f32 %v1973_v48, %v1818_v34  ;;  %v4716_v53 = vpop.f32.mrf.mxu1  ;;  %v3847_v34 = vld [vmem:[%s4239_s15 + $0x20] sm:$0xf0]  ;;  %v3507_v48 = vor.u32 %v3846_v35, %v3504_v37  ;;  %v3670_v37 = vld [vmem:[%s4239_s15 + $0x98] sm:$0xf] }
 0x459   : > { %v3503_v40 = vor.u32 %v3847_v34, %v3502_v33  ;;  %v1987_v12 = vadd.f32 %v4716_v53, %v1819_v4  ;;  %v3887_v33 = vld [vmem:[%s4239_s15 + $0x98] sm:$0xf0]  ;;  %v3886_v34 = vld [vmem:[%s4239_s15 + $0x94] sm:$0xf]  ;;  %v3880_v4 = vld [vmem:[%s4239_s15 + $0x64] sm:$0xf] }
 0x45a   : > { %v2015_v58 = vadd.f32 %v2014_v38, %v1974_v52  ;;  %v3510_v38 = vld [vmem:[%s4239_s15 + $0x20] sm:$0xf]  ;;  %v3843_v52 = vld [vmem:[%s4239_s15 + $0x4] sm:$0xf]  ;;  %2239 = vmatpush.bf16.msra.mxu3 %v3507_v48  ;;  %v3663_v35 = vor.u32 %v3887_v33, %v3662_v32 }
 0x45b   : > { %v3511_v49 = vor.u32 %v3848_v39, %v3510_v38  ;;  %2226 = vmatpush.bf16.msra.mxu2 %v3503_v40  ;;  %v3495_v60 = vor.u32 %v3843_v52, %v3492_v55  ;;  %v3888_v38 = vld [vmem:[%s4239_s15 + $0xa0] sm:$0xf0]  ;;  %v4788_v39 = vld [vmem:[%s4326_s12] sm:$0x7]  ;;  %v3650_v52 = vld [vmem:[%s4239_s15 + $0x78] sm:$0xf] }
 0x45c   : > { %v3485_v1 = vmul.f32 -1.442695, %v2015_v58  ;;  %v3671_v41 = vor.u32 %v3888_v38, %v3670_v37  ;;  %v2086_v48 = vperm.slane %v4788_v39, 0  ;;  %v3883_v55 = vld [vmem:[%s4239_s15 + $0x7c] sm:$0xf] }
 0x45d   : > { %v1960_v5 = vpop.f32.mrf.mxu3  ;;  %2252 = vmatpush.bf16.msrb.mxu0 %v3511_v49  ;;  %v2087_v49 = vperm.slane %v4788_v39, 1  ;;  %v3872_v33 = vld [vmem:[%s4239_s15 + $0x20] sm:$0xf0]  ;;  %v3873_v37 = vld [vmem:[%s4239_s15 + $0x28] sm:$0xf0] }
 0x45e   : > { %v1961_v10 = vadd.f32 %v1960_v5, %v1817_v54  ;;  %4000 = vpow2.f32 %v3485_v1  ;;  %2240 = vmatpush.bf16.msra.mxu3 %v3495_v60  ;;  %v3655_v60 = vor.u32 %v3883_v55, %v3652_v57  ;;  %v3598_v57 = vld [vmem:[%s4239_s15 + $0x8] sm:$0xf] }
 0x45f   : > { %v1975_v14 = vpop.f32.mrf.mxu0  ;;  %2227 = vmatpush.bf16.msra.mxu2 %v3491_v59  ;;  %v3885_v59 = vld [vmem:[%s4239_s15 + $0x88] sm:$0xf0] }
 0x460   : > { %v1991_v15 = vadd.f32 %v1990_v2, %v1961_v10  ;;  %v1988_v16 = vpop.f32.mrf.mxu1 }
 0x461   : > { %2253 = vmatpush.bf16.msrb.mxu0 %v3499_v61 }
 0x462   : > { %v3484_v17 = vmul.f32 -1.442695, %v1991_v15 }
 0x464   : > { %4002 = vpow2.f32 %v3484_v17  ;;  %v4001_v36 = vpop.eup %4000  ;;  %v3676_v17 = vld [vmem:[%s4239_s15 + $0xb4] sm:$0xf0] }
 0x465   : > { %v1962_v30 = vpop.f32.mrf.mxu3  ;;  %v2019_v46 = vadd.f32 1.0, %v4001_v36  ;;  %v3679_v29 = vor.u32 %v3889_v23, %v3676_v17  ;;  %v3664_v36 = vld [vmem:[%s4239_s15 + $0x9c] sm:$0xf0] }
 0x466   : > { %v3683_v30 = vor.u32 %v3891_v28, %v3682_v27  ;;  %v3667_v40 = vor.u32 %v3886_v34, %v3664_v36  ;;  %v3616_v23 = vld [vmem:[%s4239_s15 + $0x3c] sm:$0xf0]  ;;  %v3871_v34 = vld [vmem:[%s4239_s15 + $0x1c] sm:$0xf] }
 0x467   : > { %v2031_v26 = vand.u32 2147483648, %v2019_v46  ;;  %vm2025_vm13 = vweird.f32 %v2019_v46  ;;  %v2029_v44 = vand.u32 2147483647, %v2019_v46  ;;  %2502 = vmatpush.bf16.msrb.mxu2 %v3679_v29  ;;  %v3622_v29 = vld [vmem:[%s4239_s15 + $0x38] sm:$0xf] }
 0x468   : > { %2515 = vmatpush.bf16.msrb.mxu3 %v3683_v30  ;;  %v3876_v30 = vld [vmem:[%s4239_s15 + $0x40] sm:$0xf0]  ;;  %v3610_v36 = vld [vmem:[%s4239_s15 + $0x20] sm:$0xf] }
 0x469   : > { %v2032_v53 = vor.u32 1.1754944e-38, %v2031_v26  ;;  %vm2030_vm15 = vcmp.eq.f32.partialorder %v2029_v44, 8.507059e+37  ;;  %v3623_v32 = vor.u32 %v3876_v30, %v3622_v29 }
 0x46a   : > { %v4003_v54 = vpop.eup %4002 }
 0x46b   : > { %v1995_v58 = vadd.f32 1.0, %v4003_v54  ;;  %2503 = vmatpush.bf16.msrb.mxu2 %v3667_v40  ;;  %v3884_v54 = vld [vmem:[%s4239_s15 + $0x80] sm:$0xf0] }
 0x46c   : > { %2516 = vmatpush.bf16.msrb.mxu3 %v3671_v41  ;;  %v3651_v56 = vor.u32 %v3884_v54, %v3650_v52  ;;  %v3590_v41 = vld [vmem:[%s4239_s15] sm:$0xf]  ;;  %v3868_v52 = vld [vmem:[%s4239_s15 + $0x4] sm:$0xf]  ;;  %v3592_v54 = vld [vmem:[%s4239_s15 + $0xc] sm:$0xf0] }
 0x46d   : > { %4004 = vrcp.f32 %v1995_v58  ;;  %v2007_v3 = vand.u32 2147483648, %v1995_v58  ;;  %v2005_v6 = vand.u32 2147483647, %v1995_v58  ;;  %vm2001_vm9 = vweird.f32 %v1995_v58 }
 0x46e   : > { %4006 = vrcp.f32 %v2019_v46 }
 0x46f   : > { %v2008_v10 = vor.u32 1.1754944e-38, %v2007_v3  ;;  %vm2006_vm11 = vcmp.eq.f32.partialorder %v2005_v6, 8.507059e+37  ;;  %2504 = vmatpush.bf16.msrb.mxu2 %v3655_v60  ;;  %v3881_v3 = vld [vmem:[%s4239_s15 + $0x68] sm:$0xf0] }
 0x473   : > { %v4005_v62 = vpop.eup %4004 }
 0x474   : > { %v4007_v63 = vpop.eup %4006  ;;  %v1997_v0 = vmul.f32 %v4005_v62, %v1995_v58  ;;  %vm2002_vm8 = vweird.f32 %v4005_v62  ;;  %v3658_v58 = vld [vmem:[%s4239_s15 + $0x80] sm:$0xf] }
 0x475   : > { %v2021_v2 = vmul.f32 %v4007_v63, %v2019_v46  ;;  %vm2003_vm10 = vmor %vm2001_vm9, %vm2002_vm8  ;;  %vm2026_vm12 = vweird.f32 %v4007_v63  ;;  %v3659_v61 = vor.u32 %v3885_v59, %v3658_v58  ;;  %v3870_v58 = vld [vmem:[%s4239_s15 + $0x10] sm:$0xf0] }
 0x476   : > { %v1998_v1 = vsub.f32 1.0, %v1997_v0  ;;  %vm2027_vm14 = vmor %vm2025_vm13, %vm2026_vm12 }
 0x477   : > { %v2022_v9 = vsub.f32 1.0, %v2021_v2  ;;  %2517 = vmatpush.bf16.msrb.mxu3 %v3659_v61  ;;  %v3638_v2 = vld [vmem:[%s4239_s15 + $0x60] sm:$0xf]  ;;  %v3595_v61 = vor.u32 %v3868_v52, %v3592_v54 }
 0x478   : > { %v1999_v5 = vmul.f32 %v4005_v62, %v1998_v1  ;;  %v3639_v7 = vor.u32 %v3881_v3, %v3638_v2 }
 0x479   : > { %v2023_v43 = vmul.f32 %v4007_v63, %v2022_v9  ;;  %v3646_v9 = vld [vmem:[%s4239_s15 + $0x68] sm:$0xf] }
 0x47a   : > { %v2000_v8 = vadd.f32 %v4005_v62, %v1999_v5 }
 0x47b   : > { %v2024_v22 = vadd.f32 %v4007_v63, %v2023_v43  ;;  %v3626_v43 = vld [vmem:[%s4239_s15 + $0x48] sm:$0xf] }
 0x47c   : > { %v2004_v45 = vsel %vm2003_vm10, %v4005_v62, %v2000_v8  ;;  %v2259_v62 = vunpack.c.l.bf16 %v2050_v31  ;;  %v3640_v8 = vld [vmem:[%s4239_s15 + $0x6c] sm:$0xf0]  ;;  %v3602_v31 = vld [vmem:[%s4239_s15 + $0x18] sm:$0xf] }
 0x47d   : > { %v2009_v13 = vsel %vm2006_vm11, %v2008_v10, %v2004_v45  ;;  %v2028_v15 = vsel %vm2027_vm14, %v4007_v63, %v2024_v22  ;;  %v2283_v63 = vunpack.c.l.bf16 %v2281_v50  ;;  %v3882_v10 = vld [vmem:[%s4239_s15 + $0x70] sm:$0xf0]  ;;  %v3877_v22 = vld [vmem:[%s4239_s15 + $0x4c] sm:$0xf]  ;;  %v3603_v38 = vor.u32 %v3872_v33, %v3602_v31 }
 0x47e   : > { %v2035_v14 = vmul.f32 %v2009_v13, %v1987_v12  ;;  %v2033_v19 = vsel %vm2030_vm15, %v2032_v53, %v2028_v15  ;;  %v3647_v12 = vor.u32 %v3882_v10, %v3646_v9  ;;  %v3611_v50 = vor.u32 %v3873_v37, %v3610_v36 }
 0x480   : > { %v2037_v42 = vadd.f32 %v2036_v11, %v2035_v14  ;;  %v3643_v11 = vor.u32 %v3880_v4, %v3640_v8  ;;  %2518 = vmatpush.bf16.msrb.mxu3 %v3647_v12  ;;  %v2051_v8 = vld [vmem:[%s4772_s8 + $0x8] sm:$0xf] }
 0x482   : > { %4008 = vtanh.f32 %v2037_v42  ;;  %2505 = vmatpush.bf16.msrb.mxu2 %v3643_v11  ;;  %v3878_v42 = vld [vmem:[%s4239_s15 + $0x50] sm:$0xf0] }
 0x483   : > { %v3627_v15 = vor.u32 %v3878_v42, %v3626_v43 }
 0x488   : > { %v4009_v16 = vpop.eup %4008 }
 0x489   : > { %v2039_v18 = vsub.f32 %v4683_v20, %v4009_v16  ;;  %v3674_v20 = vld [vmem:[%s4239_s15 + $0xa8] sm:$0xf] }
 0x48a   : > { %v3675_v24 = vor.u32 %v3890_v21, %v3674_v20  ;;  %v3875_v20 = vld [vmem:[%s4239_s15 + $0x38] sm:$0xf0]  ;;  %v3874_v21 = vld [vmem:[%s4239_s15 + $0x34] sm:$0xf] }
 0x48b   : > { %v2040_v47 = vmul.f32 %v2039_v18, %v2033_v19  ;;  %v3634_v18 = vld [vmem:[%s4239_s15 + $0x50] sm:$0xf]  ;;  %v3879_v19 = vld [vmem:[%s4239_s15 + $0x58] sm:$0xf0]  ;;  %v3619_v28 = vor.u32 %v3874_v21, %v3616_v23 }
 0x48c   : > { %2489 = vmatpush.bf16.msrb.mxu1 %v3675_v24 }
 0x48d   : > { %v4761_v51 = vadd.f32 %v4009_v16, %v2040_v47  ;;  %v3628_v16 = vld [vmem:[%s4239_s15 + $0x54] sm:$0xf0]  ;;  %v3614_v47 = vld [vmem:[%s4239_s15 + $0x30] sm:$0xf] }
 0x48e   : > { %v3631_v53 = vor.u32 %v3877_v22, %v3628_v16  ;;  %v3615_v27 = vor.u32 %v3875_v20, %v3614_v47  ;;  %v2319_v20 = vld [vmem:[%s4846_s27] sm:$0xff] }
 0x48f   : > { %v2042_v25 = vpack.c.bf16 %v4761_v51, %v4761_v51  ;;  %v2528_v23 = vunpack.c.l.bf16 %v2319_v20 }
 0x490   : > { %2490 = vmatpush.bf16.msrb.mxu1 %v3663_v35  ;;  %2506 = vmatpush.bf16.msrb.mxu2 %v3631_v53  ;;  %v3604_v35 = vld [vmem:[%s4239_s15 + $0x24] sm:$0xf0] }
 0x491   : > { %2045 = vst [vmem:[%s2044_s26] sm:$0xf] %v2042_v25  ;;  %2228 = vmatmul.bf16.vlgmr.msra.gmra.mxu2 %v2042_v25  ;;  %2241 = vmatmul.bf16.vlgmr.msra.gmra.mxu3 %v2042_v25  ;;  %v3607_v40 = vor.u32 %v3871_v34, %v3604_v35 }
 0x492   : > { %2254 = vmatmul.bf16.vlgmr.msrb.gmra.mxu0 %v2042_v25  ;;  %v3635_v25 = vor.u32 %v3879_v19, %v3634_v18 }
 0x494   : > { %2491 = vmatpush.bf16.msrb.mxu1 %v3651_v56  ;;  %2519 = vmatpush.bf16.msrb.mxu3 %v3635_v25 }
 0x495   : > { %2507 = vmatpush.bf16.msrb.mxu2 %v3619_v28 }
 0x498   : > { %2492 = vmatpush.bf16.msrb.mxu1 %v3639_v7  ;;  %2520 = vmatpush.bf16.msrb.mxu3 %v3623_v32 }
 0x499   : > { %2508 = vmatpush.bf16.msrb.mxu2 %v3607_v40 }
 0x49c   : > { %2493 = vmatpush.bf16.msrb.mxu1 %v3627_v15  ;;  %2521 = vmatpush.bf16.msrb.mxu3 %v3611_v50 }
 0x49d   : > { %2509 = vmatpush.bf16.msrb.mxu2 %v3595_v61 }
 0x4a0   : > { %2494 = vmatpush.bf16.msrb.mxu1 %v3615_v27  ;;  %v2550_v27 = vrot.slane %v2319_v20, 4 }
 0x4a2   : > { %v2552_v31 = vunpack.c.l.bf16 %v2550_v27 }
 0x4a4   : > { %2495 = vmatpush.bf16.msrb.mxu1 %v3603_v38 }
 0x50f   : > { %v4790_v46 = vpop.f32.mrf.mxu0 }
 0x514   : > { %v2229_v0 = vpop.f32.mrf.mxu2  ;;  %v2242_v1 = vpop.f32.mrf.mxu3 }
 0x515   : > { %v2230_v5 = vadd.f32 %v2229_v0, %v2086_v48  ;;  %v2243_v6 = vadd.f32 %v2242_v1, %v2087_v49  ;;  %v3869_v48 = vld [vmem:[%s4239_s15 + $0x8] sm:$0xf0]  ;;  %s3586_s15 = sshll.u32 %s4768_s28, 2  ;;  %s2609_s28 = scalar_lea.vmem (%p4192_p9), %s4895_s4, %s3688_s29 }
 0x516   : > { %v3591_v60 = vor.u32 %v3869_v48, %v3590_v41  ;;  %s2313_s9 = scalar_lea.vmem %s4383_s17, %s3586_s15 [#allocation6] }
 0x517   : > { %v2260_v45 = vadd.f32 %v2259_v62, %v2230_v5  ;;  %v2284_v13 = vadd.f32 %v2283_v63, %v2243_v6  ;;  %v2257_v14 = vpop.f32.mrf.mxu0  ;;  %v3599_v62 = vor.u32 %v3870_v58, %v3598_v57  ;;  %v2088_v5 = vperm.slane %v4788_v39, 2  ;;  %v2320_v57 = vld [vmem:[%s4846_s27 + $0x8] sm:$0xf] }
 0x518   : > { %2496 = vmatpush.bf16.msrb.mxu1 %v3591_v60 }
 0x519   : > { %v3584_v26 = vmul.f32 -1.442695, %v2260_v45  ;;  %v3585_v44 = vmul.f32 -1.442695, %v2284_v13  ;;  %2522 = vmatpush.bf16.msrb.mxu3 %v3599_v62  ;;  %v2256_v12 = vadd.f32 %v4790_v46, %v2088_v5  ;;  %v2305_v13 = vunpack.c.l.bf16 %v2051_v8 }
 0x51b   : > { %4010 = vpow2.f32 %v3584_v26 }
 0x51c   : > { %4012 = vpow2.f32 %v3585_v44  ;;  %v2231_v24 = vpop.f32.mrf.mxu2  ;;  %v2244_v17 = vpop.f32.mrf.mxu3 }
 0x521   : > { %v4011_v49 = vpop.eup %4010 }
 0x522   : > { %v4013_v55 = vpop.eup %4012  ;;  %v2264_v56 = vadd.f32 1.0, %v4011_v49 }
 0x523   : > { %v2288_v59 = vadd.f32 1.0, %v4013_v55 }
 0x524   : > { %4014 = vrcp.f32 %v2264_v56  ;;  %v2276_v3 = vand.u32 2147483648, %v2264_v56  ;;  %v2274_v7 = vand.u32 2147483647, %v2264_v56  ;;  %vm2270_vm1 = vweird.f32 %v2264_v56 }
 0x525   : > { %4016 = vrcp.f32 %v2288_v59  ;;  %v2300_v26 = vand.u32 2147483648, %v2288_v59  ;;  %vm2294_vm5 = vweird.f32 %v2288_v59  ;;  %v2298_v44 = vand.u32 2147483647, %v2288_v59 }
 0x526   : > { %v2277_v10 = vor.u32 1.1754944e-38, %v2276_v3  ;;  %vm2275_vm3 = vcmp.eq.f32.partialorder %v2274_v7, 8.507059e+37 }
 0x527   : > { %v2301_v46 = vor.u32 1.1754944e-38, %v2300_v26  ;;  %vm2299_vm7 = vcmp.eq.f32.partialorder %v2298_v44, 8.507059e+37 }
 0x52a   : > { %v4015_v63 = vpop.eup %4014 }
 0x52b   : > { %v4017_v0 = vpop.eup %4016  ;;  %v2266_v1 = vmul.f32 %v4015_v63, %v2264_v56  ;;  %vm2271_vm0 = vweird.f32 %v4015_v63 }
 0x52c   : > { %v2290_v4 = vmul.f32 %v4017_v0, %v2288_v59  ;;  %vm2272_vm2 = vmor %vm2270_vm1, %vm2271_vm0  ;;  %vm2295_vm4 = vweird.f32 %v4017_v0 }
 0x52d   : > { %v2267_v2 = vsub.f32 1.0, %v2266_v1  ;;  %vm2296_vm6 = vmor %vm2294_vm5, %vm2295_vm4  ;;  %v2574_v1 = vunpack.c.l.bf16 %v2320_v57 }
 0x52e   : > { %v2291_v11 = vsub.f32 1.0, %v2290_v4 }
 0x52f   : > { %v2268_v6 = vmul.f32 %v4015_v63, %v2267_v2 }
 0x530   : > { %v2292_v42 = vmul.f32 %v4017_v0, %v2291_v11 }
 0x531   : > { %v2269_v9 = vadd.f32 %v4015_v63, %v2268_v6 }
 0x532   : > { %v2293_v39 = vadd.f32 %v4017_v0, %v2292_v42 }
 0x533   : > { %v2273_v45 = vsel %vm2272_vm2, %v4015_v63, %v2269_v9 }
 0x534   : > { %v2278_v14 = vsel %vm2275_vm3, %v2277_v10, %v2273_v45  ;;  %v2297_v15 = vsel %vm2296_vm6, %v4017_v0, %v2293_v39 }
 0x535   : > { %v2304_v43 = vmul.f32 %v2278_v14, %v2256_v12  ;;  %v2302_v18 = vsel %vm2299_vm7, %v2301_v46, %v2297_v15 }
 0x537   : > { %v2306_v22 = vadd.f32 %v2305_v13, %v2304_v43 }
 0x539   : > { %4018 = vtanh.f32 %v2306_v22 }
 0x53f   : > { %v4019_v16 = vpop.eup %4018 }
 0x540   : > { %v2308_v53 = vsub.f32 %v4761_v51, %v4019_v16  ;;  %v2353_v51 = vld [vmem:[%s4326_s12] sm:$0x7] }
 0x541   : > { %v2355_v21 = vperm.slane %v2353_v51, 0  ;;  %v2356_v29 = vperm.slane %v2353_v51, 1  ;;  %v2357_v58 = vperm.slane %v2353_v51, 2 }
 0x542   : > { %v2309_v19 = vmul.f32 %v2308_v53, %v2302_v18 }
 0x544   : > { %v4835_v47 = vadd.f32 %v4019_v16, %v2309_v19 }
 0x546   : > { %v2311_v25 = vpack.c.bf16 %v4835_v47, %v4835_v47 }
 0x548   : > { %2314 = vst [vmem:[%s2313_s9] sm:$0xf] %v2311_v25  ;;  %2497 = vmatmul.bf16.vlgmr.msrb.gmra.mxu1 %v2311_v25  ;;  %2510 = vmatmul.bf16.vlgmr.msrb.gmra.mxu2 %v2311_v25 }
 0x549   : > { %2523 = vmatmul.bf16.vlgmr.msrb.gmra.mxu3 %v2311_v25 }
 0x5c5   : > { %v2498_v24 = vpop.f32.mrf.mxu1 }
 0x5c6   : > { %v2499_v17 = vadd.f32 %v2498_v24, %v2355_v21 }
 0x5c8   : > { %v2529_v28 = vadd.f32 %v2528_v23, %v2499_v17 }
 0x5ca   : > { %v3684_v30 = vmul.f32 -1.442695, %v2529_v28 }
 0x5cb   : > { %v2511_v32 = vpop.f32.mrf.mxu2 }
 0x5cc   : > { %4020 = vpow2.f32 %v3684_v30  ;;  %v2512_v33 = vadd.f32 %v2511_v32, %v2356_v29  ;;  %v2524_v34 = vpop.f32.mrf.mxu3 }
 0x5cd   : > { %v2500_v35 = vpop.f32.mrf.mxu1  ;;  %v2525_v3 = vadd.f32 %v2524_v34, %v2357_v58 }
 0x5ce   : > { %v2553_v36 = vadd.f32 %v2552_v31, %v2512_v33 }
 0x5d0   : > { %v3685_v37 = vmul.f32 -1.442695, %v2553_v36 }
 0x5d2   : > { %v4021_v38 = vpop.eup %4020  ;;  %4022 = vpow2.f32 %v3685_v37 }
 0x5d3   : > { %v2533_v40 = vadd.f32 1.0, %v4021_v38  ;;  %v2513_v41 = vpop.f32.mrf.mxu2 }
 0x5d4   : > { %v2526_v48 = vpop.f32.mrf.mxu3 }
 0x5d5   : > { %4024 = vrcp.f32 %v2533_v40  ;;  %v2545_v56 = vand.u32 2147483648, %v2533_v40  ;;  %v2543_v60 = vand.u32 2147483647, %v2533_v40  ;;  %vm2539_vm9 = vweird.f32 %v2533_v40 }
 0x5d7   : > { %v2546_v0 = vor.u32 1.1754944e-38, %v2545_v56  ;;  %vm2544_vm11 = vcmp.eq.f32.partialorder %v2543_v60, 8.507059e+37 }
 0x5d8   : > { %v4023_v49 = vpop.eup %4022 }
 0x5d9   : > { %v2557_v50 = vadd.f32 1.0, %v4023_v49 }
 0x5db   : > { %v4025_v52 = vpop.eup %4024  ;;  %4026 = vrcp.f32 %v2557_v50  ;;  %v2569_v10 = vand.u32 2147483648, %v2557_v50  ;;  %vm2563_vm13 = vweird.f32 %v2557_v50  ;;  %v2567_v11 = vand.u32 2147483647, %v2557_v50 }
 0x5dc   : > { %v2535_v54 = vmul.f32 %v4025_v52, %v2533_v40  ;;  %vm2540_vm8 = vweird.f32 %v4025_v52 }
 0x5dd   : > { %vm2541_vm10 = vmor %vm2539_vm9, %vm2540_vm8  ;;  %v2570_v13 = vor.u32 1.1754944e-38, %v2569_v10  ;;  %vm2568_vm15 = vcmp.eq.f32.partialorder %v2567_v11, 8.507059e+37 }
 0x5de   : > { %v2536_v55 = vsub.f32 1.0, %v2535_v54 }
 0x5e0   : > { %v2537_v59 = vmul.f32 %v4025_v52, %v2536_v55 }
 0x5e1   : > { %v4027_v61 = vpop.eup %4026 }
 0x5e2   : > { %v2559_v62 = vmul.f32 %v4027_v61, %v2557_v50  ;;  %v2538_v63 = vadd.f32 %v4025_v52, %v2537_v59  ;;  %vm2564_vm12 = vweird.f32 %v4027_v61 }
 0x5e3   : > { %vm2565_vm14 = vmor %vm2563_vm13, %vm2564_vm12 }
 0x5e4   : > { %v2560_v2 = vsub.f32 1.0, %v2559_v62  ;;  %v2542_v4 = vsel %vm2541_vm10, %v4025_v52, %v2538_v63 }
 0x5e5   : > { %v2547_v5 = vsel %vm2544_vm11, %v2546_v0, %v2542_v4 }
 0x5e6   : > { %v2573_v6 = vmul.f32 %v2547_v5, %v2525_v3  ;;  %v2561_v7 = vmul.f32 %v4027_v61, %v2560_v2 }
 0x5e8   : > { %v2575_v8 = vadd.f32 %v2574_v1, %v2573_v6  ;;  %v2562_v9 = vadd.f32 %v4027_v61, %v2561_v7 }
 0x5ea   : > { %4028 = vtanh.f32 %v2575_v8  ;;  %v2566_v12 = vsel %vm2565_vm14, %v4027_v61, %v2562_v9 }
 0x5eb   : > { %v2571_v43 = vsel %vm2568_vm15, %v2570_v13, %v2566_v12 }
 0x5f0   : > { %v4029_v45 = vpop.eup %4028 }
 0x5f1   : > { %v2577_v14 = vsub.f32 %v4835_v47, %v4029_v45 }
 0x5f3   : > { %v2578_v42 = vmul.f32 %v2577_v14, %v2571_v43 }
 0x5f5   : > { %v2579_v22 = vadd.f32 %v4029_v45, %v2578_v42  ;;  %2599 = sbr.rel (!%p4192_p9) target bundleno = 1545 (0x609), region = 78 }
 0x5f7   : > { %v2580_v39 = vpack.c.bf16 %v2579_v22, %v2579_v22  ;;  %2588 = vst [vmem:[%s422_s11] sm:$0xff] %v2579_v22 }
 0x5f9   : > { %2583 = vst [vmem:[%s2582_s24] sm:$0xf] %v2580_v39 }
 0x600   : > { %v2626_v26 = vld [vmem:[%s4383_s17] sm:$0xf]  ;;  %v2628_v44 = vld [vmem:[%s4383_s17 + $0x4] sm:$0xf]  ;;  %v2630_v15 = vld [vmem:[%s4383_s17 + $0x8] sm:$0xf] }
 0x601   : > { %2627 = vst [vmem:[%s2609_s28] sm:$0xf] %v2626_v26  ;;  %v2632_v16 = vld [vmem:[%s4383_s17 + $0xc] sm:$0xf]  ;;  %v2634_v46 = vld [vmem:[%s4383_s17 + $0x10] sm:$0xf] }
 0x602   : > { %2629 = vst [vmem:[%s2609_s28 + $0x8] sm:$0xf] %v2628_v44  ;;  %v2636_v53 = vld [vmem:[%s4383_s17 + $0x14] sm:$0xf]  ;;  %v2638_v18 = vld [vmem:[%s4383_s17 + $0x18] sm:$0xf] }
 0x603   : > { %2631 = vst [vmem:[%s2609_s28 + $0x10] sm:$0xf] %v2630_v15  ;;  %v2640_v19 = vld [vmem:[%s4383_s17 + $0x1c] sm:$0xf] }
 0x604   : > { %2633 = vst [vmem:[%s2609_s28 + $0x18] sm:$0xf] %v2632_v16 }
 0x605   : > { %2635 = vst [vmem:[%s2609_s28 + $0x20] sm:$0xf] %v2634_v46 }
 0x606   : > { %2637 = vst [vmem:[%s2609_s28 + $0x28] sm:$0xf] %v2636_v53 }
 0x607   : > { %2639 = vst [vmem:[%s2609_s28 + $0x30] sm:$0xf] %v2638_v18 }
 0x608   : > { %2641 = vst [vmem:[%s2609_s28 + $0x38] sm:$0xf] %v2640_v19 }
 0x609 PF: > { %s19_s23 = sadd.s32 1, %s4108_s23   ;;  %s4900_s18 = smov %s4092_s19 }
 0x60a   : > { %p16_p2 = scmp.ge.s32.totalorder %s19_s23, 4   ;;  %s4901_s19 = smov %s4096_s20 }
 0x60b   : > { %s4902_s20 = smov %s4190_s30  ;;  %s4903_s21 = smov %s4104_s22 }
 0x60c   : > { %s4904_s22 = smov %s4906_s25  ;;  %18 = sbr.rel (!%p16_p2) target bundleno = 4 (0x4), region = 199 }
 0x611   :  { %2701 = vsyncpa [#allocation5], 1 }
 0x612   :  { %2703 = vsyncpa [#allocation5 + $0x1], 1 }

</bundles_post_ra>
